<compile_context>
chip_gen: v7x
topology: tpu7x:2x2x1
jax: 0.10.0
libtpu: 0.0.40
codegen_flags: <defaults>
</compile_context>

<pallas_src>
import functools
import math

import jax
import jax.numpy as jnp
from jax.experimental import pallas as pl
from jax.experimental.pallas import tpu as pltpu

NEG_SLOPE = 0.1
EPS = 1e-5  # PyTorch InstanceNorm2d default


def _leaky_relu(x, neg_slope=NEG_SLOPE):
    return jnp.where(x >= 0, x, neg_slope * x)


# ------------------------------ wrapper prep --------------------------------

def _phase_split_pad(x_nchw, pad):
    """(N,C,H,W) -> (N, 2, 2, C, Hh*Wh): zero-pad, split 2x2 phases, flatten."""
    N, C, H, W = x_nchw.shape
    xp = jnp.pad(x_nchw, ((0, 0), (0, 0), (pad, pad), (pad, pad)))
    HP, WP = H + 2 * pad, W + 2 * pad
    xr = xp.reshape(N, C, HP // 2, 2, WP // 2, 2)        # (N,C,i,rh,j,rw)
    xr = jnp.transpose(xr, (0, 3, 5, 1, 2, 4))           # (N,rh,rw,C,i,j)
    return xr.reshape(N, 2, 2, C, (HP // 2) * (WP // 2))


# ------------------------------ fused kernel --------------------------------

def _make_kernel(C, C2, H, W, k, p):
    """Build the fused per-batch kernel (all sizes are static Python ints)."""
    Hh = H // 2 + p                  # phase rows (padded)
    Wh = W // 2 + p                  # phase cols (padded)
    P = Hh * Wh                      # flat phase size
    OH2, OW2 = H // 2, W // 2        # final output spatial size
    Q = (OH2 - 1) * Wh + OW2         # pseudo-flat range covering valid outputs
    D0 = (p // 2) * Wh + (p // 2)    # store offset of y1 into padded phase
    KK = k * k
    cnt = float(OH2 * OW2)

    def kernel(xph_ref, w1_ref, w2_ref, b1_ref, b2_ref, g_ref, be_ref,
               o_ref, y1p_ref, stk_ref):
        f32 = jnp.float32
        md = y1p_ref.dtype

        # validity mask over the pseudo-flat lanes (junk columns: q % Wh >= OW2)
        col = jax.lax.broadcasted_iota(jnp.int32, (1, Q), 1) % Wh
        maskf = (col < OW2).astype(f32)

        w1 = w1_ref[...]                                  # (C, KK*C)
        b1 = b1_ref[...]                                  # (C, 1) f32

        # -------------- conv1 (stride 1) + bias + LeakyReLU ----------------
        # One K-fused matmul per output phase: all k*k tap slices are copied
        # once into the stacked scratch (the lane shifts happen here, not
        # interleaved with MXU pushes), then a single big-K dot.
        for sh in range(2):
            for sw in range(2):
                for kh in range(k):
                    ah, rh = divmod(sh + kh, 2)
                    for kw in range(k):
                        aw, rw = divmod(sw + kw, 2)
                        off = ah * Wh + aw
                        t = kh * k + kw
                        stk_ref[t * C:(t + 1) * C, :] = (
                            xph_ref[0, rh, rw, :, off:off + Q])
                y1 = jnp.dot(w1, stk_ref[...], preferred_element_type=f32) + b1
                # zero the junk lanes so the single contiguous store below
                # also refreshes every halo position it touches with zeros
                y1 = (_leaky_relu(y1) * maskf).astype(md)
                # halo ranges not covered by the big store: zeroed every step
                # (no cross-iteration scratch state -> megacore-safe)
                if D0 > 0:
                    y1p_ref[sh, sw, :, 0:D0] = jnp.zeros((C, D0), md)
                if P - (D0 + Q) > 0:
                    y1p_ref[sh, sw, :, D0 + Q:P] = (
                        jnp.zeros((C, P - D0 - Q), md))
                y1p_ref[sh, sw, :, D0:D0 + Q] = y1        # one lane-dense store

        # ------ conv2 (stride 2) + bias + InstanceNorm + LeakyReLU ---------
        for kh in range(k):
            ah, rh = divmod(kh, 2)
            for kw in range(k):
                aw, rw = divmod(kw, 2)
                off = ah * Wh + aw
                t = kh * k + kw
                stk_ref[t * C:(t + 1) * C, :] = y1p_ref[rh, rw, :, off:off + Q]
        y2 = jnp.dot(w2_ref[...], stk_ref[...],
                     preferred_element_type=f32) + b2_ref[...]   # (C2, Q) f32

        # Two-pass InstanceNorm statistics over the valid lanes (robust to
        # large means, unlike E[y^2]-mean^2); affine folded into scale/shift.
        ym = y2 * maskf
        mean = jnp.sum(ym, axis=1, keepdims=True) * (1.0 / cnt)
        cen = (y2 - mean) * maskf
        var = jnp.sum(cen * cen, axis=1, keepdims=True) * (1.0 / cnt)
        scale = jax.lax.rsqrt(var + EPS) * g_ref[...]
        shift = be_ref[...] - mean * scale
        o_ref[0, :, :] = _leaky_relu(y2 * scale + shift).astype(o_ref.dtype)

    return kernel, P, Q, OH2, OW2


# ------------------------------- public API ---------------------------------

@functools.partial(jax.jit, static_argnames=("kernel", "matmul_dtype"))
def downsample_block(x, params, kernel=5, matmul_dtype=jnp.bfloat16):
    """Forward pass equivalent to the PyTorch DownsampleBlock. x: (N,C,H,W) f32.

    matmul_dtype=bf16 (default) runs the conv matmuls at MXU bf16 peak and
    stores the intermediate y1 in bf16; accumulation and the epilogue
    (bias, LeakyReLU, InstanceNorm, affine) stay f32.  Pass jnp.float32 for a
    bit-closer match to the PyTorch reference.
    """
    w1, b1, w2, b2, gamma, beta = params
    N, C, H, W = x.shape
    C2 = 2 * C
    k = kernel
    pad1 = math.ceil((k - 1) / 2)
    pad2 = math.ceil((k - 2) / 2)
    assert k % 2 == 1 and pad1 == pad2 and pad1 % 2 == 0, (
        "fused phase-decomposed kernel requires kernel size in {1, 5, 9, ...}")
    assert H % 2 == 0 and W % 2 == 0, "H and W must be even"
    p = pad1

    md = jnp.dtype(matmul_dtype)
    kern, P, Q, OH2, OW2 = _make_kernel(C, C2, H, W, k, p)
    KKC = k * k * C
    Wh = W // 2 + p

    # wrapper-side data prep (cheap XLA ops; no HBM im2col materialization)
    xph = _phase_split_pad(x.astype(jnp.float32), p).astype(md)   # (N,2,2,C,P)
    # K-fused weight layout: column block t = kh*k+kw holds w[:, :, kh, kw]
    w1s = jnp.transpose(w1, (0, 2, 3, 1)).reshape(C, KKC).astype(md)
    w2s = jnp.transpose(w2, (0, 2, 3, 1)).reshape(C2, KKC).astype(md)
    b1c = b1.reshape(C, 1).astype(jnp.float32)
    b2c = b2.reshape(C2, 1).astype(jnp.float32)
    gc = gamma.reshape(C2, 1).astype(jnp.float32)
    bc = beta.reshape(C2, 1).astype(jnp.float32)

    # Honest VMEM budget (double-buffered blocks + scratches + live temps),
    # capped to the actual part's VMEM (v7x is 64 MiB, v5e/v6e 128 MiB).
    itemsize = md.itemsize
    need = (2 * 4 * C * P * itemsize            # xph block, double-buffered
            + 2 * (C + C2) * KKC * itemsize     # weight blocks, double-buffered
            + 2 * C2 * Q * 4                    # output block, double-buffered
            + 4 * C * P * itemsize              # y1p phase scratch
            + KKC * Q * itemsize                # stacked-K scratch
            + 6 * C2 * Q * 4                    # live f32 temps (y1/y2/cen/...)
            + 2 * 4 * (C + 3 * C2))             # per-channel scalars
    try:
        cap = int(0.85 * pltpu.get_tpu_info().vmem_capacity_bytes)
    except Exception:
        cap = int(0.85 * (64 * 2 ** 20))        # v7x-safe fallback
    vmem_limit = int(min(cap, max(32 * 2 ** 20, int(1.25 * need))))

    flops = 2 * N * k * k * C * (H * W * C + OH2 * OW2 * C2)
    bytes_accessed = (xph.size * itemsize + (w1s.size + w2s.size) * itemsize
                      + (b1c.size + b2c.size + gc.size + bc.size) * 4
                      + N * C2 * Q * 4)

    out_flat = pl.pallas_call(
        kern,
        out_shape=jax.ShapeDtypeStruct((N, C2, Q), jnp.float32),
        grid=(N,),
        in_specs=[
            pl.BlockSpec((1, 2, 2, C, P), lambda n: (n, 0, 0, 0, 0)),
            pl.BlockSpec((C, KKC), lambda n: (0, 0)),
            pl.BlockSpec((C2, KKC), lambda n: (0, 0)),
            pl.BlockSpec((C, 1), lambda n: (0, 0)),
            pl.BlockSpec((C2, 1), lambda n: (0, 0)),
            pl.BlockSpec((C2, 1), lambda n: (0, 0)),
            pl.BlockSpec((C2, 1), lambda n: (0, 0)),
        ],
        out_specs=pl.BlockSpec((1, C2, Q), lambda n: (n, 0, 0)),
        scratch_shapes=[pltpu.VMEM((2, 2, C, P), md),     # y1 phase planes
                        pltpu.VMEM((KKC, Q), md)],        # stacked-K operand
        compiler_params=pltpu.CompilerParams(
            dimension_semantics=("parallel",),
            vmem_limit_bytes=vmem_limit),
        cost_estimate=pl.CostEstimate(
            flops=flops, transcendentals=N * C2,
            bytes_accessed=bytes_accessed),
    )(xph, w1s, w2s, b1c, b2c, gc, bc)

    # drop the junk pseudo-columns (lane-dense kernel store, cheap XLA slice)
    out = jnp.pad(out_flat, ((0, 0), (0, 0), (0, OH2 * Wh - Q)))
    out = out.reshape(N, C2, OH2, Wh)[..., :OW2]
    return out


def init_params(key, block_channels, kernel=5):
    """Deterministic init matching the PyTorch module's parameter shapes."""
    C, k = block_channels, kernel
    C2 = 2 * C
    k1, k2, k3, k4 = jax.random.split(key, 4)
    fan = C * k * k
    blim = 1.0 / math.sqrt(fan)
    w1 = jax.random.uniform(k1, (C, C, k, k), jnp.float32, -blim, blim)
    b1 = jax.random.uniform(k2, (C,), jnp.float32, -blim, blim)
    w2 = jax.random.uniform(k3, (C2, C, k, k), jnp.float32, -blim, blim)
    b2 = jax.random.uniform(k4, (C2,), jnp.float32, -blim, blim)
    gamma = jnp.ones((C2,), jnp.float32)   # InstanceNorm2d affine init
    beta = jnp.zeros((C2,), jnp.float32)
    return (w1, b1, w2, b2, gamma, beta)


# ------------------------- pure-JAX reference check --------------------------

def _reference(x, params, kernel=5):
    w1, b1, w2, b2, gamma, beta = params
    pad1 = math.ceil((kernel - 1) / 2)
    pad2 = math.ceil((kernel - 2) / 2)
    dn = ("NCHW", "OIHW", "NCHW")
    y = jax.lax.conv_general_dilated(
        x, w1, (1, 1), [(pad1, pad1), (pad1, pad1)],
        dimension_numbers=dn, precision=jax.lax.Precision.HIGHEST)
    y = _leaky_relu(y + b1[None, :, None, None])
    y = jax.lax.conv_general_dilated(
        y, w2, (2, 2), [(pad2, pad2), (pad2, pad2)],
        dimension_numbers=dn, precision=jax.lax.Precision.HIGHEST)
    y = y + b2[None, :, None, None]
    mean = jnp.mean(y, axis=(2, 3), keepdims=True)
    var = jnp.mean((y - mean) ** 2, axis=(2, 3), keepdims=True)
    y = (y - mean) * jax.lax.rsqrt(var + EPS)
    y = y * gamma[None, :, None, None] + beta[None, :, None, None]
    return _leaky_relu(y)


if __name__ == "__main__":
    N, C, H, W = 2, 4, 16, 16
    key = jax.random.PRNGKey(0)
    kx, kp = jax.random.split(key)
    x = jax.random.normal(kx, (N, C, H, W), jnp.float32)
    params = init_params(kp, C, kernel=5)

    ref = _reference(x, params, kernel=5)

    # default path: bf16 matmuls + bf16 y1 scratch, f32 accumulation/epilogue
    out_bf16 = jax.block_until_ready(downsample_block(x, params, kernel=5))
    assert out_bf16.shape == (N, 2 * C, H // 2, W // 2), out_bf16.shape
    assert bool(jnp.all(jnp.isfinite(out_bf16)))
    err_bf16 = float(jnp.max(jnp.abs(out_bf16 - ref)))
    assert err_bf16 < 8e-2, f"bf16 path: max abs error vs reference: {err_bf16}"

    # f32 path for a tight numerical check of the fused structure
    out_f32 = jax.block_until_ready(
        downsample_block(x, params, kernel=5, matmul_dtype=jnp.float32))
    assert out_f32.shape == (N, 2 * C, H // 2, W // 2), out_f32.shape
    assert bool(jnp.all(jnp.isfinite(out_f32)))
    err_f32 = float(jnp.max(jnp.abs(out_f32 - ref)))
    assert err_f32 < 5e-3, f"f32 path: max abs error vs reference: {err_f32}"

    print("KERNEL_OK")
</pallas_src>

<mosaic_0001>
module attributes {stable_mosaic.version = 11 : i64} {
  func.func @kernel(%arg0: i32, %arg1: memref<1x2x2x4x100xbf16, #tpu.memory_space<vmem>>, %arg2: memref<4x100xbf16, #tpu.memory_space<vmem>>, %arg3: memref<8x100xbf16, #tpu.memory_space<vmem>>, %arg4: memref<4x1xf32, #tpu.memory_space<vmem>>, %arg5: memref<8x1xf32, #tpu.memory_space<vmem>>, %arg6: memref<8x1xf32, #tpu.memory_space<vmem>>, %arg7: memref<8x1xf32, #tpu.memory_space<vmem>>, %arg8: memref<1x8x78xf32, #tpu.memory_space<vmem>>, %arg9: memref<2x2x4x100xbf16, #tpu.memory_space<vmem>>, %arg10: memref<100x78xbf16, #tpu.memory_space<vmem>>) attributes {dimension_semantics = [#tpu.dimension_semantics<parallel>], iteration_bounds = array<i64: 2>, scalar_prefetch = 0 : i64, scratch_operands = 2 : i64, tpu.core_type = #tpu.core_type<tc>, window_params = [{transform_indices = @transform_0, window_bounds = array<i64: 1, 2, 2, 4, 100>}, {pipeline_mode = #tpu.pipeline_mode<synchronous>, transform_indices = @transform_1, window_bounds = array<i64: 4, 100>}, {pipeline_mode = #tpu.pipeline_mode<synchronous>, transform_indices = @transform_2, window_bounds = array<i64: 8, 100>}, {pipeline_mode = #tpu.pipeline_mode<synchronous>, transform_indices = @transform_3, window_bounds = array<i64: 4, 1>}, {pipeline_mode = #tpu.pipeline_mode<synchronous>, transform_indices = @transform_4, window_bounds = array<i64: 8, 1>}, {pipeline_mode = #tpu.pipeline_mode<synchronous>, transform_indices = @transform_5, window_bounds = array<i64: 8, 1>}, {pipeline_mode = #tpu.pipeline_mode<synchronous>, transform_indices = @transform_6, window_bounds = array<i64: 8, 1>}, {transform_indices = @transform_7, window_bounds = array<i64: 1, 8, 78>}]} {
    %0 = tpu.iota {dimensions = array<i32: 1>} : vector<1x78xi32>
    %c10_i32 = arith.constant 10 : i32
    %c0_i32 = arith.constant 0 : i32
    %1 = arith.cmpi eq, %c10_i32, %c0_i32 : i32
    %c1_i32 = arith.constant 1 : i32
    %2 = arith.select %1, %c1_i32, %c10_i32 : i32
    %3 = vector.broadcast %2 : i32 to vector<1x78xi32>
    %4 = arith.remsi %0, %3 : vector<1x78xi32>
    %c0_i32_0 = arith.constant 0 : i32
    %5 = vector.broadcast %c0_i32_0 : i32 to vector<1x78xi32>
    %6 = arith.cmpi ne, %4, %5 : vector<1x78xi32>
    %c0_i32_1 = arith.constant 0 : i32
    %7 = vector.broadcast %c0_i32_1 : i32 to vector<1x78xi32>
    %8 = arith.cmpi slt, %4, %7 : vector<1x78xi32>
    %c0_i32_2 = arith.constant 0 : i32
    %9 = arith.cmpi slt, %2, %c0_i32_2 : i32
    %10 = vector.broadcast %9 : i1 to vector<1x78xi1>
    %11 = vector.broadcast %10 : vector<1x78xi1> to vector<1x78xi1>
    %12 = arith.xori %8, %11 : vector<1x78xi1>
    %13 = arith.andi %12, %6 : vector<1x78xi1>
    %14 = vector.broadcast %2 : i32 to vector<1x78xi32>
    %15 = arith.addi %4, %14 : vector<1x78xi32>
    %16 = arith.select %13, %15, %4 : vector<1x78xi1>, vector<1x78xi32>
    %c8_i32 = arith.constant 8 : i32
    %17 = vector.broadcast %c8_i32 : i32 to vector<1x78xi32>
    %18 = arith.cmpi slt, %16, %17 : vector<1x78xi32>
    %19 = arith.extui %18 : vector<1x78xi1> to vector<1x78xi32>
    %20 = arith.sitofp %19 : vector<1x78xi32> to vector<1x78xf32>
    %c0 = arith.constant 0 : index
    %c0_3 = arith.constant 0 : index
    %21 = vector.load %arg2[%c0, %c0_3] : memref<4x100xbf16, #tpu.memory_space<vmem>>, vector<4x100xbf16>
    %c0_4 = arith.constant 0 : index
    %c0_5 = arith.constant 0 : index
    %22 = vector.load %arg4[%c0_4, %c0_5] : memref<4x1xf32, #tpu.memory_space<vmem>>, vector<4x1xf32>
    %c0_6 = arith.constant 0 : index
    %c0_7 = arith.constant 0 : index
    %c0_8 = arith.constant 0 : index
    %c0_9 = arith.constant 0 : index
    %c0_10 = arith.constant 0 : index
    %23 = vector.load %arg1[%c0_6, %c0_7, %c0_8, %c0_9, %c0_10] : memref<1x2x2x4x100xbf16, #tpu.memory_space<vmem>>, vector<1x1x1x4x78xbf16>
    %24 = vector.shape_cast %23 : vector<1x1x1x4x78xbf16> to vector<4x78xbf16>
    %c0_11 = arith.constant 0 : index
    %c0_12 = arith.constant 0 : index
    %25 = vector.load %arg10[%c0_11, %c0_12] : memref<100x78xbf16, #tpu.memory_space<vmem>>, vector<4x78xbf16>
    tpu.vector_store %arg10[%c0_11, %c0_12], %24 {strides = array<i32>} : memref<100x78xbf16, #tpu.memory_space<vmem>>, vector<4x78xbf16>,
    %c0_13 = arith.constant 0 : index
    %c0_14 = arith.constant 0 : index
    %c1 = arith.constant 1 : index
    %c0_15 = arith.constant 0 : index
    %c0_16 = arith.constant 0 : index
    %26 = vector.load %arg1[%c0_13, %c0_14, %c1, %c0_15, %c0_16] : memref<1x2x2x4x100xbf16, #tpu.memory_space<vmem>>, vector<1x1x1x4x78xbf16>
    %27 = vector.shape_cast %26 : vector<1x1x1x4x78xbf16> to vector<4x78xbf16>
    %c4 = arith.constant 4 : index
    %c0_17 = arith.constant 0 : index
    %28 = vector.load %arg10[%c4, %c0_17] : memref<100x78xbf16, #tpu.memory_space<vmem>>, vector<4x78xbf16>
    tpu.vector_store %arg10[%c4, %c0_17], %27 {strides = array<i32>} : memref<100x78xbf16, #tpu.memory_space<vmem>>, vector<4x78xbf16>,
    %c0_18 = arith.constant 0 : index
    %c0_19 = arith.constant 0 : index
    %c0_20 = arith.constant 0 : index
    %c0_21 = arith.constant 0 : index
    %c1_22 = arith.constant 1 : index
    %29 = vector.load %arg1[%c0_18, %c0_19, %c0_20, %c0_21, %c1_22] : memref<1x2x2x4x100xbf16, #tpu.memory_space<vmem>>, vector<1x1x1x4x78xbf16>
    %30 = vector.shape_cast %29 : vector<1x1x1x4x78xbf16> to vector<4x78xbf16>
    %c8 = arith.constant 8 : index
    %c0_23 = arith.constant 0 : index
    %31 = vector.load %arg10[%c8, %c0_23] : memref<100x78xbf16, #tpu.memory_space<vmem>>, vector<4x78xbf16>
    tpu.vector_store %arg10[%c8, %c0_23], %30 {strides = array<i32>} : memref<100x78xbf16, #tpu.memory_space<vmem>>, vector<4x78xbf16>,
    %c0_24 = arith.constant 0 : index
    %c0_25 = arith.constant 0 : index
    %c1_26 = arith.constant 1 : index
    %c0_27 = arith.constant 0 : index
    %c1_28 = arith.constant 1 : index
    %32 = vector.load %arg1[%c0_24, %c0_25, %c1_26, %c0_27, %c1_28] : memref<1x2x2x4x100xbf16, #tpu.memory_space<vmem>>, vector<1x1x1x4x78xbf16>
    %33 = vector.shape_cast %32 : vector<1x1x1x4x78xbf16> to vector<4x78xbf16>
    %c12 = arith.constant 12 : index
    %c0_29 = arith.constant 0 : index
    %34 = vector.load %arg10[%c12, %c0_29] : memref<100x78xbf16, #tpu.memory_space<vmem>>, vector<4x78xbf16>
    tpu.vector_store %arg10[%c12, %c0_29], %33 {strides = array<i32>} : memref<100x78xbf16, #tpu.memory_space<vmem>>, vector<4x78xbf16>,
    %c0_30 = arith.constant 0 : index
    %c0_31 = arith.constant 0 : index
    %c0_32 = arith.constant 0 : index
    %c0_33 = arith.constant 0 : index
    %c2 = arith.constant 2 : index
    %35 = vector.load %arg1[%c0_30, %c0_31, %c0_32, %c0_33, %c2] : memref<1x2x2x4x100xbf16, #tpu.memory_space<vmem>>, vector<1x1x1x4x78xbf16>
    %36 = vector.shape_cast %35 : vector<1x1x1x4x78xbf16> to vector<4x78xbf16>
    %c16 = arith.constant 16 : index
    %c0_34 = arith.constant 0 : index
    %37 = vector.load %arg10[%c16, %c0_34] : memref<100x78xbf16, #tpu.memory_space<vmem>>, vector<4x78xbf16>
    tpu.vector_store %arg10[%c16, %c0_34], %36 {strides = array<i32>} : memref<100x78xbf16, #tpu.memory_space<vmem>>, vector<4x78xbf16>,
    %c0_35 = arith.constant 0 : index
    %c1_36 = arith.constant 1 : index
    %c0_37 = arith.constant 0 : index
    %c0_38 = arith.constant 0 : index
    %c0_39 = arith.constant 0 : index
    %38 = vector.load %arg1[%c0_35, %c1_36, %c0_37, %c0_38, %c0_39] : memref<1x2x2x4x100xbf16, #tpu.memory_space<vmem>>, vector<1x1x1x4x78xbf16>
    %39 = vector.shape_cast %38 : vector<1x1x1x4x78xbf16> to vector<4x78xbf16>
    %c20 = arith.constant 20 : index
    %c0_40 = arith.constant 0 : index
    %40 = vector.load %arg10[%c20, %c0_40] : memref<100x78xbf16, #tpu.memory_space<vmem>>, vector<4x78xbf16>
    tpu.vector_store %arg10[%c20, %c0_40], %39 {strides = array<i32>} : memref<100x78xbf16, #tpu.memory_space<vmem>>, vector<4x78xbf16>,
    %c0_41 = arith.constant 0 : index
    %c1_42 = arith.constant 1 : index
    %c1_43 = arith.constant 1 : index
    %c0_44 = arith.constant 0 : index
    %c0_45 = arith.constant 0 : index
    %41 = vector.load %arg1[%c0_41, %c1_42, %c1_43, %c0_44, %c0_45] : memref<1x2x2x4x100xbf16, #tpu.memory_space<vmem>>, vector<1x1x1x4x78xbf16>
    %42 = vector.shape_cast %41 : vector<1x1x1x4x78xbf16> to vector<4x78xbf16>
    %c24 = arith.constant 24 : index
    %c0_46 = arith.constant 0 : index
    %43 = vector.load %arg10[%c24, %c0_46] : memref<100x78xbf16, #tpu.memory_space<vmem>>, vector<4x78xbf16>
    tpu.vector_store %arg10[%c24, %c0_46], %42 {strides = array<i32>} : memref<100x78xbf16, #tpu.memory_space<vmem>>, vector<4x78xbf16>,
    %c0_47 = arith.constant 0 : index
    %c1_48 = arith.constant 1 : index
    %c0_49 = arith.constant 0 : index
    %c0_50 = arith.constant 0 : index
    %c1_51 = arith.constant 1 : index
    %44 = vector.load %arg1[%c0_47, %c1_48, %c0_49, %c0_50, %c1_51] : memref<1x2x2x4x100xbf16, #tpu.memory_space<vmem>>, vector<1x1x1x4x78xbf16>
    %45 = vector.shape_cast %44 : vector<1x1x1x4x78xbf16> to vector<4x78xbf16>
    %c28 = arith.constant 28 : index
    %c0_52 = arith.constant 0 : index
    %46 = vector.load %arg10[%c28, %c0_52] : memref<100x78xbf16, #tpu.memory_space<vmem>>, vector<4x78xbf16>
    tpu.vector_store %arg10[%c28, %c0_52], %45 {strides = array<i32>} : memref<100x78xbf16, #tpu.memory_space<vmem>>, vector<4x78xbf16>,
    %c0_53 = arith.constant 0 : index
    %c1_54 = arith.constant 1 : index
    %c1_55 = arith.constant 1 : index
    %c0_56 = arith.constant 0 : index
    %c1_57 = arith.constant 1 : index
    %47 = vector.load %arg1[%c0_53, %c1_54, %c1_55, %c0_56, %c1_57] : memref<1x2x2x4x100xbf16, #tpu.memory_space<vmem>>, vector<1x1x1x4x78xbf16>
    %48 = vector.shape_cast %47 : vector<1x1x1x4x78xbf16> to vector<4x78xbf16>
    %c32 = arith.constant 32 : index
    %c0_58 = arith.constant 0 : index
    %49 = vector.load %arg10[%c32, %c0_58] : memref<100x78xbf16, #tpu.memory_space<vmem>>, vector<4x78xbf16>
    tpu.vector_store %arg10[%c32, %c0_58], %48 {strides = array<i32>} : memref<100x78xbf16, #tpu.memory_space<vmem>>, vector<4x78xbf16>,
    %c0_59 = arith.constant 0 : index
    %c1_60 = arith.constant 1 : index
    %c0_61 = arith.constant 0 : index
    %c0_62 = arith.constant 0 : index
    %c2_63 = arith.constant 2 : index
    %50 = vector.load %arg1[%c0_59, %c1_60, %c0_61, %c0_62, %c2_63] : memref<1x2x2x4x100xbf16, #tpu.memory_space<vmem>>, vector<1x1x1x4x78xbf16>
    %51 = vector.shape_cast %50 : vector<1x1x1x4x78xbf16> to vector<4x78xbf16>
    %c36 = arith.constant 36 : index
    %c0_64 = arith.constant 0 : index
    %52 = vector.load %arg10[%c36, %c0_64] : memref<100x78xbf16, #tpu.memory_space<vmem>>, vector<4x78xbf16>
    tpu.vector_store %arg10[%c36, %c0_64], %51 {strides = array<i32>} : memref<100x78xbf16, #tpu.memory_space<vmem>>, vector<4x78xbf16>,
    %c0_65 = arith.constant 0 : index
    %c0_66 = arith.constant 0 : index
    %c0_67 = arith.constant 0 : index
    %c0_68 = arith.constant 0 : index
    %c10 = arith.constant 10 : index
    %53 = vector.load %arg1[%c0_65, %c0_66, %c0_67, %c0_68, %c10] : memref<1x2x2x4x100xbf16, #tpu.memory_space<vmem>>, vector<1x1x1x4x78xbf16>
    %54 = vector.shape_cast %53 : vector<1x1x1x4x78xbf16> to vector<4x78xbf16>
    %c40 = arith.constant 40 : index
    %c0_69 = arith.constant 0 : index
    %55 = vector.load %arg10[%c40, %c0_69] : memref<100x78xbf16, #tpu.memory_space<vmem>>, vector<4x78xbf16>
    tpu.vector_store %arg10[%c40, %c0_69], %54 {strides = array<i32>} : memref<100x78xbf16, #tpu.memory_space<vmem>>, vector<4x78xbf16>,
    %c0_70 = arith.constant 0 : index
    %c0_71 = arith.constant 0 : index
    %c1_72 = arith.constant 1 : index
    %c0_73 = arith.constant 0 : index
    %c10_74 = arith.constant 10 : index
    %56 = vector.load %arg1[%c0_70, %c0_71, %c1_72, %c0_73, %c10_74] : memref<1x2x2x4x100xbf16, #tpu.memory_space<vmem>>, vector<1x1x1x4x78xbf16>
    %57 = vector.shape_cast %56 : vector<1x1x1x4x78xbf16> to vector<4x78xbf16>
    %c44 = arith.constant 44 : index
    %c0_75 = arith.constant 0 : index
    %58 = vector.load %arg10[%c44, %c0_75] : memref<100x78xbf16, #tpu.memory_space<vmem>>, vector<4x78xbf16>
    tpu.vector_store %arg10[%c44, %c0_75], %57 {strides = array<i32>} : memref<100x78xbf16, #tpu.memory_space<vmem>>, vector<4x78xbf16>,
    %c0_76 = arith.constant 0 : index
    %c0_77 = arith.constant 0 : index
    %c0_78 = arith.constant 0 : index
    %c0_79 = arith.constant 0 : index
    %c11 = arith.constant 11 : index
    %59 = vector.load %arg1[%c0_76, %c0_77, %c0_78, %c0_79, %c11] : memref<1x2x2x4x100xbf16, #tpu.memory_space<vmem>>, vector<1x1x1x4x78xbf16>
    %60 = vector.shape_cast %59 : vector<1x1x1x4x78xbf16> to vector<4x78xbf16>
    %c48 = arith.constant 48 : index
    %c0_80 = arith.constant 0 : index
    %61 = vector.load %arg10[%c48, %c0_80] : memref<100x78xbf16, #tpu.memory_space<vmem>>, vector<4x78xbf16>
    tpu.vector_store %arg10[%c48, %c0_80], %60 {strides = array<i32>} : memref<100x78xbf16, #tpu.memory_space<vmem>>, vector<4x78xbf16>,
    %c0_81 = arith.constant 0 : index
    %c0_82 = arith.constant 0 : index
    %c1_83 = arith.constant 1 : index
    %c0_84 = arith.constant 0 : index
    %c11_85 = arith.constant 11 : index
    %62 = vector.load %arg1[%c0_81, %c0_82, %c1_83, %c0_84, %c11_85] : memref<1x2x2x4x100xbf16, #tpu.memory_space<vmem>>, vector<1x1x1x4x78xbf16>
    %63 = vector.shape_cast %62 : vector<1x1x1x4x78xbf16> to vector<4x78xbf16>
    %c52 = arith.constant 52 : index
    %c0_86 = arith.constant 0 : index
    %64 = vector.load %arg10[%c52, %c0_86] : memref<100x78xbf16, #tpu.memory_space<vmem>>, vector<4x78xbf16>
    tpu.vector_store %arg10[%c52, %c0_86], %63 {strides = array<i32>} : memref<100x78xbf16, #tpu.memory_space<vmem>>, vector<4x78xbf16>,
    %c0_87 = arith.constant 0 : index
    %c0_88 = arith.constant 0 : index
    %c0_89 = arith.constant 0 : index
    %c0_90 = arith.constant 0 : index
    %c12_91 = arith.constant 12 : index
    %65 = vector.load %arg1[%c0_87, %c0_88, %c0_89, %c0_90, %c12_91] : memref<1x2x2x4x100xbf16, #tpu.memory_space<vmem>>, vector<1x1x1x4x78xbf16>
    %66 = vector.shape_cast %65 : vector<1x1x1x4x78xbf16> to vector<4x78xbf16>
    %c56 = arith.constant 56 : index
    %c0_92 = arith.constant 0 : index
    %67 = vector.load %arg10[%c56, %c0_92] : memref<100x78xbf16, #tpu.memory_space<vmem>>, vector<4x78xbf16>
    tpu.vector_store %arg10[%c56, %c0_92], %66 {strides = array<i32>} : memref<100x78xbf16, #tpu.memory_space<vmem>>, vector<4x78xbf16>,
    %c0_93 = arith.constant 0 : index
    %c1_94 = arith.constant 1 : index
    %c0_95 = arith.constant 0 : index
    %c0_96 = arith.constant 0 : index
    %c10_97 = arith.constant 10 : index
    %68 = vector.load %arg1[%c0_93, %c1_94, %c0_95, %c0_96, %c10_97] : memref<1x2x2x4x100xbf16, #tpu.memory_space<vmem>>, vector<1x1x1x4x78xbf16>
    %69 = vector.shape_cast %68 : vector<1x1x1x4x78xbf16> to vector<4x78xbf16>
    %c60 = arith.constant 60 : index
    %c0_98 = arith.constant 0 : index
    %70 = vector.load %arg10[%c60, %c0_98] : memref<100x78xbf16, #tpu.memory_space<vmem>>, vector<4x78xbf16>
    tpu.vector_store %arg10[%c60, %c0_98], %69 {strides = array<i32>} : memref<100x78xbf16, #tpu.memory_space<vmem>>, vector<4x78xbf16>,
    %c0_99 = arith.constant 0 : index
    %c1_100 = arith.constant 1 : index
    %c1_101 = arith.constant 1 : index
    %c0_102 = arith.constant 0 : index
    %c10_103 = arith.constant 10 : index
    %71 = vector.load %arg1[%c0_99, %c1_100, %c1_101, %c0_102, %c10_103] : memref<1x2x2x4x100xbf16, #tpu.memory_space<vmem>>, vector<1x1x1x4x78xbf16>
    %72 = vector.shape_cast %71 : vector<1x1x1x4x78xbf16> to vector<4x78xbf16>
    %c64 = arith.constant 64 : index
    %c0_104 = arith.constant 0 : index
    %73 = vector.load %arg10[%c64, %c0_104] : memref<100x78xbf16, #tpu.memory_space<vmem>>, vector<4x78xbf16>
    tpu.vector_store %arg10[%c64, %c0_104], %72 {strides = array<i32>} : memref<100x78xbf16, #tpu.memory_space<vmem>>, vector<4x78xbf16>,
    %c0_105 = arith.constant 0 : index
    %c1_106 = arith.constant 1 : index
    %c0_107 = arith.constant 0 : index
    %c0_108 = arith.constant 0 : index
    %c11_109 = arith.constant 11 : index
    %74 = vector.load %arg1[%c0_105, %c1_106, %c0_107, %c0_108, %c11_109] : memref<1x2x2x4x100xbf16, #tpu.memory_space<vmem>>, vector<1x1x1x4x78xbf16>
    %75 = vector.shape_cast %74 : vector<1x1x1x4x78xbf16> to vector<4x78xbf16>
    %c68 = arith.constant 68 : index
    %c0_110 = arith.constant 0 : index
    %76 = vector.load %arg10[%c68, %c0_110] : memref<100x78xbf16, #tpu.memory_space<vmem>>, vector<4x78xbf16>
    tpu.vector_store %arg10[%c68, %c0_110], %75 {strides = array<i32>} : memref<100x78xbf16, #tpu.memory_space<vmem>>, vector<4x78xbf16>,
    %c0_111 = arith.constant 0 : index
    %c1_112 = arith.constant 1 : index
    %c1_113 = arith.constant 1 : index
    %c0_114 = arith.constant 0 : index
    %c11_115 = arith.constant 11 : index
    %77 = vector.load %arg1[%c0_111, %c1_112, %c1_113, %c0_114, %c11_115] : memref<1x2x2x4x100xbf16, #tpu.memory_space<vmem>>, vector<1x1x1x4x78xbf16>
    %78 = vector.shape_cast %77 : vector<1x1x1x4x78xbf16> to vector<4x78xbf16>
    %c72 = arith.constant 72 : index
    %c0_116 = arith.constant 0 : index
    %79 = vector.load %arg10[%c72, %c0_116] : memref<100x78xbf16, #tpu.memory_space<vmem>>, vector<4x78xbf16>
    tpu.vector_store %arg10[%c72, %c0_116], %78 {strides = array<i32>} : memref<100x78xbf16, #tpu.memory_space<vmem>>, vector<4x78xbf16>,
    %c0_117 = arith.constant 0 : index
    %c1_118 = arith.constant 1 : index
    %c0_119 = arith.constant 0 : index
    %c0_120 = arith.constant 0 : index
    %c12_121 = arith.constant 12 : index
    %80 = vector.load %arg1[%c0_117, %c1_118, %c0_119, %c0_120, %c12_121] : memref<1x2x2x4x100xbf16, #tpu.memory_space<vmem>>, vector<1x1x1x4x78xbf16>
    %81 = vector.shape_cast %80 : vector<1x1x1x4x78xbf16> to vector<4x78xbf16>
    %c76 = arith.constant 76 : index
    %c0_122 = arith.constant 0 : index
    %82 = vector.load %arg10[%c76, %c0_122] : memref<100x78xbf16, #tpu.memory_space<vmem>>, vector<4x78xbf16>
    tpu.vector_store %arg10[%c76, %c0_122], %81 {strides = array<i32>} : memref<100x78xbf16, #tpu.memory_space<vmem>>, vector<4x78xbf16>,
    %c0_123 = arith.constant 0 : index
    %c0_124 = arith.constant 0 : index
    %c0_125 = arith.constant 0 : index
    %c0_126 = arith.constant 0 : index
    %c20_127 = arith.constant 20 : index
    %83 = vector.load %arg1[%c0_123, %c0_124, %c0_125, %c0_126, %c20_127] : memref<1x2x2x4x100xbf16, #tpu.memory_space<vmem>>, vector<1x1x1x4x78xbf16>
    %84 = vector.shape_cast %83 : vector<1x1x1x4x78xbf16> to vector<4x78xbf16>
    %c80 = arith.constant 80 : index
    %c0_128 = arith.constant 0 : index
    %85 = vector.load %arg10[%c80, %c0_128] : memref<100x78xbf16, #tpu.memory_space<vmem>>, vector<4x78xbf16>
    tpu.vector_store %arg10[%c80, %c0_128], %84 {strides = array<i32>} : memref<100x78xbf16, #tpu.memory_space<vmem>>, vector<4x78xbf16>,
    %c0_129 = arith.constant 0 : index
    %c0_130 = arith.constant 0 : index
    %c1_131 = arith.constant 1 : index
    %c0_132 = arith.constant 0 : index
    %c20_133 = arith.constant 20 : index
    %86 = vector.load %arg1[%c0_129, %c0_130, %c1_131, %c0_132, %c20_133] : memref<1x2x2x4x100xbf16, #tpu.memory_space<vmem>>, vector<1x1x1x4x78xbf16>
    %87 = vector.shape_cast %86 : vector<1x1x1x4x78xbf16> to vector<4x78xbf16>
    %c84 = arith.constant 84 : index
    %c0_134 = arith.constant 0 : index
    %88 = vector.load %arg10[%c84, %c0_134] : memref<100x78xbf16, #tpu.memory_space<vmem>>, vector<4x78xbf16>
    tpu.vector_store %arg10[%c84, %c0_134], %87 {strides = array<i32>} : memref<100x78xbf16, #tpu.memory_space<vmem>>, vector<4x78xbf16>,
    %c0_135 = arith.constant 0 : index
    %c0_136 = arith.constant 0 : index
    %c0_137 = arith.constant 0 : index
    %c0_138 = arith.constant 0 : index
    %c21 = arith.constant 21 : index
    %89 = vector.load %arg1[%c0_135, %c0_136, %c0_137, %c0_138, %c21] : memref<1x2x2x4x100xbf16, #tpu.memory_space<vmem>>, vector<1x1x1x4x78xbf16>
    %90 = vector.shape_cast %89 : vector<1x1x1x4x78xbf16> to vector<4x78xbf16>
    %c88 = arith.constant 88 : index
    %c0_139 = arith.constant 0 : index
    %91 = vector.load %arg10[%c88, %c0_139] : memref<100x78xbf16, #tpu.memory_space<vmem>>, vector<4x78xbf16>
    tpu.vector_store %arg10[%c88, %c0_139], %90 {strides = array<i32>} : memref<100x78xbf16, #tpu.memory_space<vmem>>, vector<4x78xbf16>,
    %c0_140 = arith.constant 0 : index
    %c0_141 = arith.constant 0 : index
    %c1_142 = arith.constant 1 : index
    %c0_143 = arith.constant 0 : index
    %c21_144 = arith.constant 21 : index
    %92 = vector.load %arg1[%c0_140, %c0_141, %c1_142, %c0_143, %c21_144] : memref<1x2x2x4x100xbf16, #tpu.memory_space<vmem>>, vector<1x1x1x4x78xbf16>
    %93 = vector.shape_cast %92 : vector<1x1x1x4x78xbf16> to vector<4x78xbf16>
    %c92 = arith.constant 92 : index
    %c0_145 = arith.constant 0 : index
    %94 = vector.load %arg10[%c92, %c0_145] : memref<100x78xbf16, #tpu.memory_space<vmem>>, vector<4x78xbf16>
    tpu.vector_store %arg10[%c92, %c0_145], %93 {strides = array<i32>} : memref<100x78xbf16, #tpu.memory_space<vmem>>, vector<4x78xbf16>,
    %c0_146 = arith.constant 0 : index
    %c0_147 = arith.constant 0 : index
    %c0_148 = arith.constant 0 : index
    %c0_149 = arith.constant 0 : index
    %c22 = arith.constant 22 : index
    %95 = vector.load %arg1[%c0_146, %c0_147, %c0_148, %c0_149, %c22] : memref<1x2x2x4x100xbf16, #tpu.memory_space<vmem>>, vector<1x1x1x4x78xbf16>
    %96 = vector.shape_cast %95 : vector<1x1x1x4x78xbf16> to vector<4x78xbf16>
    %c96 = arith.constant 96 : index
    %c0_150 = arith.constant 0 : index
    %97 = vector.load %arg10[%c96, %c0_150] : memref<100x78xbf16, #tpu.memory_space<vmem>>, vector<4x78xbf16>
    tpu.vector_store %arg10[%c96, %c0_150], %96 {strides = array<i32>} : memref<100x78xbf16, #tpu.memory_space<vmem>>, vector<4x78xbf16>,
    %c0_151 = arith.constant 0 : index
    %c0_152 = arith.constant 0 : index
    %98 = vector.load %arg10[%c0_151, %c0_152] : memref<100x78xbf16, #tpu.memory_space<vmem>>, vector<100x78xbf16>
    %cst = arith.constant dense<0.000000e+00> : vector<4x78xf32>
    %99 = tpu.matmul %21, %98, %cst {dimension_numbers = #tpu.dot_dimension_numbers<[1], [0], [0], [1], [0, 0, 1, 1], [], []>} : vector<4x100xbf16>, vector<100x78xbf16>, vector<4x78xf32> -> vector<4x78xf32>
    %100 = vector.broadcast %22 : vector<4x1xf32> to vector<4x78xf32>
    %101 = arith.addf %99, %100 : vector<4x78xf32>
    %cst_153 = arith.constant 0.000000e+00 : f32
    %102 = vector.broadcast %cst_153 : f32 to vector<4x78xf32>
    %103 = arith.cmpf oge, %101, %102 : vector<4x78xf32>
    %cst_154 = arith.constant 1.000000e-01 : f32
    %104 = vector.broadcast %cst_154 : f32 to vector<4x78xf32>
    %105 = arith.mulf %104, %101 : vector<4x78xf32>
    %106 = arith.select %103, %101, %105 : vector<4x78xi1>, vector<4x78xf32>
    %107 = vector.broadcast %20 : vector<1x78xf32> to vector<4x78xf32>
    %108 = arith.mulf %106, %107 : vector<4x78xf32>
    %109 = arith.truncf %108 : vector<4x78xf32> to vector<4x78xbf16>
    %cst_155 = arith.constant 0.000000e+00 : bf16
    %110 = vector.broadcast %cst_155 : bf16 to vector<4x11xbf16>
    %c0_156 = arith.constant 0 : index
    %c0_157 = arith.constant 0 : index
    %c0_158 = arith.constant 0 : index
    %c0_159 = arith.constant 0 : index
    %111 = vector.load %arg9[%c0_156, %c0_157, %c0_158, %c0_159] : memref<2x2x4x100xbf16, #tpu.memory_space<vmem>>, vector<1x1x4x11xbf16>
    %112 = vector.shape_cast %111 : vector<1x1x4x11xbf16> to vector<4x11xbf16>
    %113 = vector.shape_cast %110 : vector<4x11xbf16> to vector<1x1x4x11xbf16>
    tpu.vector_store %arg9[%c0_156, %c0_157, %c0_158, %c0_159], %113 {strides = array<i32>} : memref<2x2x4x100xbf16, #tpu.memory_space<vmem>>, vector<1x1x4x11xbf16>,
    %cst_160 = arith.constant 0.000000e+00 : bf16
    %114 = vector.broadcast %cst_160 : bf16 to vector<4x11xbf16>
    %c0_161 = arith.constant 0 : index
    %c0_162 = arith.constant 0 : index
    %c0_163 = arith.constant 0 : index
    %c89 = arith.constant 89 : index
    %115 = vector.load %arg9[%c0_161, %c0_162, %c0_163, %c89] : memref<2x2x4x100xbf16, #tpu.memory_space<vmem>>, vector<1x1x4x11xbf16>
    %116 = vector.shape_cast %115 : vector<1x1x4x11xbf16> to vector<4x11xbf16>
    %117 = vector.shape_cast %114 : vector<4x11xbf16> to vector<1x1x4x11xbf16>
    tpu.vector_store %arg9[%c0_161, %c0_162, %c0_163, %c89], %117 {strides = array<i32>} : memref<2x2x4x100xbf16, #tpu.memory_space<vmem>>, vector<1x1x4x11xbf16>,
    %c0_164 = arith.constant 0 : index
    %c0_165 = arith.constant 0 : index
    %c0_166 = arith.constant 0 : index
    %c11_167 = arith.constant 11 : index
    %118 = vector.load %arg9[%c0_164, %c0_165, %c0_166, %c11_167] : memref<2x2x4x100xbf16, #tpu.memory_space<vmem>>, vector<1x1x4x78xbf16>
    %119 = vector.shape_cast %118 : vector<1x1x4x78xbf16> to vector<4x78xbf16>
    %120 = vector.shape_cast %109 : vector<4x78xbf16> to vector<1x1x4x78xbf16>
    tpu.vector_store %arg9[%c0_164, %c0_165, %c0_166, %c11_167], %120 {strides = array<i32>} : memref<2x2x4x100xbf16, #tpu.memory_space<vmem>>, vector<1x1x4x78xbf16>,
    %c0_168 = arith.constant 0 : index
    %c0_169 = arith.constant 0 : index
    %c1_170 = arith.constant 1 : index
    %c0_171 = arith.constant 0 : index
    %c0_172 = arith.constant 0 : index
    %121 = vector.load %arg1[%c0_168, %c0_169, %c1_170, %c0_171, %c0_172] : memref<1x2x2x4x100xbf16, #tpu.memory_space<vmem>>, vector<1x1x1x4x78xbf16>
    %122 = vector.shape_cast %121 : vector<1x1x1x4x78xbf16> to vector<4x78xbf16>
    %c0_173 = arith.constant 0 : index
    %c0_174 = arith.constant 0 : index
    %123 = vector.load %arg10[%c0_173, %c0_174] : memref<100x78xbf16, #tpu.memory_space<vmem>>, vector<4x78xbf16>
    tpu.vector_store %arg10[%c0_173, %c0_174], %122 {strides = array<i32>} : memref<100x78xbf16, #tpu.memory_space<vmem>>, vector<4x78xbf16>,
    %c0_175 = arith.constant 0 : index
    %c0_176 = arith.constant 0 : index
    %c0_177 = arith.constant 0 : index
    %c0_178 = arith.constant 0 : index
    %c1_179 = arith.constant 1 : index
    %124 = vector.load %arg1[%c0_175, %c0_176, %c0_177, %c0_178, %c1_179] : memref<1x2x2x4x100xbf16, #tpu.memory_space<vmem>>, vector<1x1x1x4x78xbf16>
    %125 = vector.shape_cast %124 : vector<1x1x1x4x78xbf16> to vector<4x78xbf16>
    %c4_180 = arith.constant 4 : index
    %c0_181 = arith.constant 0 : index
    %126 = vector.load %arg10[%c4_180, %c0_181] : memref<100x78xbf16, #tpu.memory_space<vmem>>, vector<4x78xbf16>
    tpu.vector_store %arg10[%c4_180, %c0_181], %125 {strides = array<i32>} : memref<100x78xbf16, #tpu.memory_space<vmem>>, vector<4x78xbf16>,
    %c0_182 = arith.constant 0 : index
    %c0_183 = arith.constant 0 : index
    %c1_184 = arith.constant 1 : index
    %c0_185 = arith.constant 0 : index
    %c1_186 = arith.constant 1 : index
    %127 = vector.load %arg1[%c0_182, %c0_183, %c1_184, %c0_185, %c1_186] : memref<1x2x2x4x100xbf16, #tpu.memory_space<vmem>>, vector<1x1x1x4x78xbf16>
    %128 = vector.shape_cast %127 : vector<1x1x1x4x78xbf16> to vector<4x78xbf16>
    %c8_187 = arith.constant 8 : index
    %c0_188 = arith.constant 0 : index
    %129 = vector.load %arg10[%c8_187, %c0_188] : memref<100x78xbf16, #tpu.memory_space<vmem>>, vector<4x78xbf16>
    tpu.vector_store %arg10[%c8_187, %c0_188], %128 {strides = array<i32>} : memref<100x78xbf16, #tpu.memory_space<vmem>>, vector<4x78xbf16>,
    %c0_189 = arith.constant 0 : index
    %c0_190 = arith.constant 0 : index
    %c0_191 = arith.constant 0 : index
    %c0_192 = arith.constant 0 : index
    %c2_193 = arith.constant 2 : index
    %130 = vector.load %arg1[%c0_189, %c0_190, %c0_191, %c0_192, %c2_193] : memref<1x2x2x4x100xbf16, #tpu.memory_space<vmem>>, vector<1x1x1x4x78xbf16>
    %131 = vector.shape_cast %130 : vector<1x1x1x4x78xbf16> to vector<4x78xbf16>
    %c12_194 = arith.constant 12 : index
    %c0_195 = arith.constant 0 : index
    %132 = vector.load %arg10[%c12_194, %c0_195] : memref<100x78xbf16, #tpu.memory_space<vmem>>, vector<4x78xbf16>
    tpu.vector_store %arg10[%c12_194, %c0_195], %131 {strides = array<i32>} : memref<100x78xbf16, #tpu.memory_space<vmem>>, vector<4x78xbf16>,
    %c0_196 = arith.constant 0 : index
    %c0_197 = arith.constant 0 : index
    %c1_198 = arith.constant 1 : index
    %c0_199 = arith.constant 0 : index
    %c2_200 = arith.constant 2 : index
    %133 = vector.load %arg1[%c0_196, %c0_197, %c1_198, %c0_199, %c2_200] : memref<1x2x2x4x100xbf16, #tpu.memory_space<vmem>>, vector<1x1x1x4x78xbf16>
    %134 = vector.shape_cast %133 : vector<1x1x1x4x78xbf16> to vector<4x78xbf16>
    %c16_201 = arith.constant 16 : index
    %c0_202 = arith.constant 0 : index
    %135 = vector.load %arg10[%c16_201, %c0_202] : memref<100x78xbf16, #tpu.memory_space<vmem>>, vector<4x78xbf16>
    tpu.vector_store %arg10[%c16_201, %c0_202], %134 {strides = array<i32>} : memref<100x78xbf16, #tpu.memory_space<vmem>>, vector<4x78xbf16>,
    %c0_203 = arith.constant 0 : index
    %c1_204 = arith.constant 1 : index
    %c1_205 = arith.constant 1 : index
    %c0_206 = arith.constant 0 : index
    %c0_207 = arith.constant 0 : index
    %136 = vector.load %arg1[%c0_203, %c1_204, %c1_205, %c0_206, %c0_207] : memref<1x2x2x4x100xbf16, #tpu.memory_space<vmem>>, vector<1x1x1x4x78xbf16>
    %137 = vector.shape_cast %136 : vector<1x1x1x4x78xbf16> to vector<4x78xbf16>
    %c20_208 = arith.constant 20 : index
    %c0_209 = arith.constant 0 : index
    %138 = vector.load %arg10[%c20_208, %c0_209] : memref<100x78xbf16, #tpu.memory_space<vmem>>, vector<4x78xbf16>
    tpu.vector_store %arg10[%c20_208, %c0_209], %137 {strides = array<i32>} : memref<100x78xbf16, #tpu.memory_space<vmem>>, vector<4x78xbf16>,
    %c0_210 = arith.constant 0 : index
    %c1_211 = arith.constant 1 : index
    %c0_212 = arith.constant 0 : index
    %c0_213 = arith.constant 0 : index
    %c1_214 = arith.constant 1 : index
    %139 = vector.load %arg1[%c0_210, %c1_211, %c0_212, %c0_213, %c1_214] : memref<1x2x2x4x100xbf16, #tpu.memory_space<vmem>>, vector<1x1x1x4x78xbf16>
    %140 = vector.shape_cast %139 : vector<1x1x1x4x78xbf16> to vector<4x78xbf16>
    %c24_215 = arith.constant 24 : index
    %c0_216 = arith.constant 0 : index
    %141 = vector.load %arg10[%c24_215, %c0_216] : memref<100x78xbf16, #tpu.memory_space<vmem>>, vector<4x78xbf16>
    tpu.vector_store %arg10[%c24_215, %c0_216], %140 {strides = array<i32>} : memref<100x78xbf16, #tpu.memory_space<vmem>>, vector<4x78xbf16>,
    %c0_217 = arith.constant 0 : index
    %c1_218 = arith.constant 1 : index
    %c1_219 = arith.constant 1 : index
    %c0_220 = arith.constant 0 : index
    %c1_221 = arith.constant 1 : index
    %142 = vector.load %arg1[%c0_217, %c1_218, %c1_219, %c0_220, %c1_221] : memref<1x2x2x4x100xbf16, #tpu.memory_space<vmem>>, vector<1x1x1x4x78xbf16>
    %143 = vector.shape_cast %142 : vector<1x1x1x4x78xbf16> to vector<4x78xbf16>
    %c28_222 = arith.constant 28 : index
    %c0_223 = arith.constant 0 : index
    %144 = vector.load %arg10[%c28_222, %c0_223] : memref<100x78xbf16, #tpu.memory_space<vmem>>, vector<4x78xbf16>
    tpu.vector_store %arg10[%c28_222, %c0_223], %143 {strides = array<i32>} : memref<100x78xbf16, #tpu.memory_space<vmem>>, vector<4x78xbf16>,
    %c0_224 = arith.constant 0 : index
    %c1_225 = arith.constant 1 : index
    %c0_226 = arith.constant 0 : index
    %c0_227 = arith.constant 0 : index
    %c2_228 = arith.constant 2 : index
    %145 = vector.load %arg1[%c0_224, %c1_225, %c0_226, %c0_227, %c2_228] : memref<1x2x2x4x100xbf16, #tpu.memory_space<vmem>>, vector<1x1x1x4x78xbf16>
    %146 = vector.shape_cast %145 : vector<1x1x1x4x78xbf16> to vector<4x78xbf16>
    %c32_229 = arith.constant 32 : index
    %c0_230 = arith.constant 0 : index
    %147 = vector.load %arg10[%c32_229, %c0_230] : memref<100x78xbf16, #tpu.memory_space<vmem>>, vector<4x78xbf16>
    tpu.vector_store %arg10[%c32_229, %c0_230], %146 {strides = array<i32>} : memref<100x78xbf16, #tpu.memory_space<vmem>>, vector<4x78xbf16>,
    %c0_231 = arith.constant 0 : index
    %c1_232 = arith.constant 1 : index
    %c1_233 = arith.constant 1 : index
    %c0_234 = arith.constant 0 : index
    %c2_235 = arith.constant 2 : index
    %148 = vector.load %arg1[%c0_231, %c1_232, %c1_233, %c0_234, %c2_235] : memref<1x2x2x4x100xbf16, #tpu.memory_space<vmem>>, vector<1x1x1x4x78xbf16>
    %149 = vector.shape_cast %148 : vector<1x1x1x4x78xbf16> to vector<4x78xbf16>
    %c36_236 = arith.constant 36 : index
    %c0_237 = arith.constant 0 : index
    %150 = vector.load %arg10[%c36_236, %c0_237] : memref<100x78xbf16, #tpu.memory_space<vmem>>, vector<4x78xbf16>
    tpu.vector_store %arg10[%c36_236, %c0_237], %149 {strides = array<i32>} : memref<100x78xbf16, #tpu.memory_space<vmem>>, vector<4x78xbf16>,
    %c0_238 = arith.constant 0 : index
    %c0_239 = arith.constant 0 : index
    %c1_240 = arith.constant 1 : index
    %c0_241 = arith.constant 0 : index
    %c10_242 = arith.constant 10 : index
    %151 = vector.load %arg1[%c0_238, %c0_239, %c1_240, %c0_241, %c10_242] : memref<1x2x2x4x100xbf16, #tpu.memory_space<vmem>>, vector<1x1x1x4x78xbf16>
    %152 = vector.shape_cast %151 : vector<1x1x1x4x78xbf16> to vector<4x78xbf16>
    %c40_243 = arith.constant 40 : index
    %c0_244 = arith.constant 0 : index
    %153 = vector.load %arg10[%c40_243, %c0_244] : memref<100x78xbf16, #tpu.memory_space<vmem>>, vector<4x78xbf16>
    tpu.vector_store %arg10[%c40_243, %c0_244], %152 {strides = array<i32>} : memref<100x78xbf16, #tpu.memory_space<vmem>>, vector<4x78xbf16>,
    %c0_245 = arith.constant 0 : index
    %c0_246 = arith.constant 0 : index
    %c0_247 = arith.constant 0 : index
    %c0_248 = arith.constant 0 : index
    %c11_249 = arith.constant 11 : index
    %154 = vector.load %arg1[%c0_245, %c0_246, %c0_247, %c0_248, %c11_249] : memref<1x2x2x4x100xbf16, #tpu.memory_space<vmem>>, vector<1x1x1x4x78xbf16>
    %155 = vector.shape_cast %154 : vector<1x1x1x4x78xbf16> to vector<4x78xbf16>
    %c44_250 = arith.constant 44 : index
    %c0_251 = arith.constant 0 : index
    %156 = vector.load %arg10[%c44_250, %c0_251] : memref<100x78xbf16, #tpu.memory_space<vmem>>, vector<4x78xbf16>
    tpu.vector_store %arg10[%c44_250, %c0_251], %155 {strides = array<i32>} : memref<100x78xbf16, #tpu.memory_space<vmem>>, vector<4x78xbf16>,
    %c0_252 = arith.constant 0 : index
    %c0_253 = arith.constant 0 : index
    %c1_254 = arith.constant 1 : index
    %c0_255 = arith.constant 0 : index
    %c11_256 = arith.constant 11 : index
    %157 = vector.load %arg1[%c0_252, %c0_253, %c1_254, %c0_255, %c11_256] : memref<1x2x2x4x100xbf16, #tpu.memory_space<vmem>>, vector<1x1x1x4x78xbf16>
    %158 = vector.shape_cast %157 : vector<1x1x1x4x78xbf16> to vector<4x78xbf16>
    %c48_257 = arith.constant 48 : index
    %c0_258 = arith.constant 0 : index
    %159 = vector.load %arg10[%c48_257, %c0_258] : memref<100x78xbf16, #tpu.memory_space<vmem>>, vector<4x78xbf16>
    tpu.vector_store %arg10[%c48_257, %c0_258], %158 {strides = array<i32>} : memref<100x78xbf16, #tpu.memory_space<vmem>>, vector<4x78xbf16>,
    %c0_259 = arith.constant 0 : index
    %c0_260 = arith.constant 0 : index
    %c0_261 = arith.constant 0 : index
    %c0_262 = arith.constant 0 : index
    %c12_263 = arith.constant 12 : index
    %160 = vector.load %arg1[%c0_259, %c0_260, %c0_261, %c0_262, %c12_263] : memref<1x2x2x4x100xbf16, #tpu.memory_space<vmem>>, vector<1x1x1x4x78xbf16>
    %161 = vector.shape_cast %160 : vector<1x1x1x4x78xbf16> to vector<4x78xbf16>
    %c52_264 = arith.constant 52 : index
    %c0_265 = arith.constant 0 : index
    %162 = vector.load %arg10[%c52_264, %c0_265] : memref<100x78xbf16, #tpu.memory_space<vmem>>, vector<4x78xbf16>
    tpu.vector_store %arg10[%c52_264, %c0_265], %161 {strides = array<i32>} : memref<100x78xbf16, #tpu.memory_space<vmem>>, vector<4x78xbf16>,
    %c0_266 = arith.constant 0 : index
    %c0_267 = arith.constant 0 : index
    %c1_268 = arith.constant 1 : index
    %c0_269 = arith.constant 0 : index
    %c12_270 = arith.constant 12 : index
    %163 = vector.load %arg1[%c0_266, %c0_267, %c1_268, %c0_269, %c12_270] : memref<1x2x2x4x100xbf16, #tpu.memory_space<vmem>>, vector<1x1x1x4x78xbf16>
    %164 = vector.shape_cast %163 : vector<1x1x1x4x78xbf16> to vector<4x78xbf16>
    %c56_271 = arith.constant 56 : index
    %c0_272 = arith.constant 0 : index
    %165 = vector.load %arg10[%c56_271, %c0_272] : memref<100x78xbf16, #tpu.memory_space<vmem>>, vector<4x78xbf16>
    tpu.vector_store %arg10[%c56_271, %c0_272], %164 {strides = array<i32>} : memref<100x78xbf16, #tpu.memory_space<vmem>>, vector<4x78xbf16>,
    %c0_273 = arith.constant 0 : index
    %c1_274 = arith.constant 1 : index
    %c1_275 = arith.constant 1 : index
    %c0_276 = arith.constant 0 : index
    %c10_277 = arith.constant 10 : index
    %166 = vector.load %arg1[%c0_273, %c1_274, %c1_275, %c0_276, %c10_277] : memref<1x2x2x4x100xbf16, #tpu.memory_space<vmem>>, vector<1x1x1x4x78xbf16>
    %167 = vector.shape_cast %166 : vector<1x1x1x4x78xbf16> to vector<4x78xbf16>
    %c60_278 = arith.constant 60 : index
    %c0_279 = arith.constant 0 : index
    %168 = vector.load %arg10[%c60_278, %c0_279] : memref<100x78xbf16, #tpu.memory_space<vmem>>, vector<4x78xbf16>
    tpu.vector_store %arg10[%c60_278, %c0_279], %167 {strides = array<i32>} : memref<100x78xbf16, #tpu.memory_space<vmem>>, vector<4x78xbf16>,
    %c0_280 = arith.constant 0 : index
    %c1_281 = arith.constant 1 : index
    %c0_282 = arith.constant 0 : index
    %c0_283 = arith.constant 0 : index
    %c11_284 = arith.constant 11 : index
    %169 = vector.load %arg1[%c0_280, %c1_281, %c0_282, %c0_283, %c11_284] : memref<1x2x2x4x100xbf16, #tpu.memory_space<vmem>>, vector<1x1x1x4x78xbf16>
    %170 = vector.shape_cast %169 : vector<1x1x1x4x78xbf16> to vector<4x78xbf16>
    %c64_285 = arith.constant 64 : index
    %c0_286 = arith.constant 0 : index
    %171 = vector.load %arg10[%c64_285, %c0_286] : memref<100x78xbf16, #tpu.memory_space<vmem>>, vector<4x78xbf16>
    tpu.vector_store %arg10[%c64_285, %c0_286], %170 {strides = array<i32>} : memref<100x78xbf16, #tpu.memory_space<vmem>>, vector<4x78xbf16>,
    %c0_287 = arith.constant 0 : index
    %c1_288 = arith.constant 1 : index
    %c1_289 = arith.constant 1 : index
    %c0_290 = arith.constant 0 : index
    %c11_291 = arith.constant 11 : index
    %172 = vector.load %arg1[%c0_287, %c1_288, %c1_289, %c0_290, %c11_291] : memref<1x2x2x4x100xbf16, #tpu.memory_space<vmem>>, vector<1x1x1x4x78xbf16>
    %173 = vector.shape_cast %172 : vector<1x1x1x4x78xbf16> to vector<4x78xbf16>
    %c68_292 = arith.constant 68 : index
    %c0_293 = arith.constant 0 : index
    %174 = vector.load %arg10[%c68_292, %c0_293] : memref<100x78xbf16, #tpu.memory_space<vmem>>, vector<4x78xbf16>
    tpu.vector_store %arg10[%c68_292, %c0_293], %173 {strides = array<i32>} : memref<100x78xbf16, #tpu.memory_space<vmem>>, vector<4x78xbf16>,
    %c0_294 = arith.constant 0 : index
    %c1_295 = arith.constant 1 : index
    %c0_296 = arith.constant 0 : index
    %c0_297 = arith.constant 0 : index
    %c12_298 = arith.constant 12 : index
    %175 = vector.load %arg1[%c0_294, %c1_295, %c0_296, %c0_297, %c12_298] : memref<1x2x2x4x100xbf16, #tpu.memory_space<vmem>>, vector<1x1x1x4x78xbf16>
    %176 = vector.shape_cast %175 : vector<1x1x1x4x78xbf16> to vector<4x78xbf16>
    %c72_299 = arith.constant 72 : index
    %c0_300 = arith.constant 0 : index
    %177 = vector.load %arg10[%c72_299, %c0_300] : memref<100x78xbf16, #tpu.memory_space<vmem>>, vector<4x78xbf16>
    tpu.vector_store %arg10[%c72_299, %c0_300], %176 {strides = array<i32>} : memref<100x78xbf16, #tpu.memory_space<vmem>>, vector<4x78xbf16>,
    %c0_301 = arith.constant 0 : index
    %c1_302 = arith.constant 1 : index
    %c1_303 = arith.constant 1 : index
    %c0_304 = arith.constant 0 : index
    %c12_305 = arith.constant 12 : index
    %178 = vector.load %arg1[%c0_301, %c1_302, %c1_303, %c0_304, %c12_305] : memref<1x2x2x4x100xbf16, #tpu.memory_space<vmem>>, vector<1x1x1x4x78xbf16>
    %179 = vector.shape_cast %178 : vector<1x1x1x4x78xbf16> to vector<4x78xbf16>
    %c76_306 = arith.constant 76 : index
    %c0_307 = arith.constant 0 : index
    %180 = vector.load %arg10[%c76_306, %c0_307] : memref<100x78xbf16, #tpu.memory_space<vmem>>, vector<4x78xbf16>
    tpu.vector_store %arg10[%c76_306, %c0_307], %179 {strides = array<i32>} : memref<100x78xbf16, #tpu.memory_space<vmem>>, vector<4x78xbf16>,
    %c0_308 = arith.constant 0 : index
    %c0_309 = arith.constant 0 : index
    %c1_310 = arith.constant 1 : index
    %c0_311 = arith.constant 0 : index
    %c20_312 = arith.constant 20 : index
    %181 = vector.load %arg1[%c0_308, %c0_309, %c1_310, %c0_311, %c20_312] : memref<1x2x2x4x100xbf16, #tpu.memory_space<vmem>>, vector<1x1x1x4x78xbf16>
    %182 = vector.shape_cast %181 : vector<1x1x1x4x78xbf16> to vector<4x78xbf16>
    %c80_313 = arith.constant 80 : index
    %c0_314 = arith.constant 0 : index
    %183 = vector.load %arg10[%c80_313, %c0_314] : memref<100x78xbf16, #tpu.memory_space<vmem>>, vector<4x78xbf16>
    tpu.vector_store %arg10[%c80_313, %c0_314], %182 {strides = array<i32>} : memref<100x78xbf16, #tpu.memory_space<vmem>>, vector<4x78xbf16>,
    %c0_315 = arith.constant 0 : index
    %c0_316 = arith.constant 0 : index
    %c0_317 = arith.constant 0 : index
    %c0_318 = arith.constant 0 : index
    %c21_319 = arith.constant 21 : index
    %184 = vector.load %arg1[%c0_315, %c0_316, %c0_317, %c0_318, %c21_319] : memref<1x2x2x4x100xbf16, #tpu.memory_space<vmem>>, vector<1x1x1x4x78xbf16>
    %185 = vector.shape_cast %184 : vector<1x1x1x4x78xbf16> to vector<4x78xbf16>
    %c84_320 = arith.constant 84 : index
    %c0_321 = arith.constant 0 : index
    %186 = vector.load %arg10[%c84_320, %c0_321] : memref<100x78xbf16, #tpu.memory_space<vmem>>, vector<4x78xbf16>
    tpu.vector_store %arg10[%c84_320, %c0_321], %185 {strides = array<i32>} : memref<100x78xbf16, #tpu.memory_space<vmem>>, vector<4x78xbf16>,
    %c0_322 = arith.constant 0 : index
    %c0_323 = arith.constant 0 : index
    %c1_324 = arith.constant 1 : index
    %c0_325 = arith.constant 0 : index
    %c21_326 = arith.constant 21 : index
    %187 = vector.load %arg1[%c0_322, %c0_323, %c1_324, %c0_325, %c21_326] : memref<1x2x2x4x100xbf16, #tpu.memory_space<vmem>>, vector<1x1x1x4x78xbf16>
    %188 = vector.shape_cast %187 : vector<1x1x1x4x78xbf16> to vector<4x78xbf16>
    %c88_327 = arith.constant 88 : index
    %c0_328 = arith.constant 0 : index
    %189 = vector.load %arg10[%c88_327, %c0_328] : memref<100x78xbf16, #tpu.memory_space<vmem>>, vector<4x78xbf16>
    tpu.vector_store %arg10[%c88_327, %c0_328], %188 {strides = array<i32>} : memref<100x78xbf16, #tpu.memory_space<vmem>>, vector<4x78xbf16>,
    %c0_329 = arith.constant 0 : index
    %c0_330 = arith.constant 0 : index
    %c0_331 = arith.constant 0 : index
    %c0_332 = arith.constant 0 : index
    %c22_333 = arith.constant 22 : index
    %190 = vector.load %arg1[%c0_329, %c0_330, %c0_331, %c0_332, %c22_333] : memref<1x2x2x4x100xbf16, #tpu.memory_space<vmem>>, vector<1x1x1x4x78xbf16>
    %191 = vector.shape_cast %190 : vector<1x1x1x4x78xbf16> to vector<4x78xbf16>
    %c92_334 = arith.constant 92 : index
    %c0_335 = arith.constant 0 : index
    %192 = vector.load %arg10[%c92_334, %c0_335] : memref<100x78xbf16, #tpu.memory_space<vmem>>, vector<4x78xbf16>
    tpu.vector_store %arg10[%c92_334, %c0_335], %191 {strides = array<i32>} : memref<100x78xbf16, #tpu.memory_space<vmem>>, vector<4x78xbf16>,
    %c0_336 = arith.constant 0 : index
    %c0_337 = arith.constant 0 : index
    %c1_338 = arith.constant 1 : index
    %c0_339 = arith.constant 0 : index
    %c22_340 = arith.constant 22 : index
    %193 = vector.load %arg1[%c0_336, %c0_337, %c1_338, %c0_339, %c22_340] : memref<1x2x2x4x100xbf16, #tpu.memory_space<vmem>>, vector<1x1x1x4x78xbf16>
    %194 = vector.shape_cast %193 : vector<1x1x1x4x78xbf16> to vector<4x78xbf16>
    %c96_341 = arith.constant 96 : index
    %c0_342 = arith.constant 0 : index
    %195 = vector.load %arg10[%c96_341, %c0_342] : memref<100x78xbf16, #tpu.memory_space<vmem>>, vector<4x78xbf16>
    tpu.vector_store %arg10[%c96_341, %c0_342], %194 {strides = array<i32>} : memref<100x78xbf16, #tpu.memory_space<vmem>>, vector<4x78xbf16>,
    %c0_343 = arith.constant 0 : index
    %c0_344 = arith.constant 0 : index
    %196 = vector.load %arg10[%c0_343, %c0_344] : memref<100x78xbf16, #tpu.memory_space<vmem>>, vector<100x78xbf16>
    %cst_345 = arith.constant dense<0.000000e+00> : vector<4x78xf32>
    %197 = tpu.matmul %21, %196, %cst_345 {dimension_numbers = #tpu.dot_dimension_numbers<[1], [0], [0], [1], [0, 0, 1, 1], [], []>} : vector<4x100xbf16>, vector<100x78xbf16>, vector<4x78xf32> -> vector<4x78xf32>
    %198 = vector.broadcast %22 : vector<4x1xf32> to vector<4x78xf32>
    %199 = arith.addf %197, %198 : vector<4x78xf32>
    %cst_346 = arith.constant 0.000000e+00 : f32
    %200 = vector.broadcast %cst_346 : f32 to vector<4x78xf32>
    %201 = arith.cmpf oge, %199, %200 : vector<4x78xf32>
    %cst_347 = arith.constant 1.000000e-01 : f32
    %202 = vector.broadcast %cst_347 : f32 to vector<4x78xf32>
    %203 = arith.mulf %202, %199 : vector<4x78xf32>
    %204 = arith.select %201, %199, %203 : vector<4x78xi1>, vector<4x78xf32>
    %205 = vector.broadcast %20 : vector<1x78xf32> to vector<4x78xf32>
    %206 = arith.mulf %204, %205 : vector<4x78xf32>
    %207 = arith.truncf %206 : vector<4x78xf32> to vector<4x78xbf16>
    %cst_348 = arith.constant 0.000000e+00 : bf16
    %208 = vector.broadcast %cst_348 : bf16 to vector<4x11xbf16>
    %c0_349 = arith.constant 0 : index
    %c1_350 = arith.constant 1 : index
    %c0_351 = arith.constant 0 : index
    %c0_352 = arith.constant 0 : index
    %209 = vector.load %arg9[%c0_349, %c1_350, %c0_351, %c0_352] : memref<2x2x4x100xbf16, #tpu.memory_space<vmem>>, vector<1x1x4x11xbf16>
    %210 = vector.shape_cast %209 : vector<1x1x4x11xbf16> to vector<4x11xbf16>
    %211 = vector.shape_cast %208 : vector<4x11xbf16> to vector<1x1x4x11xbf16>
    tpu.vector_store %arg9[%c0_349, %c1_350, %c0_351, %c0_352], %211 {strides = array<i32>} : memref<2x2x4x100xbf16, #tpu.memory_space<vmem>>, vector<1x1x4x11xbf16>,
    %cst_353 = arith.constant 0.000000e+00 : bf16
    %212 = vector.broadcast %cst_353 : bf16 to vector<4x11xbf16>
    %c0_354 = arith.constant 0 : index
    %c1_355 = arith.constant 1 : index
    %c0_356 = arith.constant 0 : index
    %c89_357 = arith.constant 89 : index
    %213 = vector.load %arg9[%c0_354, %c1_355, %c0_356, %c89_357] : memref<2x2x4x100xbf16, #tpu.memory_space<vmem>>, vector<1x1x4x11xbf16>
    %214 = vector.shape_cast %213 : vector<1x1x4x11xbf16> to vector<4x11xbf16>
    %215 = vector.shape_cast %212 : vector<4x11xbf16> to vector<1x1x4x11xbf16>
    tpu.vector_store %arg9[%c0_354, %c1_355, %c0_356, %c89_357], %215 {strides = array<i32>} : memref<2x2x4x100xbf16, #tpu.memory_space<vmem>>, vector<1x1x4x11xbf16>,
    %c0_358 = arith.constant 0 : index
    %c1_359 = arith.constant 1 : index
    %c0_360 = arith.constant 0 : index
    %c11_361 = arith.constant 11 : index
    %216 = vector.load %arg9[%c0_358, %c1_359, %c0_360, %c11_361] : memref<2x2x4x100xbf16, #tpu.memory_space<vmem>>, vector<1x1x4x78xbf16>
    %217 = vector.shape_cast %216 : vector<1x1x4x78xbf16> to vector<4x78xbf16>
    %218 = vector.shape_cast %207 : vector<4x78xbf16> to vector<1x1x4x78xbf16>
    tpu.vector_store %arg9[%c0_358, %c1_359, %c0_360, %c11_361], %218 {strides = array<i32>} : memref<2x2x4x100xbf16, #tpu.memory_space<vmem>>, vector<1x1x4x78xbf16>,
    %c0_362 = arith.constant 0 : index
    %c1_363 = arith.constant 1 : index
    %c0_364 = arith.constant 0 : index
    %c0_365 = arith.constant 0 : index
    %c0_366 = arith.constant 0 : index
    %219 = vector.load %arg1[%c0_362, %c1_363, %c0_364, %c0_365, %c0_366] : memref<1x2x2x4x100xbf16, #tpu.memory_space<vmem>>, vector<1x1x1x4x78xbf16>
    %220 = vector.shape_cast %219 : vector<1x1x1x4x78xbf16> to vector<4x78xbf16>
    %c0_367 = arith.constant 0 : index
    %c0_368 = arith.constant 0 : index
    %221 = vector.load %arg10[%c0_367, %c0_368] : memref<100x78xbf16, #tpu.memory_space<vmem>>, vector<4x78xbf16>
    tpu.vector_store %arg10[%c0_367, %c0_368], %220 {strides = array<i32>} : memref<100x78xbf16, #tpu.memory_space<vmem>>, vector<4x78xbf16>,
    %c0_369 = arith.constant 0 : index
    %c1_370 = arith.constant 1 : index
    %c1_371 = arith.constant 1 : index
    %c0_372 = arith.constant 0 : index
    %c0_373 = arith.constant 0 : index
    %222 = vector.load %arg1[%c0_369, %c1_370, %c1_371, %c0_372, %c0_373] : memref<1x2x2x4x100xbf16, #tpu.memory_space<vmem>>, vector<1x1x1x4x78xbf16>
    %223 = vector.shape_cast %222 : vector<1x1x1x4x78xbf16> to vector<4x78xbf16>
    %c4_374 = arith.constant 4 : index
    %c0_375 = arith.constant 0 : index
    %224 = vector.load %arg10[%c4_374, %c0_375] : memref<100x78xbf16, #tpu.memory_space<vmem>>, vector<4x78xbf16>
    tpu.vector_store %arg10[%c4_374, %c0_375], %223 {strides = array<i32>} : memref<100x78xbf16, #tpu.memory_space<vmem>>, vector<4x78xbf16>,
    %c0_376 = arith.constant 0 : index
    %c1_377 = arith.constant 1 : index
    %c0_378 = arith.constant 0 : index
    %c0_379 = arith.constant 0 : index
    %c1_380 = arith.constant 1 : index
    %225 = vector.load %arg1[%c0_376, %c1_377, %c0_378, %c0_379, %c1_380] : memref<1x2x2x4x100xbf16, #tpu.memory_space<vmem>>, vector<1x1x1x4x78xbf16>
    %226 = vector.shape_cast %225 : vector<1x1x1x4x78xbf16> to vector<4x78xbf16>
    %c8_381 = arith.constant 8 : index
    %c0_382 = arith.constant 0 : index
    %227 = vector.load %arg10[%c8_381, %c0_382] : memref<100x78xbf16, #tpu.memory_space<vmem>>, vector<4x78xbf16>
    tpu.vector_store %arg10[%c8_381, %c0_382], %226 {strides = array<i32>} : memref<100x78xbf16, #tpu.memory_space<vmem>>, vector<4x78xbf16>,
    %c0_383 = arith.constant 0 : index
    %c1_384 = arith.constant 1 : index
    %c1_385 = arith.constant 1 : index
    %c0_386 = arith.constant 0 : index
    %c1_387 = arith.constant 1 : index
    %228 = vector.load %arg1[%c0_383, %c1_384, %c1_385, %c0_386, %c1_387] : memref<1x2x2x4x100xbf16, #tpu.memory_space<vmem>>, vector<1x1x1x4x78xbf16>
    %229 = vector.shape_cast %228 : vector<1x1x1x4x78xbf16> to vector<4x78xbf16>
    %c12_388 = arith.constant 12 : index
    %c0_389 = arith.constant 0 : index
    %230 = vector.load %arg10[%c12_388, %c0_389] : memref<100x78xbf16, #tpu.memory_space<vmem>>, vector<4x78xbf16>
    tpu.vector_store %arg10[%c12_388, %c0_389], %229 {strides = array<i32>} : memref<100x78xbf16, #tpu.memory_space<vmem>>, vector<4x78xbf16>,
    %c0_390 = arith.constant 0 : index
    %c1_391 = arith.constant 1 : index
    %c0_392 = arith.constant 0 : index
    %c0_393 = arith.constant 0 : index
    %c2_394 = arith.constant 2 : index
    %231 = vector.load %arg1[%c0_390, %c1_391, %c0_392, %c0_393, %c2_394] : memref<1x2x2x4x100xbf16, #tpu.memory_space<vmem>>, vector<1x1x1x4x78xbf16>
    %232 = vector.shape_cast %231 : vector<1x1x1x4x78xbf16> to vector<4x78xbf16>
    %c16_395 = arith.constant 16 : index
    %c0_396 = arith.constant 0 : index
    %233 = vector.load %arg10[%c16_395, %c0_396] : memref<100x78xbf16, #tpu.memory_space<vmem>>, vector<4x78xbf16>
    tpu.vector_store %arg10[%c16_395, %c0_396], %232 {strides = array<i32>} : memref<100x78xbf16, #tpu.memory_space<vmem>>, vector<4x78xbf16>,
    %c0_397 = arith.constant 0 : index
    %c0_398 = arith.constant 0 : index
    %c0_399 = arith.constant 0 : index
    %c0_400 = arith.constant 0 : index
    %c10_401 = arith.constant 10 : index
    %234 = vector.load %arg1[%c0_397, %c0_398, %c0_399, %c0_400, %c10_401] : memref<1x2x2x4x100xbf16, #tpu.memory_space<vmem>>, vector<1x1x1x4x78xbf16>
    %235 = vector.shape_cast %234 : vector<1x1x1x4x78xbf16> to vector<4x78xbf16>
    %c20_402 = arith.constant 20 : index
    %c0_403 = arith.constant 0 : index
    %236 = vector.load %arg10[%c20_402, %c0_403] : memref<100x78xbf16, #tpu.memory_space<vmem>>, vector<4x78xbf16>
    tpu.vector_store %arg10[%c20_402, %c0_403], %235 {strides = array<i32>} : memref<100x78xbf16, #tpu.memory_space<vmem>>, vector<4x78xbf16>,
    %c0_404 = arith.constant 0 : index
    %c0_405 = arith.constant 0 : index
    %c1_406 = arith.constant 1 : index
    %c0_407 = arith.constant 0 : index
    %c10_408 = arith.constant 10 : index
    %237 = vector.load %arg1[%c0_404, %c0_405, %c1_406, %c0_407, %c10_408] : memref<1x2x2x4x100xbf16, #tpu.memory_space<vmem>>, vector<1x1x1x4x78xbf16>
    %238 = vector.shape_cast %237 : vector<1x1x1x4x78xbf16> to vector<4x78xbf16>
    %c24_409 = arith.constant 24 : index
    %c0_410 = arith.constant 0 : index
    %239 = vector.load %arg10[%c24_409, %c0_410] : memref<100x78xbf16, #tpu.memory_space<vmem>>, vector<4x78xbf16>
    tpu.vector_store %arg10[%c24_409, %c0_410], %238 {strides = array<i32>} : memref<100x78xbf16, #tpu.memory_space<vmem>>, vector<4x78xbf16>,
    %c0_411 = arith.constant 0 : index
    %c0_412 = arith.constant 0 : index
    %c0_413 = arith.constant 0 : index
    %c0_414 = arith.constant 0 : index
    %c11_415 = arith.constant 11 : index
    %240 = vector.load %arg1[%c0_411, %c0_412, %c0_413, %c0_414, %c11_415] : memref<1x2x2x4x100xbf16, #tpu.memory_space<vmem>>, vector<1x1x1x4x78xbf16>
    %241 = vector.shape_cast %240 : vector<1x1x1x4x78xbf16> to vector<4x78xbf16>
    %c28_416 = arith.constant 28 : index
    %c0_417 = arith.constant 0 : index
    %242 = vector.load %arg10[%c28_416, %c0_417] : memref<100x78xbf16, #tpu.memory_space<vmem>>, vector<4x78xbf16>
    tpu.vector_store %arg10[%c28_416, %c0_417], %241 {strides = array<i32>} : memref<100x78xbf16, #tpu.memory_space<vmem>>, vector<4x78xbf16>,
    %c0_418 = arith.constant 0 : index
    %c0_419 = arith.constant 0 : index
    %c1_420 = arith.constant 1 : index
    %c0_421 = arith.constant 0 : index
    %c11_422 = arith.constant 11 : index
    %243 = vector.load %arg1[%c0_418, %c0_419, %c1_420, %c0_421, %c11_422] : memref<1x2x2x4x100xbf16, #tpu.memory_space<vmem>>, vector<1x1x1x4x78xbf16>
    %244 = vector.shape_cast %243 : vector<1x1x1x4x78xbf16> to vector<4x78xbf16>
    %c32_423 = arith.constant 32 : index
    %c0_424 = arith.constant 0 : index
    %245 = vector.load %arg10[%c32_423, %c0_424] : memref<100x78xbf16, #tpu.memory_space<vmem>>, vector<4x78xbf16>
    tpu.vector_store %arg10[%c32_423, %c0_424], %244 {strides = array<i32>} : memref<100x78xbf16, #tpu.memory_space<vmem>>, vector<4x78xbf16>,
    %c0_425 = arith.constant 0 : index
    %c0_426 = arith.constant 0 : index
    %c0_427 = arith.constant 0 : index
    %c0_428 = arith.constant 0 : index
    %c12_429 = arith.constant 12 : index
    %246 = vector.load %arg1[%c0_425, %c0_426, %c0_427, %c0_428, %c12_429] : memref<1x2x2x4x100xbf16, #tpu.memory_space<vmem>>, vector<1x1x1x4x78xbf16>
    %247 = vector.shape_cast %246 : vector<1x1x1x4x78xbf16> to vector<4x78xbf16>
    %c36_430 = arith.constant 36 : index
    %c0_431 = arith.constant 0 : index
    %248 = vector.load %arg10[%c36_430, %c0_431] : memref<100x78xbf16, #tpu.memory_space<vmem>>, vector<4x78xbf16>
    tpu.vector_store %arg10[%c36_430, %c0_431], %247 {strides = array<i32>} : memref<100x78xbf16, #tpu.memory_space<vmem>>, vector<4x78xbf16>,
    %c0_432 = arith.constant 0 : index
    %c1_433 = arith.constant 1 : index
    %c0_434 = arith.constant 0 : index
    %c0_435 = arith.constant 0 : index
    %c10_436 = arith.constant 10 : index
    %249 = vector.load %arg1[%c0_432, %c1_433, %c0_434, %c0_435, %c10_436] : memref<1x2x2x4x100xbf16, #tpu.memory_space<vmem>>, vector<1x1x1x4x78xbf16>
    %250 = vector.shape_cast %249 : vector<1x1x1x4x78xbf16> to vector<4x78xbf16>
    %c40_437 = arith.constant 40 : index
    %c0_438 = arith.constant 0 : index
    %251 = vector.load %arg10[%c40_437, %c0_438] : memref<100x78xbf16, #tpu.memory_space<vmem>>, vector<4x78xbf16>
    tpu.vector_store %arg10[%c40_437, %c0_438], %250 {strides = array<i32>} : memref<100x78xbf16, #tpu.memory_space<vmem>>, vector<4x78xbf16>,
    %c0_439 = arith.constant 0 : index
    %c1_440 = arith.constant 1 : index
    %c1_441 = arith.constant 1 : index
    %c0_442 = arith.constant 0 : index
    %c10_443 = arith.constant 10 : index
    %252 = vector.load %arg1[%c0_439, %c1_440, %c1_441, %c0_442, %c10_443] : memref<1x2x2x4x100xbf16, #tpu.memory_space<vmem>>, vector<1x1x1x4x78xbf16>
    %253 = vector.shape_cast %252 : vector<1x1x1x4x78xbf16> to vector<4x78xbf16>
    %c44_444 = arith.constant 44 : index
    %c0_445 = arith.constant 0 : index
    %254 = vector.load %arg10[%c44_444, %c0_445] : memref<100x78xbf16, #tpu.memory_space<vmem>>, vector<4x78xbf16>
    tpu.vector_store %arg10[%c44_444, %c0_445], %253 {strides = array<i32>} : memref<100x78xbf16, #tpu.memory_space<vmem>>, vector<4x78xbf16>,
    %c0_446 = arith.constant 0 : index
    %c1_447 = arith.constant 1 : index
    %c0_448 = arith.constant 0 : index
    %c0_449 = arith.constant 0 : index
    %c11_450 = arith.constant 11 : index
    %255 = vector.load %arg1[%c0_446, %c1_447, %c0_448, %c0_449, %c11_450] : memref<1x2x2x4x100xbf16, #tpu.memory_space<vmem>>, vector<1x1x1x4x78xbf16>
    %256 = vector.shape_cast %255 : vector<1x1x1x4x78xbf16> to vector<4x78xbf16>
    %c48_451 = arith.constant 48 : index
    %c0_452 = arith.constant 0 : index
    %257 = vector.load %arg10[%c48_451, %c0_452] : memref<100x78xbf16, #tpu.memory_space<vmem>>, vector<4x78xbf16>
    tpu.vector_store %arg10[%c48_451, %c0_452], %256 {strides = array<i32>} : memref<100x78xbf16, #tpu.memory_space<vmem>>, vector<4x78xbf16>,
    %c0_453 = arith.constant 0 : index
    %c1_454 = arith.constant 1 : index
    %c1_455 = arith.constant 1 : index
    %c0_456 = arith.constant 0 : index
    %c11_457 = arith.constant 11 : index
    %258 = vector.load %arg1[%c0_453, %c1_454, %c1_455, %c0_456, %c11_457] : memref<1x2x2x4x100xbf16, #tpu.memory_space<vmem>>, vector<1x1x1x4x78xbf16>
    %259 = vector.shape_cast %258 : vector<1x1x1x4x78xbf16> to vector<4x78xbf16>
    %c52_458 = arith.constant 52 : index
    %c0_459 = arith.constant 0 : index
    %260 = vector.load %arg10[%c52_458, %c0_459] : memref<100x78xbf16, #tpu.memory_space<vmem>>, vector<4x78xbf16>
    tpu.vector_store %arg10[%c52_458, %c0_459], %259 {strides = array<i32>} : memref<100x78xbf16, #tpu.memory_space<vmem>>, vector<4x78xbf16>,
    %c0_460 = arith.constant 0 : index
    %c1_461 = arith.constant 1 : index
    %c0_462 = arith.constant 0 : index
    %c0_463 = arith.constant 0 : index
    %c12_464 = arith.constant 12 : index
    %261 = vector.load %arg1[%c0_460, %c1_461, %c0_462, %c0_463, %c12_464] : memref<1x2x2x4x100xbf16, #tpu.memory_space<vmem>>, vector<1x1x1x4x78xbf16>
    %262 = vector.shape_cast %261 : vector<1x1x1x4x78xbf16> to vector<4x78xbf16>
    %c56_465 = arith.constant 56 : index
    %c0_466 = arith.constant 0 : index
    %263 = vector.load %arg10[%c56_465, %c0_466] : memref<100x78xbf16, #tpu.memory_space<vmem>>, vector<4x78xbf16>
    tpu.vector_store %arg10[%c56_465, %c0_466], %262 {strides = array<i32>} : memref<100x78xbf16, #tpu.memory_space<vmem>>, vector<4x78xbf16>,
    %c0_467 = arith.constant 0 : index
    %c0_468 = arith.constant 0 : index
    %c0_469 = arith.constant 0 : index
    %c0_470 = arith.constant 0 : index
    %c20_471 = arith.constant 20 : index
    %264 = vector.load %arg1[%c0_467, %c0_468, %c0_469, %c0_470, %c20_471] : memref<1x2x2x4x100xbf16, #tpu.memory_space<vmem>>, vector<1x1x1x4x78xbf16>
    %265 = vector.shape_cast %264 : vector<1x1x1x4x78xbf16> to vector<4x78xbf16>
    %c60_472 = arith.constant 60 : index
    %c0_473 = arith.constant 0 : index
    %266 = vector.load %arg10[%c60_472, %c0_473] : memref<100x78xbf16, #tpu.memory_space<vmem>>, vector<4x78xbf16>
    tpu.vector_store %arg10[%c60_472, %c0_473], %265 {strides = array<i32>} : memref<100x78xbf16, #tpu.memory_space<vmem>>, vector<4x78xbf16>,
    %c0_474 = arith.constant 0 : index
    %c0_475 = arith.constant 0 : index
    %c1_476 = arith.constant 1 : index
    %c0_477 = arith.constant 0 : index
    %c20_478 = arith.constant 20 : index
    %267 = vector.load %arg1[%c0_474, %c0_475, %c1_476, %c0_477, %c20_478] : memref<1x2x2x4x100xbf16, #tpu.memory_space<vmem>>, vector<1x1x1x4x78xbf16>
    %268 = vector.shape_cast %267 : vector<1x1x1x4x78xbf16> to vector<4x78xbf16>
    %c64_479 = arith.constant 64 : index
    %c0_480 = arith.constant 0 : index
    %269 = vector.load %arg10[%c64_479, %c0_480] : memref<100x78xbf16, #tpu.memory_space<vmem>>, vector<4x78xbf16>
    tpu.vector_store %arg10[%c64_479, %c0_480], %268 {strides = array<i32>} : memref<100x78xbf16, #tpu.memory_space<vmem>>, vector<4x78xbf16>,
    %c0_481 = arith.constant 0 : index
    %c0_482 = arith.constant 0 : index
    %c0_483 = arith.constant 0 : index
    %c0_484 = arith.constant 0 : index
    %c21_485 = arith.constant 21 : index
    %270 = vector.load %arg1[%c0_481, %c0_482, %c0_483, %c0_484, %c21_485] : memref<1x2x2x4x100xbf16, #tpu.memory_space<vmem>>, vector<1x1x1x4x78xbf16>
    %271 = vector.shape_cast %270 : vector<1x1x1x4x78xbf16> to vector<4x78xbf16>
    %c68_486 = arith.constant 68 : index
    %c0_487 = arith.constant 0 : index
    %272 = vector.load %arg10[%c68_486, %c0_487] : memref<100x78xbf16, #tpu.memory_space<vmem>>, vector<4x78xbf16>
    tpu.vector_store %arg10[%c68_486, %c0_487], %271 {strides = array<i32>} : memref<100x78xbf16, #tpu.memory_space<vmem>>, vector<4x78xbf16>,
    %c0_488 = arith.constant 0 : index
    %c0_489 = arith.constant 0 : index
    %c1_490 = arith.constant 1 : index
    %c0_491 = arith.constant 0 : index
    %c21_492 = arith.constant 21 : index
    %273 = vector.load %arg1[%c0_488, %c0_489, %c1_490, %c0_491, %c21_492] : memref<1x2x2x4x100xbf16, #tpu.memory_space<vmem>>, vector<1x1x1x4x78xbf16>
    %274 = vector.shape_cast %273 : vector<1x1x1x4x78xbf16> to vector<4x78xbf16>
    %c72_493 = arith.constant 72 : index
    %c0_494 = arith.constant 0 : index
    %275 = vector.load %arg10[%c72_493, %c0_494] : memref<100x78xbf16, #tpu.memory_space<vmem>>, vector<4x78xbf16>
    tpu.vector_store %arg10[%c72_493, %c0_494], %274 {strides = array<i32>} : memref<100x78xbf16, #tpu.memory_space<vmem>>, vector<4x78xbf16>,
    %c0_495 = arith.constant 0 : index
    %c0_496 = arith.constant 0 : index
    %c0_497 = arith.constant 0 : index
    %c0_498 = arith.constant 0 : index
    %c22_499 = arith.constant 22 : index
    %276 = vector.load %arg1[%c0_495, %c0_496, %c0_497, %c0_498, %c22_499] : memref<1x2x2x4x100xbf16, #tpu.memory_space<vmem>>, vector<1x1x1x4x78xbf16>
    %277 = vector.shape_cast %276 : vector<1x1x1x4x78xbf16> to vector<4x78xbf16>
    %c76_500 = arith.constant 76 : index
    %c0_501 = arith.constant 0 : index
    %278 = vector.load %arg10[%c76_500, %c0_501] : memref<100x78xbf16, #tpu.memory_space<vmem>>, vector<4x78xbf16>
    tpu.vector_store %arg10[%c76_500, %c0_501], %277 {strides = array<i32>} : memref<100x78xbf16, #tpu.memory_space<vmem>>, vector<4x78xbf16>,
    %c0_502 = arith.constant 0 : index
    %c1_503 = arith.constant 1 : index
    %c0_504 = arith.constant 0 : index
    %c0_505 = arith.constant 0 : index
    %c20_506 = arith.constant 20 : index
    %279 = vector.load %arg1[%c0_502, %c1_503, %c0_504, %c0_505, %c20_506] : memref<1x2x2x4x100xbf16, #tpu.memory_space<vmem>>, vector<1x1x1x4x78xbf16>
    %280 = vector.shape_cast %279 : vector<1x1x1x4x78xbf16> to vector<4x78xbf16>
    %c80_507 = arith.constant 80 : index
    %c0_508 = arith.constant 0 : index
    %281 = vector.load %arg10[%c80_507, %c0_508] : memref<100x78xbf16, #tpu.memory_space<vmem>>, vector<4x78xbf16>
    tpu.vector_store %arg10[%c80_507, %c0_508], %280 {strides = array<i32>} : memref<100x78xbf16, #tpu.memory_space<vmem>>, vector<4x78xbf16>,
    %c0_509 = arith.constant 0 : index
    %c1_510 = arith.constant 1 : index
    %c1_511 = arith.constant 1 : index
    %c0_512 = arith.constant 0 : index
    %c20_513 = arith.constant 20 : index
    %282 = vector.load %arg1[%c0_509, %c1_510, %c1_511, %c0_512, %c20_513] : memref<1x2x2x4x100xbf16, #tpu.memory_space<vmem>>, vector<1x1x1x4x78xbf16>
    %283 = vector.shape_cast %282 : vector<1x1x1x4x78xbf16> to vector<4x78xbf16>
    %c84_514 = arith.constant 84 : index
    %c0_515 = arith.constant 0 : index
    %284 = vector.load %arg10[%c84_514, %c0_515] : memref<100x78xbf16, #tpu.memory_space<vmem>>, vector<4x78xbf16>
    tpu.vector_store %arg10[%c84_514, %c0_515], %283 {strides = array<i32>} : memref<100x78xbf16, #tpu.memory_space<vmem>>, vector<4x78xbf16>,
    %c0_516 = arith.constant 0 : index
    %c1_517 = arith.constant 1 : index
    %c0_518 = arith.constant 0 : index
    %c0_519 = arith.constant 0 : index
    %c21_520 = arith.constant 21 : index
    %285 = vector.load %arg1[%c0_516, %c1_517, %c0_518, %c0_519, %c21_520] : memref<1x2x2x4x100xbf16, #tpu.memory_space<vmem>>, vector<1x1x1x4x78xbf16>
    %286 = vector.shape_cast %285 : vector<1x1x1x4x78xbf16> to vector<4x78xbf16>
    %c88_521 = arith.constant 88 : index
    %c0_522 = arith.constant 0 : index
    %287 = vector.load %arg10[%c88_521, %c0_522] : memref<100x78xbf16, #tpu.memory_space<vmem>>, vector<4x78xbf16>
    tpu.vector_store %arg10[%c88_521, %c0_522], %286 {strides = array<i32>} : memref<100x78xbf16, #tpu.memory_space<vmem>>, vector<4x78xbf16>,
    %c0_523 = arith.constant 0 : index
    %c1_524 = arith.constant 1 : index
    %c1_525 = arith.constant 1 : index
    %c0_526 = arith.constant 0 : index
    %c21_527 = arith.constant 21 : index
    %288 = vector.load %arg1[%c0_523, %c1_524, %c1_525, %c0_526, %c21_527] : memref<1x2x2x4x100xbf16, #tpu.memory_space<vmem>>, vector<1x1x1x4x78xbf16>
    %289 = vector.shape_cast %288 : vector<1x1x1x4x78xbf16> to vector<4x78xbf16>
    %c92_528 = arith.constant 92 : index
    %c0_529 = arith.constant 0 : index
    %290 = vector.load %arg10[%c92_528, %c0_529] : memref<100x78xbf16, #tpu.memory_space<vmem>>, vector<4x78xbf16>
    tpu.vector_store %arg10[%c92_528, %c0_529], %289 {strides = array<i32>} : memref<100x78xbf16, #tpu.memory_space<vmem>>, vector<4x78xbf16>,
    %c0_530 = arith.constant 0 : index
    %c1_531 = arith.constant 1 : index
    %c0_532 = arith.constant 0 : index
    %c0_533 = arith.constant 0 : index
    %c22_534 = arith.constant 22 : index
    %291 = vector.load %arg1[%c0_530, %c1_531, %c0_532, %c0_533, %c22_534] : memref<1x2x2x4x100xbf16, #tpu.memory_space<vmem>>, vector<1x1x1x4x78xbf16>
    %292 = vector.shape_cast %291 : vector<1x1x1x4x78xbf16> to vector<4x78xbf16>
    %c96_535 = arith.constant 96 : index
    %c0_536 = arith.constant 0 : index
    %293 = vector.load %arg10[%c96_535, %c0_536] : memref<100x78xbf16, #tpu.memory_space<vmem>>, vector<4x78xbf16>
    tpu.vector_store %arg10[%c96_535, %c0_536], %292 {strides = array<i32>} : memref<100x78xbf16, #tpu.memory_space<vmem>>, vector<4x78xbf16>,
    %c0_537 = arith.constant 0 : index
    %c0_538 = arith.constant 0 : index
    %294 = vector.load %arg10[%c0_537, %c0_538] : memref<100x78xbf16, #tpu.memory_space<vmem>>, vector<100x78xbf16>
    %cst_539 = arith.constant dense<0.000000e+00> : vector<4x78xf32>
    %295 = tpu.matmul %21, %294, %cst_539 {dimension_numbers = #tpu.dot_dimension_numbers<[1], [0], [0], [1], [0, 0, 1, 1], [], []>} : vector<4x100xbf16>, vector<100x78xbf16>, vector<4x78xf32> -> vector<4x78xf32>
    %296 = vector.broadcast %22 : vector<4x1xf32> to vector<4x78xf32>
    %297 = arith.addf %295, %296 : vector<4x78xf32>
    %cst_540 = arith.constant 0.000000e+00 : f32
    %298 = vector.broadcast %cst_540 : f32 to vector<4x78xf32>
    %299 = arith.cmpf oge, %297, %298 : vector<4x78xf32>
    %cst_541 = arith.constant 1.000000e-01 : f32
    %300 = vector.broadcast %cst_541 : f32 to vector<4x78xf32>
    %301 = arith.mulf %300, %297 : vector<4x78xf32>
    %302 = arith.select %299, %297, %301 : vector<4x78xi1>, vector<4x78xf32>
    %303 = vector.broadcast %20 : vector<1x78xf32> to vector<4x78xf32>
    %304 = arith.mulf %302, %303 : vector<4x78xf32>
    %305 = arith.truncf %304 : vector<4x78xf32> to vector<4x78xbf16>
    %cst_542 = arith.constant 0.000000e+00 : bf16
    %306 = vector.broadcast %cst_542 : bf16 to vector<4x11xbf16>
    %c1_543 = arith.constant 1 : index
    %c0_544 = arith.constant 0 : index
    %c0_545 = arith.constant 0 : index
    %c0_546 = arith.constant 0 : index
    %307 = vector.load %arg9[%c1_543, %c0_544, %c0_545, %c0_546] : memref<2x2x4x100xbf16, #tpu.memory_space<vmem>>, vector<1x1x4x11xbf16>
    %308 = vector.shape_cast %307 : vector<1x1x4x11xbf16> to vector<4x11xbf16>
    %309 = vector.shape_cast %306 : vector<4x11xbf16> to vector<1x1x4x11xbf16>
    tpu.vector_store %arg9[%c1_543, %c0_544, %c0_545, %c0_546], %309 {strides = array<i32>} : memref<2x2x4x100xbf16, #tpu.memory_space<vmem>>, vector<1x1x4x11xbf16>,
    %cst_547 = arith.constant 0.000000e+00 : bf16
    %310 = vector.broadcast %cst_547 : bf16 to vector<4x11xbf16>
    %c1_548 = arith.constant 1 : index
    %c0_549 = arith.constant 0 : index
    %c0_550 = arith.constant 0 : index
    %c89_551 = arith.constant 89 : index
    %311 = vector.load %arg9[%c1_548, %c0_549, %c0_550, %c89_551] : memref<2x2x4x100xbf16, #tpu.memory_space<vmem>>, vector<1x1x4x11xbf16>
    %312 = vector.shape_cast %311 : vector<1x1x4x11xbf16> to vector<4x11xbf16>
    %313 = vector.shape_cast %310 : vector<4x11xbf16> to vector<1x1x4x11xbf16>
    tpu.vector_store %arg9[%c1_548, %c0_549, %c0_550, %c89_551], %313 {strides = array<i32>} : memref<2x2x4x100xbf16, #tpu.memory_space<vmem>>, vector<1x1x4x11xbf16>,
    %c1_552 = arith.constant 1 : index
    %c0_553 = arith.constant 0 : index
    %c0_554 = arith.constant 0 : index
    %c11_555 = arith.constant 11 : index
    %314 = vector.load %arg9[%c1_552, %c0_553, %c0_554, %c11_555] : memref<2x2x4x100xbf16, #tpu.memory_space<vmem>>, vector<1x1x4x78xbf16>
    %315 = vector.shape_cast %314 : vector<1x1x4x78xbf16> to vector<4x78xbf16>
    %316 = vector.shape_cast %305 : vector<4x78xbf16> to vector<1x1x4x78xbf16>
    tpu.vector_store %arg9[%c1_552, %c0_553, %c0_554, %c11_555], %316 {strides = array<i32>} : memref<2x2x4x100xbf16, #tpu.memory_space<vmem>>, vector<1x1x4x78xbf16>,
    %c0_556 = arith.constant 0 : index
    %c1_557 = arith.constant 1 : index
    %c1_558 = arith.constant 1 : index
    %c0_559 = arith.constant 0 : index
    %c0_560 = arith.constant 0 : index
    %317 = vector.load %arg1[%c0_556, %c1_557, %c1_558, %c0_559, %c0_560] : memref<1x2x2x4x100xbf16, #tpu.memory_space<vmem>>, vector<1x1x1x4x78xbf16>
    %318 = vector.shape_cast %317 : vector<1x1x1x4x78xbf16> to vector<4x78xbf16>
    %c0_561 = arith.constant 0 : index
    %c0_562 = arith.constant 0 : index
    %319 = vector.load %arg10[%c0_561, %c0_562] : memref<100x78xbf16, #tpu.memory_space<vmem>>, vector<4x78xbf16>
    tpu.vector_store %arg10[%c0_561, %c0_562], %318 {strides = array<i32>} : memref<100x78xbf16, #tpu.memory_space<vmem>>, vector<4x78xbf16>,
    %c0_563 = arith.constant 0 : index
    %c1_564 = arith.constant 1 : index
    %c0_565 = arith.constant 0 : index
    %c0_566 = arith.constant 0 : index
    %c1_567 = arith.constant 1 : index
    %320 = vector.load %arg1[%c0_563, %c1_564, %c0_565, %c0_566, %c1_567] : memref<1x2x2x4x100xbf16, #tpu.memory_space<vmem>>, vector<1x1x1x4x78xbf16>
    %321 = vector.shape_cast %320 : vector<1x1x1x4x78xbf16> to vector<4x78xbf16>
    %c4_568 = arith.constant 4 : index
    %c0_569 = arith.constant 0 : index
    %322 = vector.load %arg10[%c4_568, %c0_569] : memref<100x78xbf16, #tpu.memory_space<vmem>>, vector<4x78xbf16>
    tpu.vector_store %arg10[%c4_568, %c0_569], %321 {strides = array<i32>} : memref<100x78xbf16, #tpu.memory_space<vmem>>, vector<4x78xbf16>,
    %c0_570 = arith.constant 0 : index
    %c1_571 = arith.constant 1 : index
    %c1_572 = arith.constant 1 : index
    %c0_573 = arith.constant 0 : index
    %c1_574 = arith.constant 1 : index
    %323 = vector.load %arg1[%c0_570, %c1_571, %c1_572, %c0_573, %c1_574] : memref<1x2x2x4x100xbf16, #tpu.memory_space<vmem>>, vector<1x1x1x4x78xbf16>
    %324 = vector.shape_cast %323 : vector<1x1x1x4x78xbf16> to vector<4x78xbf16>
    %c8_575 = arith.constant 8 : index
    %c0_576 = arith.constant 0 : index
    %325 = vector.load %arg10[%c8_575, %c0_576] : memref<100x78xbf16, #tpu.memory_space<vmem>>, vector<4x78xbf16>
    tpu.vector_store %arg10[%c8_575, %c0_576], %324 {strides = array<i32>} : memref<100x78xbf16, #tpu.memory_space<vmem>>, vector<4x78xbf16>,
    %c0_577 = arith.constant 0 : index
    %c1_578 = arith.constant 1 : index
    %c0_579 = arith.constant 0 : index
    %c0_580 = arith.constant 0 : index
    %c2_581 = arith.constant 2 : index
    %326 = vector.load %arg1[%c0_577, %c1_578, %c0_579, %c0_580, %c2_581] : memref<1x2x2x4x100xbf16, #tpu.memory_space<vmem>>, vector<1x1x1x4x78xbf16>
    %327 = vector.shape_cast %326 : vector<1x1x1x4x78xbf16> to vector<4x78xbf16>
    %c12_582 = arith.constant 12 : index
    %c0_583 = arith.constant 0 : index
    %328 = vector.load %arg10[%c12_582, %c0_583] : memref<100x78xbf16, #tpu.memory_space<vmem>>, vector<4x78xbf16>
    tpu.vector_store %arg10[%c12_582, %c0_583], %327 {strides = array<i32>} : memref<100x78xbf16, #tpu.memory_space<vmem>>, vector<4x78xbf16>,
    %c0_584 = arith.constant 0 : index
    %c1_585 = arith.constant 1 : index
    %c1_586 = arith.constant 1 : index
    %c0_587 = arith.constant 0 : index
    %c2_588 = arith.constant 2 : index
    %329 = vector.load %arg1[%c0_584, %c1_585, %c1_586, %c0_587, %c2_588] : memref<1x2x2x4x100xbf16, #tpu.memory_space<vmem>>, vector<1x1x1x4x78xbf16>
    %330 = vector.shape_cast %329 : vector<1x1x1x4x78xbf16> to vector<4x78xbf16>
    %c16_589 = arith.constant 16 : index
    %c0_590 = arith.constant 0 : index
    %331 = vector.load %arg10[%c16_589, %c0_590] : memref<100x78xbf16, #tpu.memory_space<vmem>>, vector<4x78xbf16>
    tpu.vector_store %arg10[%c16_589, %c0_590], %330 {strides = array<i32>} : memref<100x78xbf16, #tpu.memory_space<vmem>>, vector<4x78xbf16>,
    %c0_591 = arith.constant 0 : index
    %c0_592 = arith.constant 0 : index
    %c1_593 = arith.constant 1 : index
    %c0_594 = arith.constant 0 : index
    %c10_595 = arith.constant 10 : index
    %332 = vector.load %arg1[%c0_591, %c0_592, %c1_593, %c0_594, %c10_595] : memref<1x2x2x4x100xbf16, #tpu.memory_space<vmem>>, vector<1x1x1x4x78xbf16>
    %333 = vector.shape_cast %332 : vector<1x1x1x4x78xbf16> to vector<4x78xbf16>
    %c20_596 = arith.constant 20 : index
    %c0_597 = arith.constant 0 : index
    %334 = vector.load %arg10[%c20_596, %c0_597] : memref<100x78xbf16, #tpu.memory_space<vmem>>, vector<4x78xbf16>
    tpu.vector_store %arg10[%c20_596, %c0_597], %333 {strides = array<i32>} : memref<100x78xbf16, #tpu.memory_space<vmem>>, vector<4x78xbf16>,
    %c0_598 = arith.constant 0 : index
    %c0_599 = arith.constant 0 : index
    %c0_600 = arith.constant 0 : index
    %c0_601 = arith.constant 0 : index
    %c11_602 = arith.constant 11 : index
    %335 = vector.load %arg1[%c0_598, %c0_599, %c0_600, %c0_601, %c11_602] : memref<1x2x2x4x100xbf16, #tpu.memory_space<vmem>>, vector<1x1x1x4x78xbf16>
    %336 = vector.shape_cast %335 : vector<1x1x1x4x78xbf16> to vector<4x78xbf16>
    %c24_603 = arith.constant 24 : index
    %c0_604 = arith.constant 0 : index
    %337 = vector.load %arg10[%c24_603, %c0_604] : memref<100x78xbf16, #tpu.memory_space<vmem>>, vector<4x78xbf16>
    tpu.vector_store %arg10[%c24_603, %c0_604], %336 {strides = array<i32>} : memref<100x78xbf16, #tpu.memory_space<vmem>>, vector<4x78xbf16>,
    %c0_605 = arith.constant 0 : index
    %c0_606 = arith.constant 0 : index
    %c1_607 = arith.constant 1 : index
    %c0_608 = arith.constant 0 : index
    %c11_609 = arith.constant 11 : index
    %338 = vector.load %arg1[%c0_605, %c0_606, %c1_607, %c0_608, %c11_609] : memref<1x2x2x4x100xbf16, #tpu.memory_space<vmem>>, vector<1x1x1x4x78xbf16>
    %339 = vector.shape_cast %338 : vector<1x1x1x4x78xbf16> to vector<4x78xbf16>
    %c28_610 = arith.constant 28 : index
    %c0_611 = arith.constant 0 : index
    %340 = vector.load %arg10[%c28_610, %c0_611] : memref<100x78xbf16, #tpu.memory_space<vmem>>, vector<4x78xbf16>
    tpu.vector_store %arg10[%c28_610, %c0_611], %339 {strides = array<i32>} : memref<100x78xbf16, #tpu.memory_space<vmem>>, vector<4x78xbf16>,
    %c0_612 = arith.constant 0 : index
    %c0_613 = arith.constant 0 : index
    %c0_614 = arith.constant 0 : index
    %c0_615 = arith.constant 0 : index
    %c12_616 = arith.constant 12 : index
    %341 = vector.load %arg1[%c0_612, %c0_613, %c0_614, %c0_615, %c12_616] : memref<1x2x2x4x100xbf16, #tpu.memory_space<vmem>>, vector<1x1x1x4x78xbf16>
    %342 = vector.shape_cast %341 : vector<1x1x1x4x78xbf16> to vector<4x78xbf16>
    %c32_617 = arith.constant 32 : index
    %c0_618 = arith.constant 0 : index
    %343 = vector.load %arg10[%c32_617, %c0_618] : memref<100x78xbf16, #tpu.memory_space<vmem>>, vector<4x78xbf16>
    tpu.vector_store %arg10[%c32_617, %c0_618], %342 {strides = array<i32>} : memref<100x78xbf16, #tpu.memory_space<vmem>>, vector<4x78xbf16>,
    %c0_619 = arith.constant 0 : index
    %c0_620 = arith.constant 0 : index
    %c1_621 = arith.constant 1 : index
    %c0_622 = arith.constant 0 : index
    %c12_623 = arith.constant 12 : index
    %344 = vector.load %arg1[%c0_619, %c0_620, %c1_621, %c0_622, %c12_623] : memref<1x2x2x4x100xbf16, #tpu.memory_space<vmem>>, vector<1x1x1x4x78xbf16>
    %345 = vector.shape_cast %344 : vector<1x1x1x4x78xbf16> to vector<4x78xbf16>
    %c36_624 = arith.constant 36 : index
    %c0_625 = arith.constant 0 : index
    %346 = vector.load %arg10[%c36_624, %c0_625] : memref<100x78xbf16, #tpu.memory_space<vmem>>, vector<4x78xbf16>
    tpu.vector_store %arg10[%c36_624, %c0_625], %345 {strides = array<i32>} : memref<100x78xbf16, #tpu.memory_space<vmem>>, vector<4x78xbf16>,
    %c0_626 = arith.constant 0 : index
    %c1_627 = arith.constant 1 : index
    %c1_628 = arith.constant 1 : index
    %c0_629 = arith.constant 0 : index
    %c10_630 = arith.constant 10 : index
    %347 = vector.load %arg1[%c0_626, %c1_627, %c1_628, %c0_629, %c10_630] : memref<1x2x2x4x100xbf16, #tpu.memory_space<vmem>>, vector<1x1x1x4x78xbf16>
    %348 = vector.shape_cast %347 : vector<1x1x1x4x78xbf16> to vector<4x78xbf16>
    %c40_631 = arith.constant 40 : index
    %c0_632 = arith.constant 0 : index
    %349 = vector.load %arg10[%c40_631, %c0_632] : memref<100x78xbf16, #tpu.memory_space<vmem>>, vector<4x78xbf16>
    tpu.vector_store %arg10[%c40_631, %c0_632], %348 {strides = array<i32>} : memref<100x78xbf16, #tpu.memory_space<vmem>>, vector<4x78xbf16>,
    %c0_633 = arith.constant 0 : index
    %c1_634 = arith.constant 1 : index
    %c0_635 = arith.constant 0 : index
    %c0_636 = arith.constant 0 : index
    %c11_637 = arith.constant 11 : index
    %350 = vector.load %arg1[%c0_633, %c1_634, %c0_635, %c0_636, %c11_637] : memref<1x2x2x4x100xbf16, #tpu.memory_space<vmem>>, vector<1x1x1x4x78xbf16>
    %351 = vector.shape_cast %350 : vector<1x1x1x4x78xbf16> to vector<4x78xbf16>
    %c44_638 = arith.constant 44 : index
    %c0_639 = arith.constant 0 : index
    %352 = vector.load %arg10[%c44_638, %c0_639] : memref<100x78xbf16, #tpu.memory_space<vmem>>, vector<4x78xbf16>
    tpu.vector_store %arg10[%c44_638, %c0_639], %351 {strides = array<i32>} : memref<100x78xbf16, #tpu.memory_space<vmem>>, vector<4x78xbf16>,
    %c0_640 = arith.constant 0 : index
    %c1_641 = arith.constant 1 : index
    %c1_642 = arith.constant 1 : index
    %c0_643 = arith.constant 0 : index
    %c11_644 = arith.constant 11 : index
    %353 = vector.load %arg1[%c0_640, %c1_641, %c1_642, %c0_643, %c11_644] : memref<1x2x2x4x100xbf16, #tpu.memory_space<vmem>>, vector<1x1x1x4x78xbf16>
    %354 = vector.shape_cast %353 : vector<1x1x1x4x78xbf16> to vector<4x78xbf16>
    %c48_645 = arith.constant 48 : index
    %c0_646 = arith.constant 0 : index
    %355 = vector.load %arg10[%c48_645, %c0_646] : memref<100x78xbf16, #tpu.memory_space<vmem>>, vector<4x78xbf16>
    tpu.vector_store %arg10[%c48_645, %c0_646], %354 {strides = array<i32>} : memref<100x78xbf16, #tpu.memory_space<vmem>>, vector<4x78xbf16>,
    %c0_647 = arith.constant 0 : index
    %c1_648 = arith.constant 1 : index
    %c0_649 = arith.constant 0 : index
    %c0_650 = arith.constant 0 : index
    %c12_651 = arith.constant 12 : index
    %356 = vector.load %arg1[%c0_647, %c1_648, %c0_649, %c0_650, %c12_651] : memref<1x2x2x4x100xbf16, #tpu.memory_space<vmem>>, vector<1x1x1x4x78xbf16>
    %357 = vector.shape_cast %356 : vector<1x1x1x4x78xbf16> to vector<4x78xbf16>
    %c52_652 = arith.constant 52 : index
    %c0_653 = arith.constant 0 : index
    %358 = vector.load %arg10[%c52_652, %c0_653] : memref<100x78xbf16, #tpu.memory_space<vmem>>, vector<4x78xbf16>
    tpu.vector_store %arg10[%c52_652, %c0_653], %357 {strides = array<i32>} : memref<100x78xbf16, #tpu.memory_space<vmem>>, vector<4x78xbf16>,
    %c0_654 = arith.constant 0 : index
    %c1_655 = arith.constant 1 : index
    %c1_656 = arith.constant 1 : index
    %c0_657 = arith.constant 0 : index
    %c12_658 = arith.constant 12 : index
    %359 = vector.load %arg1[%c0_654, %c1_655, %c1_656, %c0_657, %c12_658] : memref<1x2x2x4x100xbf16, #tpu.memory_space<vmem>>, vector<1x1x1x4x78xbf16>
    %360 = vector.shape_cast %359 : vector<1x1x1x4x78xbf16> to vector<4x78xbf16>
    %c56_659 = arith.constant 56 : index
    %c0_660 = arith.constant 0 : index
    %361 = vector.load %arg10[%c56_659, %c0_660] : memref<100x78xbf16, #tpu.memory_space<vmem>>, vector<4x78xbf16>
    tpu.vector_store %arg10[%c56_659, %c0_660], %360 {strides = array<i32>} : memref<100x78xbf16, #tpu.memory_space<vmem>>, vector<4x78xbf16>,
    %c0_661 = arith.constant 0 : index
    %c0_662 = arith.constant 0 : index
    %c1_663 = arith.constant 1 : index
    %c0_664 = arith.constant 0 : index
    %c20_665 = arith.constant 20 : index
    %362 = vector.load %arg1[%c0_661, %c0_662, %c1_663, %c0_664, %c20_665] : memref<1x2x2x4x100xbf16, #tpu.memory_space<vmem>>, vector<1x1x1x4x78xbf16>
    %363 = vector.shape_cast %362 : vector<1x1x1x4x78xbf16> to vector<4x78xbf16>
    %c60_666 = arith.constant 60 : index
    %c0_667 = arith.constant 0 : index
    %364 = vector.load %arg10[%c60_666, %c0_667] : memref<100x78xbf16, #tpu.memory_space<vmem>>, vector<4x78xbf16>
    tpu.vector_store %arg10[%c60_666, %c0_667], %363 {strides = array<i32>} : memref<100x78xbf16, #tpu.memory_space<vmem>>, vector<4x78xbf16>,
    %c0_668 = arith.constant 0 : index
    %c0_669 = arith.constant 0 : index
    %c0_670 = arith.constant 0 : index
    %c0_671 = arith.constant 0 : index
    %c21_672 = arith.constant 21 : index
    %365 = vector.load %arg1[%c0_668, %c0_669, %c0_670, %c0_671, %c21_672] : memref<1x2x2x4x100xbf16, #tpu.memory_space<vmem>>, vector<1x1x1x4x78xbf16>
    %366 = vector.shape_cast %365 : vector<1x1x1x4x78xbf16> to vector<4x78xbf16>
    %c64_673 = arith.constant 64 : index
    %c0_674 = arith.constant 0 : index
    %367 = vector.load %arg10[%c64_673, %c0_674] : memref<100x78xbf16, #tpu.memory_space<vmem>>, vector<4x78xbf16>
    tpu.vector_store %arg10[%c64_673, %c0_674], %366 {strides = array<i32>} : memref<100x78xbf16, #tpu.memory_space<vmem>>, vector<4x78xbf16>,
    %c0_675 = arith.constant 0 : index
    %c0_676 = arith.constant 0 : index
    %c1_677 = arith.constant 1 : index
    %c0_678 = arith.constant 0 : index
    %c21_679 = arith.constant 21 : index
    %368 = vector.load %arg1[%c0_675, %c0_676, %c1_677, %c0_678, %c21_679] : memref<1x2x2x4x100xbf16, #tpu.memory_space<vmem>>, vector<1x1x1x4x78xbf16>
    %369 = vector.shape_cast %368 : vector<1x1x1x4x78xbf16> to vector<4x78xbf16>
    %c68_680 = arith.constant 68 : index
    %c0_681 = arith.constant 0 : index
    %370 = vector.load %arg10[%c68_680, %c0_681] : memref<100x78xbf16, #tpu.memory_space<vmem>>, vector<4x78xbf16>
    tpu.vector_store %arg10[%c68_680, %c0_681], %369 {strides = array<i32>} : memref<100x78xbf16, #tpu.memory_space<vmem>>, vector<4x78xbf16>,
    %c0_682 = arith.constant 0 : index
    %c0_683 = arith.constant 0 : index
    %c0_684 = arith.constant 0 : index
    %c0_685 = arith.constant 0 : index
    %c22_686 = arith.constant 22 : index
    %371 = vector.load %arg1[%c0_682, %c0_683, %c0_684, %c0_685, %c22_686] : memref<1x2x2x4x100xbf16, #tpu.memory_space<vmem>>, vector<1x1x1x4x78xbf16>
    %372 = vector.shape_cast %371 : vector<1x1x1x4x78xbf16> to vector<4x78xbf16>
    %c72_687 = arith.constant 72 : index
    %c0_688 = arith.constant 0 : index
    %373 = vector.load %arg10[%c72_687, %c0_688] : memref<100x78xbf16, #tpu.memory_space<vmem>>, vector<4x78xbf16>
    tpu.vector_store %arg10[%c72_687, %c0_688], %372 {strides = array<i32>} : memref<100x78xbf16, #tpu.memory_space<vmem>>, vector<4x78xbf16>,
    %c0_689 = arith.constant 0 : index
    %c0_690 = arith.constant 0 : index
    %c1_691 = arith.constant 1 : index
    %c0_692 = arith.constant 0 : index
    %c22_693 = arith.constant 22 : index
    %374 = vector.load %arg1[%c0_689, %c0_690, %c1_691, %c0_692, %c22_693] : memref<1x2x2x4x100xbf16, #tpu.memory_space<vmem>>, vector<1x1x1x4x78xbf16>
    %375 = vector.shape_cast %374 : vector<1x1x1x4x78xbf16> to vector<4x78xbf16>
    %c76_694 = arith.constant 76 : index
    %c0_695 = arith.constant 0 : index
    %376 = vector.load %arg10[%c76_694, %c0_695] : memref<100x78xbf16, #tpu.memory_space<vmem>>, vector<4x78xbf16>
    tpu.vector_store %arg10[%c76_694, %c0_695], %375 {strides = array<i32>} : memref<100x78xbf16, #tpu.memory_space<vmem>>, vector<4x78xbf16>,
    %c0_696 = arith.constant 0 : index
    %c1_697 = arith.constant 1 : index
    %c1_698 = arith.constant 1 : index
    %c0_699 = arith.constant 0 : index
    %c20_700 = arith.constant 20 : index
    %377 = vector.load %arg1[%c0_696, %c1_697, %c1_698, %c0_699, %c20_700] : memref<1x2x2x4x100xbf16, #tpu.memory_space<vmem>>, vector<1x1x1x4x78xbf16>
    %378 = vector.shape_cast %377 : vector<1x1x1x4x78xbf16> to vector<4x78xbf16>
    %c80_701 = arith.constant 80 : index
    %c0_702 = arith.constant 0 : index
    %379 = vector.load %arg10[%c80_701, %c0_702] : memref<100x78xbf16, #tpu.memory_space<vmem>>, vector<4x78xbf16>
    tpu.vector_store %arg10[%c80_701, %c0_702], %378 {strides = array<i32>} : memref<100x78xbf16, #tpu.memory_space<vmem>>, vector<4x78xbf16>,
    %c0_703 = arith.constant 0 : index
    %c1_704 = arith.constant 1 : index
    %c0_705 = arith.constant 0 : index
    %c0_706 = arith.constant 0 : index
    %c21_707 = arith.constant 21 : index
    %380 = vector.load %arg1[%c0_703, %c1_704, %c0_705, %c0_706, %c21_707] : memref<1x2x2x4x100xbf16, #tpu.memory_space<vmem>>, vector<1x1x1x4x78xbf16>
    %381 = vector.shape_cast %380 : vector<1x1x1x4x78xbf16> to vector<4x78xbf16>
    %c84_708 = arith.constant 84 : index
    %c0_709 = arith.constant 0 : index
    %382 = vector.load %arg10[%c84_708, %c0_709] : memref<100x78xbf16, #tpu.memory_space<vmem>>, vector<4x78xbf16>
    tpu.vector_store %arg10[%c84_708, %c0_709], %381 {strides = array<i32>} : memref<100x78xbf16, #tpu.memory_space<vmem>>, vector<4x78xbf16>,
    %c0_710 = arith.constant 0 : index
    %c1_711 = arith.constant 1 : index
    %c1_712 = arith.constant 1 : index
    %c0_713 = arith.constant 0 : index
    %c21_714 = arith.constant 21 : index
    %383 = vector.load %arg1[%c0_710, %c1_711, %c1_712, %c0_713, %c21_714] : memref<1x2x2x4x100xbf16, #tpu.memory_space<vmem>>, vector<1x1x1x4x78xbf16>
    %384 = vector.shape_cast %383 : vector<1x1x1x4x78xbf16> to vector<4x78xbf16>
    %c88_715 = arith.constant 88 : index
    %c0_716 = arith.constant 0 : index
    %385 = vector.load %arg10[%c88_715, %c0_716] : memref<100x78xbf16, #tpu.memory_space<vmem>>, vector<4x78xbf16>
    tpu.vector_store %arg10[%c88_715, %c0_716], %384 {strides = array<i32>} : memref<100x78xbf16, #tpu.memory_space<vmem>>, vector<4x78xbf16>,
    %c0_717 = arith.constant 0 : index
    %c1_718 = arith.constant 1 : index
    %c0_719 = arith.constant 0 : index
    %c0_720 = arith.constant 0 : index
    %c22_721 = arith.constant 22 : index
    %386 = vector.load %arg1[%c0_717, %c1_718, %c0_719, %c0_720, %c22_721] : memref<1x2x2x4x100xbf16, #tpu.memory_space<vmem>>, vector<1x1x1x4x78xbf16>
    %387 = vector.shape_cast %386 : vector<1x1x1x4x78xbf16> to vector<4x78xbf16>
    %c92_722 = arith.constant 92 : index
    %c0_723 = arith.constant 0 : index
    %388 = vector.load %arg10[%c92_722, %c0_723] : memref<100x78xbf16, #tpu.memory_space<vmem>>, vector<4x78xbf16>
    tpu.vector_store %arg10[%c92_722, %c0_723], %387 {strides = array<i32>} : memref<100x78xbf16, #tpu.memory_space<vmem>>, vector<4x78xbf16>,
    %c0_724 = arith.constant 0 : index
    %c1_725 = arith.constant 1 : index
    %c1_726 = arith.constant 1 : index
    %c0_727 = arith.constant 0 : index
    %c22_728 = arith.constant 22 : index
    %389 = vector.load %arg1[%c0_724, %c1_725, %c1_726, %c0_727, %c22_728] : memref<1x2x2x4x100xbf16, #tpu.memory_space<vmem>>, vector<1x1x1x4x78xbf16>
    %390 = vector.shape_cast %389 : vector<1x1x1x4x78xbf16> to vector<4x78xbf16>
    %c96_729 = arith.constant 96 : index
    %c0_730 = arith.constant 0 : index
    %391 = vector.load %arg10[%c96_729, %c0_730] : memref<100x78xbf16, #tpu.memory_space<vmem>>, vector<4x78xbf16>
    tpu.vector_store %arg10[%c96_729, %c0_730], %390 {strides = array<i32>} : memref<100x78xbf16, #tpu.memory_space<vmem>>, vector<4x78xbf16>,
    %c0_731 = arith.constant 0 : index
    %c0_732 = arith.constant 0 : index
    %392 = vector.load %arg10[%c0_731, %c0_732] : memref<100x78xbf16, #tpu.memory_space<vmem>>, vector<100x78xbf16>
    %cst_733 = arith.constant dense<0.000000e+00> : vector<4x78xf32>
    %393 = tpu.matmul %21, %392, %cst_733 {dimension_numbers = #tpu.dot_dimension_numbers<[1], [0], [0], [1], [0, 0, 1, 1], [], []>} : vector<4x100xbf16>, vector<100x78xbf16>, vector<4x78xf32> -> vector<4x78xf32>
    %394 = vector.broadcast %22 : vector<4x1xf32> to vector<4x78xf32>
    %395 = arith.addf %393, %394 : vector<4x78xf32>
    %cst_734 = arith.constant 0.000000e+00 : f32
    %396 = vector.broadcast %cst_734 : f32 to vector<4x78xf32>
    %397 = arith.cmpf oge, %395, %396 : vector<4x78xf32>
    %cst_735 = arith.constant 1.000000e-01 : f32
    %398 = vector.broadcast %cst_735 : f32 to vector<4x78xf32>
    %399 = arith.mulf %398, %395 : vector<4x78xf32>
    %400 = arith.select %397, %395, %399 : vector<4x78xi1>, vector<4x78xf32>
    %401 = vector.broadcast %20 : vector<1x78xf32> to vector<4x78xf32>
    %402 = arith.mulf %400, %401 : vector<4x78xf32>
    %403 = arith.truncf %402 : vector<4x78xf32> to vector<4x78xbf16>
    %cst_736 = arith.constant 0.000000e+00 : bf16
    %404 = vector.broadcast %cst_736 : bf16 to vector<4x11xbf16>
    %c1_737 = arith.constant 1 : index
    %c1_738 = arith.constant 1 : index
    %c0_739 = arith.constant 0 : index
    %c0_740 = arith.constant 0 : index
    %405 = vector.load %arg9[%c1_737, %c1_738, %c0_739, %c0_740] : memref<2x2x4x100xbf16, #tpu.memory_space<vmem>>, vector<1x1x4x11xbf16>
    %406 = vector.shape_cast %405 : vector<1x1x4x11xbf16> to vector<4x11xbf16>
    %407 = vector.shape_cast %404 : vector<4x11xbf16> to vector<1x1x4x11xbf16>
    tpu.vector_store %arg9[%c1_737, %c1_738, %c0_739, %c0_740], %407 {strides = array<i32>} : memref<2x2x4x100xbf16, #tpu.memory_space<vmem>>, vector<1x1x4x11xbf16>,
    %cst_741 = arith.constant 0.000000e+00 : bf16
    %408 = vector.broadcast %cst_741 : bf16 to vector<4x11xbf16>
    %c1_742 = arith.constant 1 : index
    %c1_743 = arith.constant 1 : index
    %c0_744 = arith.constant 0 : index
    %c89_745 = arith.constant 89 : index
    %409 = vector.load %arg9[%c1_742, %c1_743, %c0_744, %c89_745] : memref<2x2x4x100xbf16, #tpu.memory_space<vmem>>, vector<1x1x4x11xbf16>
    %410 = vector.shape_cast %409 : vector<1x1x4x11xbf16> to vector<4x11xbf16>
    %411 = vector.shape_cast %408 : vector<4x11xbf16> to vector<1x1x4x11xbf16>
    tpu.vector_store %arg9[%c1_742, %c1_743, %c0_744, %c89_745], %411 {strides = array<i32>} : memref<2x2x4x100xbf16, #tpu.memory_space<vmem>>, vector<1x1x4x11xbf16>,
    %c1_746 = arith.constant 1 : index
    %c1_747 = arith.constant 1 : index
    %c0_748 = arith.constant 0 : index
    %c11_749 = arith.constant 11 : index
    %412 = vector.load %arg9[%c1_746, %c1_747, %c0_748, %c11_749] : memref<2x2x4x100xbf16, #tpu.memory_space<vmem>>, vector<1x1x4x78xbf16>
    %413 = vector.shape_cast %412 : vector<1x1x4x78xbf16> to vector<4x78xbf16>
    %414 = vector.shape_cast %403 : vector<4x78xbf16> to vector<1x1x4x78xbf16>
    tpu.vector_store %arg9[%c1_746, %c1_747, %c0_748, %c11_749], %414 {strides = array<i32>} : memref<2x2x4x100xbf16, #tpu.memory_space<vmem>>, vector<1x1x4x78xbf16>,
    %c0_750 = arith.constant 0 : index
    %c0_751 = arith.constant 0 : index
    %c0_752 = arith.constant 0 : index
    %c0_753 = arith.constant 0 : index
    %415 = vector.load %arg9[%c0_750, %c0_751, %c0_752, %c0_753] : memref<2x2x4x100xbf16, #tpu.memory_space<vmem>>, vector<1x1x4x78xbf16>
    %416 = vector.shape_cast %415 : vector<1x1x4x78xbf16> to vector<4x78xbf16>
    %c0_754 = arith.constant 0 : index
    %c0_755 = arith.constant 0 : index
    %417 = vector.load %arg10[%c0_754, %c0_755] : memref<100x78xbf16, #tpu.memory_space<vmem>>, vector<4x78xbf16>
    tpu.vector_store %arg10[%c0_754, %c0_755], %416 {strides = array<i32>} : memref<100x78xbf16, #tpu.memory_space<vmem>>, vector<4x78xbf16>,
    %c0_756 = arith.constant 0 : index
    %c1_757 = arith.constant 1 : index
    %c0_758 = arith.constant 0 : index
    %c0_759 = arith.constant 0 : index
    %418 = vector.load %arg9[%c0_756, %c1_757, %c0_758, %c0_759] : memref<2x2x4x100xbf16, #tpu.memory_space<vmem>>, vector<1x1x4x78xbf16>
    %419 = vector.shape_cast %418 : vector<1x1x4x78xbf16> to vector<4x78xbf16>
    %c4_760 = arith.constant 4 : index
    %c0_761 = arith.constant 0 : index
    %420 = vector.load %arg10[%c4_760, %c0_761] : memref<100x78xbf16, #tpu.memory_space<vmem>>, vector<4x78xbf16>
    tpu.vector_store %arg10[%c4_760, %c0_761], %419 {strides = array<i32>} : memref<100x78xbf16, #tpu.memory_space<vmem>>, vector<4x78xbf16>,
    %c0_762 = arith.constant 0 : index
    %c0_763 = arith.constant 0 : index
    %c0_764 = arith.constant 0 : index
    %c1_765 = arith.constant 1 : index
    %421 = vector.load %arg9[%c0_762, %c0_763, %c0_764, %c1_765] : memref<2x2x4x100xbf16, #tpu.memory_space<vmem>>, vector<1x1x4x78xbf16>
    %422 = vector.shape_cast %421 : vector<1x1x4x78xbf16> to vector<4x78xbf16>
    %c8_766 = arith.constant 8 : index
    %c0_767 = arith.constant 0 : index
    %423 = vector.load %arg10[%c8_766, %c0_767] : memref<100x78xbf16, #tpu.memory_space<vmem>>, vector<4x78xbf16>
    tpu.vector_store %arg10[%c8_766, %c0_767], %422 {strides = array<i32>} : memref<100x78xbf16, #tpu.memory_space<vmem>>, vector<4x78xbf16>,
    %c0_768 = arith.constant 0 : index
    %c1_769 = arith.constant 1 : index
    %c0_770 = arith.constant 0 : index
    %c1_771 = arith.constant 1 : index
    %424 = vector.load %arg9[%c0_768, %c1_769, %c0_770, %c1_771] : memref<2x2x4x100xbf16, #tpu.memory_space<vmem>>, vector<1x1x4x78xbf16>
    %425 = vector.shape_cast %424 : vector<1x1x4x78xbf16> to vector<4x78xbf16>
    %c12_772 = arith.constant 12 : index
    %c0_773 = arith.constant 0 : index
    %426 = vector.load %arg10[%c12_772, %c0_773] : memref<100x78xbf16, #tpu.memory_space<vmem>>, vector<4x78xbf16>
    tpu.vector_store %arg10[%c12_772, %c0_773], %425 {strides = array<i32>} : memref<100x78xbf16, #tpu.memory_space<vmem>>, vector<4x78xbf16>,
    %c0_774 = arith.constant 0 : index
    %c0_775 = arith.constant 0 : index
    %c0_776 = arith.constant 0 : index
    %c2_777 = arith.constant 2 : index
    %427 = vector.load %arg9[%c0_774, %c0_775, %c0_776, %c2_777] : memref<2x2x4x100xbf16, #tpu.memory_space<vmem>>, vector<1x1x4x78xbf16>
    %428 = vector.shape_cast %427 : vector<1x1x4x78xbf16> to vector<4x78xbf16>
    %c16_778 = arith.constant 16 : index
    %c0_779 = arith.constant 0 : index
    %429 = vector.load %arg10[%c16_778, %c0_779] : memref<100x78xbf16, #tpu.memory_space<vmem>>, vector<4x78xbf16>
    tpu.vector_store %arg10[%c16_778, %c0_779], %428 {strides = array<i32>} : memref<100x78xbf16, #tpu.memory_space<vmem>>, vector<4x78xbf16>,
    %c1_780 = arith.constant 1 : index
    %c0_781 = arith.constant 0 : index
    %c0_782 = arith.constant 0 : index
    %c0_783 = arith.constant 0 : index
    %430 = vector.load %arg9[%c1_780, %c0_781, %c0_782, %c0_783] : memref<2x2x4x100xbf16, #tpu.memory_space<vmem>>, vector<1x1x4x78xbf16>
    %431 = vector.shape_cast %430 : vector<1x1x4x78xbf16> to vector<4x78xbf16>
    %c20_784 = arith.constant 20 : index
    %c0_785 = arith.constant 0 : index
    %432 = vector.load %arg10[%c20_784, %c0_785] : memref<100x78xbf16, #tpu.memory_space<vmem>>, vector<4x78xbf16>
    tpu.vector_store %arg10[%c20_784, %c0_785], %431 {strides = array<i32>} : memref<100x78xbf16, #tpu.memory_space<vmem>>, vector<4x78xbf16>,
    %c1_786 = arith.constant 1 : index
    %c1_787 = arith.constant 1 : index
    %c0_788 = arith.constant 0 : index
    %c0_789 = arith.constant 0 : index
    %433 = vector.load %arg9[%c1_786, %c1_787, %c0_788, %c0_789] : memref<2x2x4x100xbf16, #tpu.memory_space<vmem>>, vector<1x1x4x78xbf16>
    %434 = vector.shape_cast %433 : vector<1x1x4x78xbf16> to vector<4x78xbf16>
    %c24_790 = arith.constant 24 : index
    %c0_791 = arith.constant 0 : index
    %435 = vector.load %arg10[%c24_790, %c0_791] : memref<100x78xbf16, #tpu.memory_space<vmem>>, vector<4x78xbf16>
    tpu.vector_store %arg10[%c24_790, %c0_791], %434 {strides = array<i32>} : memref<100x78xbf16, #tpu.memory_space<vmem>>, vector<4x78xbf16>,
    %c1_792 = arith.constant 1 : index
    %c0_793 = arith.constant 0 : index
    %c0_794 = arith.constant 0 : index
    %c1_795 = arith.constant 1 : index
    %436 = vector.load %arg9[%c1_792, %c0_793, %c0_794, %c1_795] : memref<2x2x4x100xbf16, #tpu.memory_space<vmem>>, vector<1x1x4x78xbf16>
    %437 = vector.shape_cast %436 : vector<1x1x4x78xbf16> to vector<4x78xbf16>
    %c28_796 = arith.constant 28 : index
    %c0_797 = arith.constant 0 : index
    %438 = vector.load %arg10[%c28_796, %c0_797] : memref<100x78xbf16, #tpu.memory_space<vmem>>, vector<4x78xbf16>
    tpu.vector_store %arg10[%c28_796, %c0_797], %437 {strides = array<i32>} : memref<100x78xbf16, #tpu.memory_space<vmem>>, vector<4x78xbf16>,
    %c1_798 = arith.constant 1 : index
    %c1_799 = arith.constant 1 : index
    %c0_800 = arith.constant 0 : index
    %c1_801 = arith.constant 1 : index
    %439 = vector.load %arg9[%c1_798, %c1_799, %c0_800, %c1_801] : memref<2x2x4x100xbf16, #tpu.memory_space<vmem>>, vector<1x1x4x78xbf16>
    %440 = vector.shape_cast %439 : vector<1x1x4x78xbf16> to vector<4x78xbf16>
    %c32_802 = arith.constant 32 : index
    %c0_803 = arith.constant 0 : index
    %441 = vector.load %arg10[%c32_802, %c0_803] : memref<100x78xbf16, #tpu.memory_space<vmem>>, vector<4x78xbf16>
    tpu.vector_store %arg10[%c32_802, %c0_803], %440 {strides = array<i32>} : memref<100x78xbf16, #tpu.memory_space<vmem>>, vector<4x78xbf16>,
    %c1_804 = arith.constant 1 : index
    %c0_805 = arith.constant 0 : index
    %c0_806 = arith.constant 0 : index
    %c2_807 = arith.constant 2 : index
    %442 = vector.load %arg9[%c1_804, %c0_805, %c0_806, %c2_807] : memref<2x2x4x100xbf16, #tpu.memory_space<vmem>>, vector<1x1x4x78xbf16>
    %443 = vector.shape_cast %442 : vector<1x1x4x78xbf16> to vector<4x78xbf16>
    %c36_808 = arith.constant 36 : index
    %c0_809 = arith.constant 0 : index
    %444 = vector.load %arg10[%c36_808, %c0_809] : memref<100x78xbf16, #tpu.memory_space<vmem>>, vector<4x78xbf16>
    tpu.vector_store %arg10[%c36_808, %c0_809], %443 {strides = array<i32>} : memref<100x78xbf16, #tpu.memory_space<vmem>>, vector<4x78xbf16>,
    %c0_810 = arith.constant 0 : index
    %c0_811 = arith.constant 0 : index
    %c0_812 = arith.constant 0 : index
    %c10_813 = arith.constant 10 : index
    %445 = vector.load %arg9[%c0_810, %c0_811, %c0_812, %c10_813] : memref<2x2x4x100xbf16, #tpu.memory_space<vmem>>, vector<1x1x4x78xbf16>
    %446 = vector.shape_cast %445 : vector<1x1x4x78xbf16> to vector<4x78xbf16>
    %c40_814 = arith.constant 40 : index
    %c0_815 = arith.constant 0 : index
    %447 = vector.load %arg10[%c40_814, %c0_815] : memref<100x78xbf16, #tpu.memory_space<vmem>>, vector<4x78xbf16>
    tpu.vector_store %arg10[%c40_814, %c0_815], %446 {strides = array<i32>} : memref<100x78xbf16, #tpu.memory_space<vmem>>, vector<4x78xbf16>,
    %c0_816 = arith.constant 0 : index
    %c1_817 = arith.constant 1 : index
    %c0_818 = arith.constant 0 : index
    %c10_819 = arith.constant 10 : index
    %448 = vector.load %arg9[%c0_816, %c1_817, %c0_818, %c10_819] : memref<2x2x4x100xbf16, #tpu.memory_space<vmem>>, vector<1x1x4x78xbf16>
    %449 = vector.shape_cast %448 : vector<1x1x4x78xbf16> to vector<4x78xbf16>
    %c44_820 = arith.constant 44 : index
    %c0_821 = arith.constant 0 : index
    %450 = vector.load %arg10[%c44_820, %c0_821] : memref<100x78xbf16, #tpu.memory_space<vmem>>, vector<4x78xbf16>
    tpu.vector_store %arg10[%c44_820, %c0_821], %449 {strides = array<i32>} : memref<100x78xbf16, #tpu.memory_space<vmem>>, vector<4x78xbf16>,
    %c0_822 = arith.constant 0 : index
    %c0_823 = arith.constant 0 : index
    %c0_824 = arith.constant 0 : index
    %c11_825 = arith.constant 11 : index
    %451 = vector.load %arg9[%c0_822, %c0_823, %c0_824, %c11_825] : memref<2x2x4x100xbf16, #tpu.memory_space<vmem>>, vector<1x1x4x78xbf16>
    %452 = vector.shape_cast %451 : vector<1x1x4x78xbf16> to vector<4x78xbf16>
    %c48_826 = arith.constant 48 : index
    %c0_827 = arith.constant 0 : index
    %453 = vector.load %arg10[%c48_826, %c0_827] : memref<100x78xbf16, #tpu.memory_space<vmem>>, vector<4x78xbf16>
    tpu.vector_store %arg10[%c48_826, %c0_827], %452 {strides = array<i32>} : memref<100x78xbf16, #tpu.memory_space<vmem>>, vector<4x78xbf16>,
    %c0_828 = arith.constant 0 : index
    %c1_829 = arith.constant 1 : index
    %c0_830 = arith.constant 0 : index
    %c11_831 = arith.constant 11 : index
    %454 = vector.load %arg9[%c0_828, %c1_829, %c0_830, %c11_831] : memref<2x2x4x100xbf16, #tpu.memory_space<vmem>>, vector<1x1x4x78xbf16>
    %455 = vector.shape_cast %454 : vector<1x1x4x78xbf16> to vector<4x78xbf16>
    %c52_832 = arith.constant 52 : index
    %c0_833 = arith.constant 0 : index
    %456 = vector.load %arg10[%c52_832, %c0_833] : memref<100x78xbf16, #tpu.memory_space<vmem>>, vector<4x78xbf16>
    tpu.vector_store %arg10[%c52_832, %c0_833], %455 {strides = array<i32>} : memref<100x78xbf16, #tpu.memory_space<vmem>>, vector<4x78xbf16>,
    %c0_834 = arith.constant 0 : index
    %c0_835 = arith.constant 0 : index
    %c0_836 = arith.constant 0 : index
    %c12_837 = arith.constant 12 : index
    %457 = vector.load %arg9[%c0_834, %c0_835, %c0_836, %c12_837] : memref<2x2x4x100xbf16, #tpu.memory_space<vmem>>, vector<1x1x4x78xbf16>
    %458 = vector.shape_cast %457 : vector<1x1x4x78xbf16> to vector<4x78xbf16>
    %c56_838 = arith.constant 56 : index
    %c0_839 = arith.constant 0 : index
    %459 = vector.load %arg10[%c56_838, %c0_839] : memref<100x78xbf16, #tpu.memory_space<vmem>>, vector<4x78xbf16>
    tpu.vector_store %arg10[%c56_838, %c0_839], %458 {strides = array<i32>} : memref<100x78xbf16, #tpu.memory_space<vmem>>, vector<4x78xbf16>,
    %c1_840 = arith.constant 1 : index
    %c0_841 = arith.constant 0 : index
    %c0_842 = arith.constant 0 : index
    %c10_843 = arith.constant 10 : index
    %460 = vector.load %arg9[%c1_840, %c0_841, %c0_842, %c10_843] : memref<2x2x4x100xbf16, #tpu.memory_space<vmem>>, vector<1x1x4x78xbf16>
    %461 = vector.shape_cast %460 : vector<1x1x4x78xbf16> to vector<4x78xbf16>
    %c60_844 = arith.constant 60 : index
    %c0_845 = arith.constant 0 : index
    %462 = vector.load %arg10[%c60_844, %c0_845] : memref<100x78xbf16, #tpu.memory_space<vmem>>, vector<4x78xbf16>
    tpu.vector_store %arg10[%c60_844, %c0_845], %461 {strides = array<i32>} : memref<100x78xbf16, #tpu.memory_space<vmem>>, vector<4x78xbf16>,
    %c1_846 = arith.constant 1 : index
    %c1_847 = arith.constant 1 : index
    %c0_848 = arith.constant 0 : index
    %c10_849 = arith.constant 10 : index
    %463 = vector.load %arg9[%c1_846, %c1_847, %c0_848, %c10_849] : memref<2x2x4x100xbf16, #tpu.memory_space<vmem>>, vector<1x1x4x78xbf16>
    %464 = vector.shape_cast %463 : vector<1x1x4x78xbf16> to vector<4x78xbf16>
    %c64_850 = arith.constant 64 : index
    %c0_851 = arith.constant 0 : index
    %465 = vector.load %arg10[%c64_850, %c0_851] : memref<100x78xbf16, #tpu.memory_space<vmem>>, vector<4x78xbf16>
    tpu.vector_store %arg10[%c64_850, %c0_851], %464 {strides = array<i32>} : memref<100x78xbf16, #tpu.memory_space<vmem>>, vector<4x78xbf16>,
    %c1_852 = arith.constant 1 : index
    %c0_853 = arith.constant 0 : index
    %c0_854 = arith.constant 0 : index
    %c11_855 = arith.constant 11 : index
    %466 = vector.load %arg9[%c1_852, %c0_853, %c0_854, %c11_855] : memref<2x2x4x100xbf16, #tpu.memory_space<vmem>>, vector<1x1x4x78xbf16>
    %467 = vector.shape_cast %466 : vector<1x1x4x78xbf16> to vector<4x78xbf16>
    %c68_856 = arith.constant 68 : index
    %c0_857 = arith.constant 0 : index
    %468 = vector.load %arg10[%c68_856, %c0_857] : memref<100x78xbf16, #tpu.memory_space<vmem>>, vector<4x78xbf16>
    tpu.vector_store %arg10[%c68_856, %c0_857], %467 {strides = array<i32>} : memref<100x78xbf16, #tpu.memory_space<vmem>>, vector<4x78xbf16>,
    %c1_858 = arith.constant 1 : index
    %c1_859 = arith.constant 1 : index
    %c0_860 = arith.constant 0 : index
    %c11_861 = arith.constant 11 : index
    %469 = vector.load %arg9[%c1_858, %c1_859, %c0_860, %c11_861] : memref<2x2x4x100xbf16, #tpu.memory_space<vmem>>, vector<1x1x4x78xbf16>
    %470 = vector.shape_cast %469 : vector<1x1x4x78xbf16> to vector<4x78xbf16>
    %c72_862 = arith.constant 72 : index
    %c0_863 = arith.constant 0 : index
    %471 = vector.load %arg10[%c72_862, %c0_863] : memref<100x78xbf16, #tpu.memory_space<vmem>>, vector<4x78xbf16>
    tpu.vector_store %arg10[%c72_862, %c0_863], %470 {strides = array<i32>} : memref<100x78xbf16, #tpu.memory_space<vmem>>, vector<4x78xbf16>,
    %c1_864 = arith.constant 1 : index
    %c0_865 = arith.constant 0 : index
    %c0_866 = arith.constant 0 : index
    %c12_867 = arith.constant 12 : index
    %472 = vector.load %arg9[%c1_864, %c0_865, %c0_866, %c12_867] : memref<2x2x4x100xbf16, #tpu.memory_space<vmem>>, vector<1x1x4x78xbf16>
    %473 = vector.shape_cast %472 : vector<1x1x4x78xbf16> to vector<4x78xbf16>
    %c76_868 = arith.constant 76 : index
    %c0_869 = arith.constant 0 : index
    %474 = vector.load %arg10[%c76_868, %c0_869] : memref<100x78xbf16, #tpu.memory_space<vmem>>, vector<4x78xbf16>
    tpu.vector_store %arg10[%c76_868, %c0_869], %473 {strides = array<i32>} : memref<100x78xbf16, #tpu.memory_space<vmem>>, vector<4x78xbf16>,
    %c0_870 = arith.constant 0 : index
    %c0_871 = arith.constant 0 : index
    %c0_872 = arith.constant 0 : index
    %c20_873 = arith.constant 20 : index
    %475 = vector.load %arg9[%c0_870, %c0_871, %c0_872, %c20_873] : memref<2x2x4x100xbf16, #tpu.memory_space<vmem>>, vector<1x1x4x78xbf16>
    %476 = vector.shape_cast %475 : vector<1x1x4x78xbf16> to vector<4x78xbf16>
    %c80_874 = arith.constant 80 : index
    %c0_875 = arith.constant 0 : index
    %477 = vector.load %arg10[%c80_874, %c0_875] : memref<100x78xbf16, #tpu.memory_space<vmem>>, vector<4x78xbf16>
    tpu.vector_store %arg10[%c80_874, %c0_875], %476 {strides = array<i32>} : memref<100x78xbf16, #tpu.memory_space<vmem>>, vector<4x78xbf16>,
    %c0_876 = arith.constant 0 : index
    %c1_877 = arith.constant 1 : index
    %c0_878 = arith.constant 0 : index
    %c20_879 = arith.constant 20 : index
    %478 = vector.load %arg9[%c0_876, %c1_877, %c0_878, %c20_879] : memref<2x2x4x100xbf16, #tpu.memory_space<vmem>>, vector<1x1x4x78xbf16>
    %479 = vector.shape_cast %478 : vector<1x1x4x78xbf16> to vector<4x78xbf16>
    %c84_880 = arith.constant 84 : index
    %c0_881 = arith.constant 0 : index
    %480 = vector.load %arg10[%c84_880, %c0_881] : memref<100x78xbf16, #tpu.memory_space<vmem>>, vector<4x78xbf16>
    tpu.vector_store %arg10[%c84_880, %c0_881], %479 {strides = array<i32>} : memref<100x78xbf16, #tpu.memory_space<vmem>>, vector<4x78xbf16>,
    %c0_882 = arith.constant 0 : index
    %c0_883 = arith.constant 0 : index
    %c0_884 = arith.constant 0 : index
    %c21_885 = arith.constant 21 : index
    %481 = vector.load %arg9[%c0_882, %c0_883, %c0_884, %c21_885] : memref<2x2x4x100xbf16, #tpu.memory_space<vmem>>, vector<1x1x4x78xbf16>
    %482 = vector.shape_cast %481 : vector<1x1x4x78xbf16> to vector<4x78xbf16>
    %c88_886 = arith.constant 88 : index
    %c0_887 = arith.constant 0 : index
    %483 = vector.load %arg10[%c88_886, %c0_887] : memref<100x78xbf16, #tpu.memory_space<vmem>>, vector<4x78xbf16>
    tpu.vector_store %arg10[%c88_886, %c0_887], %482 {strides = array<i32>} : memref<100x78xbf16, #tpu.memory_space<vmem>>, vector<4x78xbf16>,
    %c0_888 = arith.constant 0 : index
    %c1_889 = arith.constant 1 : index
    %c0_890 = arith.constant 0 : index
    %c21_891 = arith.constant 21 : index
    %484 = vector.load %arg9[%c0_888, %c1_889, %c0_890, %c21_891] : memref<2x2x4x100xbf16, #tpu.memory_space<vmem>>, vector<1x1x4x78xbf16>
    %485 = vector.shape_cast %484 : vector<1x1x4x78xbf16> to vector<4x78xbf16>
    %c92_892 = arith.constant 92 : index
    %c0_893 = arith.constant 0 : index
    %486 = vector.load %arg10[%c92_892, %c0_893] : memref<100x78xbf16, #tpu.memory_space<vmem>>, vector<4x78xbf16>
    tpu.vector_store %arg10[%c92_892, %c0_893], %485 {strides = array<i32>} : memref<100x78xbf16, #tpu.memory_space<vmem>>, vector<4x78xbf16>,
    %c0_894 = arith.constant 0 : index
    %c0_895 = arith.constant 0 : index
    %c0_896 = arith.constant 0 : index
    %c22_897 = arith.constant 22 : index
    %487 = vector.load %arg9[%c0_894, %c0_895, %c0_896, %c22_897] : memref<2x2x4x100xbf16, #tpu.memory_space<vmem>>, vector<1x1x4x78xbf16>
    %488 = vector.shape_cast %487 : vector<1x1x4x78xbf16> to vector<4x78xbf16>
    %c96_898 = arith.constant 96 : index
    %c0_899 = arith.constant 0 : index
    %489 = vector.load %arg10[%c96_898, %c0_899] : memref<100x78xbf16, #tpu.memory_space<vmem>>, vector<4x78xbf16>
    tpu.vector_store %arg10[%c96_898, %c0_899], %488 {strides = array<i32>} : memref<100x78xbf16, #tpu.memory_space<vmem>>, vector<4x78xbf16>,
    %c0_900 = arith.constant 0 : index
    %c0_901 = arith.constant 0 : index
    %490 = vector.load %arg3[%c0_900, %c0_901] : memref<8x100xbf16, #tpu.memory_space<vmem>>, vector<8x100xbf16>
    %c0_902 = arith.constant 0 : index
    %c0_903 = arith.constant 0 : index
    %491 = vector.load %arg10[%c0_902, %c0_903] : memref<100x78xbf16, #tpu.memory_space<vmem>>, vector<100x78xbf16>
    %cst_904 = arith.constant dense<0.000000e+00> : vector<8x78xf32>
    %492 = tpu.matmul %490, %491, %cst_904 {dimension_numbers = #tpu.dot_dimension_numbers<[1], [0], [0], [1], [0, 0, 1, 1], [], []>} : vector<8x100xbf16>, vector<100x78xbf16>, vector<8x78xf32> -> vector<8x78xf32>
    %c0_905 = arith.constant 0 : index
    %c0_906 = arith.constant 0 : index
    %493 = vector.load %arg5[%c0_905, %c0_906] : memref<8x1xf32, #tpu.memory_space<vmem>>, vector<8x1xf32>
    %494 = vector.broadcast %493 : vector<8x1xf32> to vector<8x78xf32>
    %495 = arith.addf %492, %494 : vector<8x78xf32>
    %496 = vector.broadcast %20 : vector<1x78xf32> to vector<8x78xf32>
    %497 = arith.mulf %495, %496 : vector<8x78xf32>
    %cst_907 = arith.constant dense<0.000000e+00> : vector<8xf32>
    %498 = vector.multi_reduction <add>, %497, %cst_907 [1] : vector<8x78xf32> to vector<8xf32>
    %499 = vector.shape_cast %498 : vector<8xf32> to vector<8x1xf32>
    %cst_908 = arith.constant 1.562500e-02 : f32
    %500 = vector.broadcast %cst_908 : f32 to vector<8x1xf32>
    %501 = arith.mulf %499, %500 : vector<8x1xf32>
    %502 = vector.broadcast %501 : vector<8x1xf32> to vector<8x78xf32>
    %503 = arith.subf %495, %502 : vector<8x78xf32>
    %504 = vector.broadcast %20 : vector<1x78xf32> to vector<8x78xf32>
    %505 = arith.mulf %503, %504 : vector<8x78xf32>
    %506 = arith.mulf %505, %505 : vector<8x78xf32>
    %cst_909 = arith.constant dense<0.000000e+00> : vector<8xf32>
    %507 = vector.multi_reduction <add>, %506, %cst_909 [1] : vector<8x78xf32> to vector<8xf32>
    %508 = vector.shape_cast %507 : vector<8xf32> to vector<8x1xf32>
    %cst_910 = arith.constant 1.562500e-02 : f32
    %509 = vector.broadcast %cst_910 : f32 to vector<8x1xf32>
    %510 = arith.mulf %508, %509 : vector<8x1xf32>
    %cst_911 = arith.constant 9.99999974E-6 : f32
    %511 = vector.broadcast %cst_911 : f32 to vector<8x1xf32>
    %512 = arith.addf %510, %511 : vector<8x1xf32>
    %513 = math.rsqrt %512 : vector<8x1xf32>
    %c0_912 = arith.constant 0 : index
    %c0_913 = arith.constant 0 : index
    %514 = vector.load %arg6[%c0_912, %c0_913] : memref<8x1xf32, #tpu.memory_space<vmem>>, vector<8x1xf32>
    %515 = arith.mulf %513, %514 : vector<8x1xf32>
    %c0_914 = arith.constant 0 : index
    %c0_915 = arith.constant 0 : index
    %516 = vector.load %arg7[%c0_914, %c0_915] : memref<8x1xf32, #tpu.memory_space<vmem>>, vector<8x1xf32>
    %517 = arith.mulf %501, %515 : vector<8x1xf32>
    %518 = arith.subf %516, %517 : vector<8x1xf32>
    %519 = vector.broadcast %515 : vector<8x1xf32> to vector<8x78xf32>
    %520 = arith.mulf %495, %519 : vector<8x78xf32>
    %521 = vector.broadcast %518 : vector<8x1xf32> to vector<8x78xf32>
    %522 = arith.addf %520, %521 : vector<8x78xf32>
    %cst_916 = arith.constant 0.000000e+00 : f32
    %523 = vector.broadcast %cst_916 : f32 to vector<8x78xf32>
    %524 = arith.cmpf oge, %522, %523 : vector<8x78xf32>
    %cst_917 = arith.constant 1.000000e-01 : f32
    %525 = vector.broadcast %cst_917 : f32 to vector<8x78xf32>
    %526 = arith.mulf %525, %522 : vector<8x78xf32>
    %527 = arith.select %524, %522, %526 : vector<8x78xi1>, vector<8x78xf32>
    %c0_918 = arith.constant 0 : index
    %c0_919 = arith.constant 0 : index
    %c0_920 = arith.constant 0 : index
    %528 = vector.load %arg8[%c0_918, %c0_919, %c0_920] : memref<1x8x78xf32, #tpu.memory_space<vmem>>, vector<1x8x78xf32>
    %529 = vector.shape_cast %528 : vector<1x8x78xf32> to vector<8x78xf32>
    %530 = vector.shape_cast %527 : vector<8x78xf32> to vector<1x8x78xf32>
    tpu.vector_store %arg8[%c0_918, %c0_919, %c0_920], %530 {strides = array<i32>} : memref<1x8x78xf32, #tpu.memory_space<vmem>>, vector<1x8x78xf32>,
    return
  }
  func.func @transform_0(%arg0: i32) -> (i32, i32, i32, i32, i32) {
    %c0_i32 = arith.constant 0 : i32
    %c0_i32_0 = arith.constant 0 : i32
    %c0_i32_1 = arith.constant 0 : i32
    %c0_i32_2 = arith.constant 0 : i32
    %c0_i32_3 = arith.constant 0 : i32
    return %arg0, %c0_i32, %c0_i32_0, %c0_i32_1, %c0_i32_2 : i32, i32, i32, i32, i32
  }
  func.func @transform_1(%arg0: i32) -> (i32, i32) {
    %c0_i32 = arith.constant 0 : i32
    %c0_i32_0 = arith.constant 0 : i32
    %c0_i32_1 = arith.constant 0 : i32
    return %c0_i32, %c0_i32_0 : i32, i32
  }
  func.func @transform_2(%arg0: i32) -> (i32, i32) {
    %c0_i32 = arith.constant 0 : i32
    %c0_i32_0 = arith.constant 0 : i32
    %c0_i32_1 = arith.constant 0 : i32
    return %c0_i32, %c0_i32_0 : i32, i32
  }
  func.func @transform_3(%arg0: i32) -> (i32, i32) {
    %c0_i32 = arith.constant 0 : i32
    %c0_i32_0 = arith.constant 0 : i32
    %c0_i32_1 = arith.constant 0 : i32
    return %c0_i32, %c0_i32_0 : i32, i32
  }
  func.func @transform_4(%arg0: i32) -> (i32, i32) {
    %c0_i32 = arith.constant 0 : i32
    %c0_i32_0 = arith.constant 0 : i32
    %c0_i32_1 = arith.constant 0 : i32
    return %c0_i32, %c0_i32_0 : i32, i32
  }
  func.func @transform_5(%arg0: i32) -> (i32, i32) {
    %c0_i32 = arith.constant 0 : i32
    %c0_i32_0 = arith.constant 0 : i32
    %c0_i32_1 = arith.constant 0 : i32
    return %c0_i32, %c0_i32_0 : i32, i32
  }
  func.func @transform_6(%arg0: i32) -> (i32, i32) {
    %c0_i32 = arith.constant 0 : i32
    %c0_i32_0 = arith.constant 0 : i32
    %c0_i32_1 = arith.constant 0 : i32
    return %c0_i32, %c0_i32_0 : i32, i32
  }
  func.func @transform_7(%arg0: i32) -> (i32, i32, i32) {
    %c0_i32 = arith.constant 0 : i32
    %c0_i32_0 = arith.constant 0 : i32
    %c0_i32_1 = arith.constant 0 : i32
    return %arg0, %c0_i32, %c0_i32_0 : i32, i32, i32
  }
}

</mosaic_0001>

<bundles_post_ra>
// kernel: downsample_block.1
= control target key start
LH: loop header
LB: loop body
LE: loop exit
PB: predicated region body
PF: predicated region fallthrough
CT: control target
= control target key end

     0   :  { %s3064_s24 = smov 0   ;;  %s3633_s0 = inlined_call_operand.vmem [shape: bf16[2,2,2,4,100], index: 0, kind: input, shape index: {}]   ;;  %s3634_s1 = inlined_call_operand.vmem [shape: bf16[4,100], index: 1, kind: input, shape index: {}]   ;;  %s3635_s2 = inlined_call_operand.vmem [shape: bf16[8,100], index: 2, kind: input, shape index: {}]   ;;  %s3636_s3 = inlined_call_operand.vmem [shape: f32[4,1], index: 3, kind: input, shape index: {}]   ;;  %s3637_s4 = inlined_call_operand.vmem [shape: f32[8,1], index: 4, kind: input, shape index: {}]   ;;  %s3638_s5 = inlined_call_operand.vmem [shape: f32[8,1], index: 5, kind: input, shape index: {}]   ;;  %s3639_s6 = inlined_call_operand.vmem [shape: f32[8,1], index: 6, kind: input, shape index: {}]   ;;  %s3640_s7 = inlined_call_operand.vmem [shape: f32[2,8,78], index: 7, kind: output, shape index: {}]  }
   0x1 LB: > { %s2568_s25 = sadd.s32 4294967295, %s3009_s24   ;;  %p2572_p0 = scmp.ge.s32.totalorder %s3009_s24, 1  ;;  %s3009_s24 = sphi %s3064_s24, %s17_s24  }
   0x2   : > { %p237_p1 = scmp.lt.s32.totalorder %s3009_s24, 3 }
   0x4   : > { %p238_p2 = pnand %p2572_p0, %p237_p1 }
   0x5   : > { %p268_p3 = scmp.lt.s32.totalorder (!%p238_p2), %s2568_s25, 1  ;;  %v278_v0 = vlaneseq (!%p238_p2)  ;;  %v3011_v1 = vmov (!%p238_p2), 1983009808   ;;  %s3012_s30 = smov (!%p238_p2), 126   ;;  %v3014_v15 = vmov (!%p238_p2), 0.0   ;;  %vm302_vm0 = vcmask (!%p238_p2), 631808  }
   0x6   : > { %241 = sbr.rel (%p238_p2) target bundleno = 1479 (0x5c7), region = 48  ;;  %v309_v2 = vunpack.c.l.s4 (!%p238_p2), %v3011_v1  ;;  %s3013_s8 = smov (!%p238_p2), 127   ;;  %2793 = vmatprep.subr.bf16.mxu0 (!%p238_p2), %v3014_v15  ;;  %2811 = vmatprep.subr.bf16.mxu1 (!%p238_p2), %v3014_v15  ;;  %vm316_vm1 = vcmask (!%p238_p2), 633858   ;;  %vm3021_vm2 = vmmov (!%p238_p2), 0   ;;  %vm678_vm3 = vcmask (!%p238_p2), 1041408  }
   0x7   : > { %v312_v3 = vshrl.u32 (!%p238_p2), %v278_v0, 7  ;;  %s3015_s9 = smov (!%p238_p2), 118   ;;  %s3016_s10 = smov (!%p238_p2), 117   ;;  %2807 = vmatprep.mubr.msk.bf16.mxu0 (!%p238_p2), %vm3021_vm2, %v3014_v15  ;;  %2825 = vmatprep.mubr.msk.bf16.mxu1 (!%p238_p2), %vm3021_vm2, %v3014_v15  ;;  %vm674_vm4 = vcmask (!%p238_p2), 818176   ;;  %vm727_vm8 = vcmask (!%p238_p2), 82944   ;;  %vm729_vm9 = vcmask (!%p238_p2), 812744  }
   0x8   : > { %v310_v4 = vunpack.c.0.s8 (!%p238_p2), %v309_v2  ;;  %s3017_s11 = smov (!%p238_p2), 116   ;;  %s3018_s12 = smov (!%p238_p2), 108   ;;  %vm742_vm15 = vcmask (!%p238_p2), 722008  }
   0x9   : > { %s3019_s13 = smov (!%p238_p2), 107   ;;  %s3020_s14 = smov (!%p238_p2), 106  }
   0xa   : > { %v3083_v5 = vsub.s32 (!%p238_p2), %v310_v4, %v312_v3  ;;  %s3023_s19 = smov (!%p238_p2), 11  }
   0xd   : > { %s3642_s25 = smov (!%p268_p3, %s2568_s25), 1 }
   0xe   : > { %s2752_s26 = sshll.u32 %s3642_s25, 3 }
   0xf   : > { %s3081_s29 = scalar_lea.vmem %s3633_s0, %s2752_s26 }
  0x10   : > { %v3086_v6 = vld.sshfl [vmem:[%s3081_s29] sm:$0x3 pattern:$0x76325410]  ;;  %v2582_v38 = vld [vmem:[%s3081_s29 + $0x6] sm:$0x3] }
  0x11   : > { %354 = vrot.lane.b32.xlu1 %v3086_v6, %s3012_s30  ;;  %327 = vrot.lane.b32.xlu0 %v3086_v6, %s3013_s8  ;;  %v2908_v7 = vld [vmem:[%s3081_s29 + $0x4] ss:$0 sps:$4 sm:$0x33]   ;;  %v2910_v11 = vld [vmem:[%s3081_s29 + $0x2] ss:$0 sps:$4 sm:$0x33]  }
  0x12   : > { %v3094_v8 = vld.sshfl [vmem:[%s3081_s29 + $0x6] sm:$0x3 pattern:$0x76325410]  ;;  %v383_v9 = vrot.slane %v2908_v7, %v3083_v5  ;;  %v340_v13 = vrot.slane %v2910_v11, %v3083_v5  ;;  %v301_v32 = vld [vmem:[%s3081_s29] sm:$0x3] }
  0x13   : > { %v2909_v10 = vld [vmem:[%s3081_s29 + $0x4] ss:$0 sps:$4 sm:$0x33]   ;;  %v2911_v14 = vld [vmem:[%s3081_s29 + $0x2] ss:$0 sps:$4 sm:$0x33]  }
  0x14   : > { %v410_v12 = vrot.slane %v2909_v10, %v3083_v5  ;;  %v437_v16 = vrot.slane %v2911_v14, %v3083_v5  ;;  %v2912_v17 = vld [vmem:[%s3081_s29] ss:$0 sps:$4 sm:$0x33]   ;;  %v2914_v22 = vld [vmem:[%s3081_s29 + $0x2] ss:$0 sps:$4 sm:$0x33]  }
  0x15   : > { %384 = vrot.lane.b32.xlu1 %v383_v9, %s3013_s8  ;;  %397 = vrot.lane.b32.xlu0 %v3094_v8, %s3013_s8  ;;  %v755_v18 = vrot.slane %v2912_v17, %v3083_v5  ;;  %v2913_v19 = vld [vmem:[%s3081_s29] ss:$0 sps:$4 sm:$0x33]   ;;  %v464_v23 = vrot.slane %v2914_v22, %v3083_v5  ;;  %v2915_v24 = vld [vmem:[%s3081_s29 + $0x4] ss:$0 sps:$4 sm:$0x33]  }
  0x16   : > { %v3117_v20 = vld.sshfl [vmem:[%s3081_s29 + $0x2] sm:$0x3 pattern:$0x76325410]  ;;  %v782_v21 = vrot.slane %v2913_v19, %v3083_v5  ;;  %v491_v25 = vrot.slane %v2915_v24, %v3083_v5  ;;  %303 = vst.msk [vmem:[#allocation3] sm:$0x3] %vm302_vm0, %v301_v32 }
  0x17   : > { %v2916_v26 = vld [vmem:[%s3081_s29 + $0x6] ss:$0 sps:$4 sm:$0x33]   ;;  %v2917_v28 = vld [vmem:[%s3081_s29 + $0x4] ss:$0 sps:$4 sm:$0x33]  }
  0x18   : > { %v834_v27 = vrot.slane %v2916_v26, %v3083_v5  ;;  %v3140_v29 = vld.sshfl [vmem:[%s3081_s29 + $0x4] sm:$0x3 pattern:$0x76325410]  ;;  %v518_v30 = vrot.slane %v2917_v28, %v3083_v5  ;;  %373 = vst.msk [vmem:[#allocation3 + $0xc] sm:$0x3] %vm302_vm0, %v2582_v38 }
  0x19   : > { %411 = vrot.lane.b32.xlu1 %v410_v12, %s3012_s30  ;;  %341 = vrot.lane.b32.xlu0 %v340_v13, %s3013_s8  ;;  %v2918_v31 = vld [vmem:[%s3081_s29 + $0x4] ss:$0 sps:$4 sm:$0x33]   ;;  %v2941_v33 = vld [vmem:[%s3081_s29 + $0x2] ss:$0 sps:$4 sm:$0x33]  }
  0x1a   : > { %v545_v34 = vrot.slane %v2918_v31, %v3083_v5  ;;  %v2919_v35 = vld [vmem:[%s3081_s29 + $0x6] ss:$0 sps:$4 sm:$0x33]   ;;  %v314_v36 = vrot.slane %v2941_v33, %v3083_v5  ;;  %v2944_v37 = vld [vmem:[%s3081_s29 + $0x4] ss:$0 sps:$4 sm:$0x33]  }
  0x1b   : > { %v861_v39 = vrot.slane %v2919_v35, %v3083_v5  ;;  %v2920_v40 = vld [vmem:[%s3081_s29] ss:$0 sps:$4 sm:$0x33]   ;;  %v368_v41 = vrot.slane %v2944_v37, %v3083_v5  ;;  %v2921_v42 = vld [vmem:[%s3081_s29 + $0x2] ss:$0 sps:$4 sm:$0x33]  }
  0x1c   : > { %317 = vst.msk [vmem:[#allocation3] sm:$0xc] %vm316_vm1, %v314_v36  ;;  %v888_v43 = vrot.slane %v2920_v40, %v3083_v5  ;;  %v2612_v44 = vld [vmem:[%s3081_s29 + $0x2] sm:$0x3]  ;;  %v572_v46 = vrot.slane %v2921_v42, %v3083_v5 }
  0x1d   : > { %438 = vrot.lane.b32.xlu1 %v437_v16, %s3015_s9  ;;  %424 = vrot.lane.b32.xlu0 %v3086_v6, %s3015_s9  ;;  %370 = vst.msk [vmem:[#allocation3 + $0x8] sm:$0xc] %vm316_vm1, %v368_v41  ;;  %v2922_v47 = vld [vmem:[%s3081_s29 + $0x2] ss:$0 sps:$4 sm:$0x33]  }
  0x1e   : > { %v599_v48 = vrot.slane %v2922_v47, %v3083_v5  ;;  %v2923_v49 = vld [vmem:[%s3081_s29] ss:$0 sps:$4 sm:$0x33]   ;;  %v2924_v51 = vld [vmem:[%s3081_s29 + $0x6] ss:$0 sps:$4 sm:$0x33]  }
  0x1f   : > { %v915_v50 = vrot.slane %v2923_v49, %v3083_v5  ;;  %v942_v52 = vrot.slane %v2924_v51, %v3083_v5  ;;  %v2925_v53 = vld [vmem:[%s3081_s29 + $0x6] ss:$0 sps:$4 sm:$0x33]   ;;  %v2927_v57 = vld [vmem:[%s3081_s29] ss:$0 sps:$4 sm:$0x33]  }
  0x20   : > { %v969_v54 = vrot.slane %v2925_v53, %v3083_v5  ;;  %v2926_v55 = vld [vmem:[%s3081_s29 + $0x6] ss:$0 sps:$4 sm:$0x33]   ;;  %v1023_v58 = vrot.slane %v2927_v57, %v3083_v5  ;;  %v2928_v59 = vld [vmem:[%s3081_s29] ss:$0 sps:$4 sm:$0x33]  }
  0x21   : > { %769 = vrot.lane.b32.xlu1 %v3117_v20, %s3013_s8  ;;  %756 = vrot.lane.b32.xlu0 %v755_v18, %s3013_s8  ;;  %v996_v56 = vrot.slane %v2926_v55, %v3083_v5  ;;  %v1050_v60 = vrot.slane %v2928_v59, %v3083_v5  ;;  %v2929_v61 = vld [vmem:[%s3081_s29 + $0x6] ss:$0 sps:$4 sm:$0x33]   ;;  %v2930_v63 = vld [vmem:[%s3081_s29] ss:$0 sps:$4 sm:$0x33]  }
  0x22   : > { %v1219_v62 = vrot.slane %v2929_v61, %v3083_v5  ;;  %v1246_v1 = vrot.slane %v2930_v63, %v3083_v5  ;;  %v2931_v2 = vld [vmem:[%s3081_s29] ss:$0 sps:$4 sm:$0x33]   ;;  %v2933_v9 = vld [vmem:[%s3081_s29 + $0x6] ss:$0 sps:$4 sm:$0x33]  }
  0x23   : > { %v3173_v45 = vld [vmem:[#allocation3] sm:$0xf]  ;;  %v1273_v3 = vrot.slane %v2931_v2, %v3083_v5  ;;  %v2932_v4 = vld [vmem:[%s3081_s29] ss:$0 sps:$4 sm:$0x33]   ;;  %v1327_v10 = vrot.slane %v2933_v9, %v3083_v5 }
  0x24   : > { %745 = vst.msk [vmem:[#allocation3] sm:$0x3] %vm302_vm0, %v2612_v44  ;;  %v1300_v7 = vrot.slane %v2932_v4, %v3083_v5  ;;  %v2934_v11 = vld [vmem:[%s3081_s29 + $0x4] ss:$0 sps:$4 sm:$0x33]  }
  0x25   : > { %451 = vrot.lane.b32.xlu1 %v3086_v6, %s3016_s10  ;;  %783 = vrot.lane.b32.xlu0 %v782_v21, %s3012_s30  ;;  %v1633_v12 = vrot.slane %v2934_v11, %v3083_v5  ;;  %v2935_v13 = vld [vmem:[%s3081_s29 + $0x4] ss:$0 sps:$4 sm:$0x33]   ;;  %v2936_v16 = vld [vmem:[%s3081_s29 + $0x6] ss:$0 sps:$4 sm:$0x33]  }
  0x26   : > { %v1660_v14 = vrot.slane %v2935_v13, %v3083_v5  ;;  %v1354_v17 = vrot.slane %v2936_v16, %v3083_v5  ;;  %v2937_v18 = vld [vmem:[%s3081_s29] ss:$0 sps:$4 sm:$0x33]   ;;  %v2946_v26 = vld [vmem:[%s3081_s29 + $0x6] ss:$0 sps:$4 sm:$0x33]  }
  0x27   : > { %v1381_v22 = vrot.slane %v2937_v18, %v3083_v5  ;;  %v2939_v28 = vld [vmem:[%s3081_s29 + $0x2] ss:$0 sps:$4 sm:$0x33]   ;;  %v809_v32 = vrot.slane %v2946_v26, %v3083_v5  ;;  %v2651_v51 = vld [vmem:[%s3081_s29 + $0x4] sm:$0x3]  ;;  %v3022_v13 = vmov 0  }
  0x28   : > { %v1714_v33 = vrot.slane %v2939_v28, %v3083_v5  ;;  %v2947_v47 = vld [vmem:[%s3081_s29 + $0x2] ss:$0 sps:$4 sm:$0x33]   ;;  %v2950_v57 = vld [vmem:[%s3081_s29 + $0x6] ss:$0 sps:$4 sm:$0x33]   ;;  %2906 = vset.pattern.permute.xlu1 %v3022_v13  ;;  %2907 = vset.pattern.permute.xlu0 %v3022_v13 }
  0x29   : > { %478 = vrot.lane.b32.xlu1 %v3086_v6, %s3017_s11  ;;  %465 = vrot.lane.b32.xlu0 %v464_v23, %s3016_s10  ;;  %v2938_v23 = vld [vmem:[%s3081_s29 + $0x2] ss:$0 sps:$4 sm:$0x33]   ;;  %v2951_v63 = vld [vmem:[%s3081_s29 + $0x6] ss:$0 sps:$4 sm:$0x33]  }
  0x2a   : > { %v2953_v4 = vld [vmem:[%s3081_s29 + $0x4] ss:$0 sps:$4 sm:$0x33]   ;;  %728 = vst.msk [vmem:[#allocation2] sm:$0x3] %vm727_vm8, %v3022_v13 }
  0x2b   : > { %v1795_v11 = vrot.slane %v2953_v4, %v3083_v5  ;;  %v2959_v28 = vld [vmem:[%s3081_s29 + $0x4] ss:$0 sps:$4 sm:$0x33]   ;;  %1169 = vst.msk [vmem:[#allocation2 + $0x2] sm:$0x3] %vm727_vm8, %v3022_v13 }
  0x2c   : > { %1608 = vst.msk [vmem:[#allocation2 + $0x4] sm:$0x3] %vm727_vm8, %v3022_v13  ;;  %2049 = vst.msk [vmem:[#allocation2 + $0x6] sm:$0x3] %vm727_vm8, %v3022_v13 }
  0x2d   : > { %796 = vrot.lane.b32.xlu1 %v3117_v20, %s3012_s30  ;;  %492 = vrot.lane.b32.xlu0 %v491_v25, %s3015_s9  ;;  %730 = vst.msk [vmem:[#allocation2] sm:$0x3] %vm729_vm9, %v3022_v13  ;;  %1170 = vst.msk [vmem:[#allocation2 + $0x2] sm:$0x3] %vm729_vm9, %v3022_v13 }
  0x2e   : > { %1609 = vst.msk [vmem:[#allocation2 + $0x4] sm:$0x3] %vm729_vm9, %v3022_v13  ;;  %2050 = vst.msk [vmem:[#allocation2 + $0x6] sm:$0x3] %vm729_vm9, %v3022_v13 }
  0x31   : > { %835 = vrot.lane.b32.xlu1 %v834_v27, %s3013_s8  ;;  %821 = vrot.lane.b32.xlu0 %v3140_v29, %s3013_s8  ;;  %v1687_v27 = vrot.slane %v2938_v23, %v3083_v5 }
  0x35   : > { %519 = vrot.lane.b32.xlu1 %v518_v30, %s3016_s10  ;;  %505 = vrot.lane.b32.xlu0 %v3094_v8, %s3015_s9 }
  0x39   : > { %546 = vrot.lane.b32.xlu1 %v545_v34, %s3017_s11  ;;  %532 = vrot.lane.b32.xlu0 %v3094_v8, %s3016_s10  ;;  %v2942_v34 = vld [vmem:[%s3081_s29] ss:$0 sps:$4 sm:$0x33]  }
  0x3a   : > { %v1408_v38 = vrot.slane %v2942_v34, %v3083_v5 }
  0x3d   : > { %862 = vrot.lane.b32.xlu1 %v861_v39, %s3012_s30  ;;  %848 = vrot.lane.b32.xlu0 %v3140_v29, %s3012_s30  ;;  %v2943_v39 = vld [vmem:[%s3081_s29] ss:$0 sps:$4 sm:$0x33]  }
  0x41   : > { %889 = vrot.lane.b32.xlu1 %v888_v43, %s3016_s10  ;;  %875 = vrot.lane.b32.xlu0 %v3117_v20, %s3015_s9  ;;  %v2940_v43 = vld [vmem:[%s3081_s29 + $0x6] ss:$0 sps:$4 sm:$0x33]  }
  0x45   : > { %573 = vrot.lane.b32.xlu1 %v572_v46, %s3018_s12  ;;  %559 = vrot.lane.b32.xlu0 %v3086_v6, %s3018_s12  ;;  %v1435_v46 = vrot.slane %v2943_v39, %v3083_v5 }
  0x49   : > { %600 = vrot.lane.b32.xlu1 %v599_v48, %s3019_s13  ;;  %586 = vrot.lane.b32.xlu0 %v3086_v6, %s3019_s13 }
  0x4d   : > { %916 = vrot.lane.b32.xlu1 %v915_v50, %s3017_s11  ;;  %902 = vrot.lane.b32.xlu0 %v3117_v20, %s3016_s10  ;;  %v1194_v50 = vrot.slane %v2940_v43, %v3083_v5 }
  0x51   : > { %943 = vrot.lane.b32.xlu1 %v942_v52, %s3015_s9  ;;  %929 = vrot.lane.b32.xlu0 %v3117_v20, %s3017_s11 }
  0x55   : > { %956 = vrot.lane.b32.xlu1 %v3140_v29, %s3016_s10  ;;  %613 = vrot.lane.b32.xlu0 %v3086_v6, %s3020_s14 }
  0x59   : > { %983 = vrot.lane.b32.xlu1 %v3140_v29, %s3017_s11  ;;  %970 = vrot.lane.b32.xlu0 %v969_v54, %s3016_s10 }
  0x5d   : > { %1010 = vrot.lane.b32.xlu1 %v3117_v20, %s3018_s12  ;;  %997 = vrot.lane.b32.xlu0 %v996_v56, %s3017_s11 }
  0x61   : > { %1037 = vrot.lane.b32.xlu1 %v3117_v20, %s3019_s13  ;;  %1024 = vrot.lane.b32.xlu0 %v1023_v58, %s3019_s13 }
  0x65   : > { %1206 = vrot.lane.b32.xlu1 %v3140_v29, %s3013_s8  ;;  %1051 = vrot.lane.b32.xlu0 %v1050_v60, %s3020_s14 }
  0x69   : > { %1064 = vrot.lane.b32.xlu1 %v3117_v20, %s3020_s14  ;;  %1220 = vrot.lane.b32.xlu0 %v1219_v62, %s3013_s8  ;;  %v1462_v62 = vrot.slane %v2950_v57, %v3083_v5 }
  0x6d   : > { %1247 = vrot.lane.b32.xlu1 %v1246_v1, %s3015_s9  ;;  %1233 = vrot.lane.b32.xlu0 %v3140_v29, %s3012_s30 }
  0x71   : > { %1274 = vrot.lane.b32.xlu1 %v1273_v3, %s3016_s10  ;;  %1260 = vrot.lane.b32.xlu0 %v3117_v20, %s3015_s9  ;;  %v1489_v3 = vrot.slane %v2951_v63, %v3083_v5 }
  0x75   : > { %1301 = vrot.lane.b32.xlu1 %v1300_v7, %s3017_s11  ;;  %1287 = vrot.lane.b32.xlu0 %v3117_v20, %s3016_s10 }
  0x79   : > { %1328 = vrot.lane.b32.xlu1 %v1327_v10, %s3015_s9  ;;  %1314 = vrot.lane.b32.xlu0 %v3140_v29, %s3015_s9 }
  0x7d   : > { %1647 = vrot.lane.b32.xlu1 %v3094_v8, %s3013_s8  ;;  %1634 = vrot.lane.b32.xlu0 %v1633_v12, %s3013_s8  ;;  %v2955_v12 = vld [vmem:[%s3081_s29 + $0x2] ss:$0 sps:$4 sm:$0x33]  }
  0x7e   : > { %v1822_v18 = vrot.slane %v2955_v12, %v3083_v5 }
  0x81   : > { %1341 = vrot.lane.b32.xlu1 %v3140_v29, %s3016_s10  ;;  %1661 = vrot.lane.b32.xlu0 %v1660_v14, %s3012_s30 }
  0x83   : > { %v355_v19 = vpop.permute.xlu1 %354  ;;  %v328_v21 = vpop.permute.xlu0 %327 }
  0x84   : > { %357 = vst.msk [vmem:[#allocation3 + $0x8] sm:$0x3] %vm302_vm0, %v355_v19  ;;  %330 = vst.msk [vmem:[#allocation3 + $0x4] sm:$0x3] %vm302_vm0, %v328_v21 }
  0x85   : > { %1368 = vrot.lane.b32.xlu1 %v3140_v29, %s3017_s11  ;;  %1355 = vrot.lane.b32.xlu0 %v1354_v17, %s3016_s10  ;;  %v2956_v19 = vld [vmem:[%s3081_s29 + $0x2] ss:$0 sps:$4 sm:$0x33]  }
  0x86   : > { %v1849_v23 = vrot.slane %v2956_v19, %v3083_v5 }
  0x87   : > { %v385_v24 = vpop.permute.xlu1 %384  ;;  %v398_v25 = vpop.permute.xlu0 %397 }
  0x88   : > { %387 = vst.msk [vmem:[#allocation3 + $0xc] sm:$0xc] %vm316_vm1, %v385_v24  ;;  %v2958_v24 = vld [vmem:[%s3081_s29 + $0x2] ss:$0 sps:$4 sm:$0x33]  }
  0x89   : > { %400 = vst.msk [vmem:[#allocation3 + $0x10] sm:$0x3] %vm302_vm0, %v398_v25  ;;  %1674 = vrot.lane.b32.xlu1 %v3094_v8, %s3012_s30  ;;  %1382 = vrot.lane.b32.xlu0 %v1381_v22, %s3018_s12 }
  0x8b   : > { %v412_v30 = vpop.permute.xlu1 %411  ;;  %v342_v31 = vpop.permute.xlu0 %341 }
  0x8c   : > { %414 = vst.msk [vmem:[#allocation3 + $0x10] sm:$0xc] %vm316_vm1, %v412_v30  ;;  %344 = vst.msk [vmem:[#allocation3 + $0x4] sm:$0xc] %vm316_vm1, %v342_v31 }
  0x8d   : > { %1701 = vrot.lane.b32.xlu1 %v3086_v6, %s3016_s10  ;;  %1688 = vrot.lane.b32.xlu0 %v1687_v27, %s3015_s9 }
  0x8f   : > { %v439_v35 = vpop.permute.xlu1 %438  ;;  %v425_v36 = vpop.permute.xlu0 %424  ;;  %v2945_v37 = vld [vmem:[#allocation3 + $0x8] sm:$0xff]  }
  0x90   : > { %441 = vst.msk [vmem:[#allocation3 + $0x14] sm:$0xc] %vm316_vm1, %v439_v35  ;;  %811 = vst.msk [vmem:[#allocation3 + $0x8] sm:$0xc] %vm316_vm1, %v809_v32  ;;  %v1903_v32 = vrot.slane %v2959_v28, %v3083_v5 }
  0x91   : > { %427 = vst.msk [vmem:[#allocation3 + $0x14] sm:$0x3] %vm302_vm0, %v425_v36  ;;  %1395 = vrot.lane.b32.xlu1 %v3117_v20, %s3018_s12  ;;  %1715 = vrot.lane.b32.xlu0 %v1714_v33, %s3016_s10  ;;  %v2961_v33 = vld [vmem:[%s3081_s29 + $0x4] ss:$0 sps:$4 sm:$0x33]  }
  0x93   : > { %v770_v40 = vpop.permute.xlu1 %769  ;;  %v618_v41 = vld [vmem:[#allocation3 + $0x4] sm:$0xf]  ;;  %v757_v42 = vpop.permute.xlu0 %756 }
  0x94   : > { %772 = vst.msk [vmem:[#allocation3 + $0x4] sm:$0x3] %vm302_vm0, %v770_v40  ;;  %v2604_v44 = vcombine.low %v3173_v45, %v618_v41  ;;  %v2949_v45 = vld [vmem:[%s3081_s29 + $0x4] ss:$0 sps:$4 sm:$0x33]  }
  0x95   : > { %759 = vst.msk [vmem:[#allocation3] sm:$0xc] %vm316_vm1, %v757_v42  ;;  %1422 = vrot.lane.b32.xlu1 %v3117_v20, %s3019_s13  ;;  %1409 = vrot.lane.b32.xlu0 %v1408_v38, %s3019_s13  ;;  %v1741_v20 = vrot.slane %v2947_v47, %v3083_v5  ;;  %v1768_v56 = vrot.slane %v2949_v45, %v3083_v5  ;;  %v300_v42 = vld [vmem:[%s3636_s3] sm:$0xf] }
  0x96   : > { %2794 = vmatpush3.bf16.msra.mxu0 %v2604_v44  ;;  %v3411_v45 = vld [vmem:[%s3634_s1] sm:$0x3] }
  0x97   : > { %v452_v48 = vpop.permute.xlu1 %451  ;;  %v784_v49 = vpop.permute.xlu0 %783  ;;  %2795 = vmatprep.subr.bf16.mxu0 %v3014_v15 }
  0x98   : > { %454 = vst.msk [vmem:[#allocation3 + $0x18] sm:$0x3] %vm302_vm0, %v452_v48  ;;  %v2948_v55 = vld [vmem:[#allocation3 + $0x10] sm:$0xff]  }
  0x99   : > { %786 = vst.msk [vmem:[#allocation3 + $0x4] sm:$0xc] %vm316_vm1, %v784_v49  ;;  %1728 = vrot.lane.b32.xlu1 %v3086_v6, %s3017_s11  ;;  %1436 = vrot.lane.b32.xlu0 %v1435_v46, %s3020_s14 }
  0x9a   : > { %2796 = vmatpush3.bf16.msra.mxu0 %v2945_v37  ;;  %v1930_v37 = vrot.slane %v2961_v33, %v3083_v5 }
  0x9b   : > { %v479_v53 = vpop.permute.xlu1 %478  ;;  %v466_v54 = vpop.permute.xlu0 %465  ;;  %2797 = vmatprep.subr.bf16.mxu0 %v3014_v15 }
  0x9c   : > { %v1068_v52 = vld [vmem:[#allocation3] sm:$0xf]  ;;  %481 = vst.msk [vmem:[#allocation3 + $0x1c] sm:$0x3] %vm302_vm0, %v479_v53 }
  0x9d   : > { %1196 = vst.msk [vmem:[#allocation3] sm:$0xc] %vm316_vm1, %v1194_v50  ;;  %468 = vst.msk [vmem:[#allocation3 + $0x18] sm:$0xc] %vm316_vm1, %v466_v54  ;;  %1755 = vrot.lane.b32.xlu1 %v3094_v8, %s3015_s9  ;;  %1742 = vrot.lane.b32.xlu0 %v1741_v20, %s3017_s11 }
  0x9e   : > { %1184 = vst.msk [vmem:[#allocation3] sm:$0x3] %vm302_vm0, %v2651_v51  ;;  %2798 = vmatpush3.bf16.msra.mxu0 %v2948_v55 }
  0x9f   : > { %v797_v58 = vpop.permute.xlu1 %796  ;;  %v493_v59 = vpop.permute.xlu0 %492  ;;  %2799 = vmatprep.subr.bf16.mxu0 %v3014_v15 }
  0xa0   : > { %v1069_v60 = vld [vmem:[#allocation3 + $0x4] sm:$0xf]  ;;  %799 = vst.msk [vmem:[#allocation3 + $0x8] sm:$0x3] %vm302_vm0, %v797_v58 }
  0xa1   : > { %495 = vst.msk [vmem:[#allocation3 + $0x1c] sm:$0xc] %vm316_vm1, %v493_v59  ;;  %v2643_v61 = vcombine.low %v1068_v52, %v1069_v60  ;;  %1449 = vrot.lane.b32.xlu1 %v3140_v29, %s3018_s12  ;;  %1769 = vrot.lane.b32.xlu0 %v1768_v56, %s3016_s10 }
  0xa3   : > { %2812 = vmatpush3.bf16.msra.mxu1 %v2643_v61  ;;  %v836_v1 = vpop.permute.xlu1 %835  ;;  %v822_v2 = vpop.permute.xlu0 %821  ;;  %v2690_v61 = vld [vmem:[%s3081_s29 + $0x6] sm:$0x3] }
  0xa4   : > { %2813 = vmatprep.subr.bf16.mxu1 %v3014_v15  ;;  %838 = vst.msk [vmem:[#allocation3 + $0xc] sm:$0xc] %vm316_vm1, %v836_v1 }
  0xa5   : > { %824 = vst.msk [vmem:[#allocation3 + $0xc] sm:$0x3] %vm302_vm0, %v822_v2  ;;  %1476 = vrot.lane.b32.xlu1 %v3140_v29, %s3019_s13  ;;  %1463 = vrot.lane.b32.xlu0 %v1462_v62, %s3018_s12 }
  0xa7   : > { %v520_v7 = vpop.permute.xlu1 %519  ;;  %v506_v9 = vpop.permute.xlu0 %505 }
  0xa8   : > { %v2952_v10 = vld [vmem:[#allocation3 + $0x18] sm:$0xff]   ;;  %522 = vst.msk [vmem:[#allocation3 + $0x20] sm:$0xc] %vm316_vm1, %v520_v7 }
  0xa9   : > { %508 = vst.msk [vmem:[#allocation3 + $0x20] sm:$0x3] %vm302_vm0, %v506_v9  ;;  %1782 = vrot.lane.b32.xlu1 %v3094_v8, %s3016_s10  ;;  %1490 = vrot.lane.b32.xlu0 %v1489_v3, %s3019_s13 }
  0xaa   : > { %2800 = vmatpush3.bf16.msra.mxu0 %v2952_v10 }
  0xab   : > { %v547_v14 = vpop.permute.xlu1 %546  ;;  %v533_v16 = vpop.permute.xlu0 %532  ;;  %2801 = vmatprep.subr.bf16.mxu0 %v3014_v15 }
  0xac   : > { %v2954_v17 = vld [vmem:[#allocation3 + $0x8] sm:$0xff]   ;;  %549 = vst.msk [vmem:[#allocation3 + $0x24] sm:$0xc] %vm316_vm1, %v547_v14 }
  0xad   : > { %535 = vst.msk [vmem:[#allocation3 + $0x24] sm:$0x3] %vm302_vm0, %v533_v16  ;;  %1809 = vrot.lane.b32.xlu1 %v3094_v8, %s3017_s11  ;;  %1796 = vrot.lane.b32.xlu0 %v1795_v11, %s3017_s11 }
  0xae   : > { %2814 = vmatpush3.bf16.msra.mxu1 %v2954_v17 }
  0xaf   : > { %v863_v21 = vpop.permute.xlu1 %862  ;;  %v849_v22 = vpop.permute.xlu0 %848  ;;  %2815 = vmatprep.subr.bf16.mxu1 %v3014_v15 }
  0xb0   : > { %865 = vst.msk [vmem:[#allocation3 + $0x10] sm:$0xc] %vm316_vm1, %v863_v21 }
  0xb1   : > { %851 = vst.msk [vmem:[#allocation3 + $0x10] sm:$0x3] %vm302_vm0, %v849_v22  ;;  %1503 = vrot.lane.b32.xlu1 %v3140_v29, %s3020_s14  ;;  %1823 = vrot.lane.b32.xlu0 %v1822_v18, %s3018_s12  ;;  %v1876_v29 = vrot.slane %v2958_v24, %v3083_v5 }
  0xb3   : > { %v890_v25 = vpop.permute.xlu1 %889  ;;  %v876_v26 = vpop.permute.xlu0 %875 }
  0xb4   : > { %v2957_v27 = vld [vmem:[#allocation3 + $0x20] sm:$0xff]   ;;  %892 = vst.msk [vmem:[#allocation3 + $0x14] sm:$0xc] %vm316_vm1, %v890_v25 }
  0xb5   : > { %878 = vst.msk [vmem:[#allocation3 + $0x14] sm:$0x3] %vm302_vm0, %v876_v26  ;;  %1850 = vrot.lane.b32.xlu1 %v1849_v23, %s3019_s13  ;;  %1836 = vrot.lane.b32.xlu0 %v3086_v6, %s3019_s13 }
  0xb6   : > { %2802 = vmatpush3.bf16.msra.mxu0 %v2957_v27 }
  0xb7   : > { %v574_v30 = vpop.permute.xlu1 %573  ;;  %v560_v31 = vpop.permute.xlu0 %559  ;;  %2803 = vmatprep.subr.bf16.mxu0 %v3014_v15 }
  0xb8   : > { %576 = vst.msk [vmem:[#allocation3 + $0x28] sm:$0xc] %vm316_vm1, %v574_v30 }
  0xb9   : > { %562 = vst.msk [vmem:[#allocation3 + $0x28] sm:$0x3] %vm302_vm0, %v560_v31  ;;  %1877 = vrot.lane.b32.xlu1 %v1876_v29, %s3020_s14  ;;  %1863 = vrot.lane.b32.xlu0 %v3086_v6, %s3020_s14 }
  0xbb   : > { %v601_v34 = vpop.permute.xlu1 %600  ;;  %v587_v35 = vpop.permute.xlu0 %586 }
  0xbc   : > { %v2960_v36 = vld [vmem:[#allocation3 + $0x10] sm:$0xff]   ;;  %603 = vst.msk [vmem:[#allocation3 + $0x2c] sm:$0xc] %vm316_vm1, %v601_v34 }
  0xbd   : > { %589 = vst.msk [vmem:[#allocation3 + $0x2c] sm:$0x3] %vm302_vm0, %v587_v35  ;;  %1904 = vrot.lane.b32.xlu1 %v1903_v32, %s3019_s13  ;;  %1890 = vrot.lane.b32.xlu0 %v3094_v8, %s3018_s12 }
  0xbe   : > { %2816 = vmatpush3.bf16.msra.mxu1 %v2960_v36 }
  0xbf   : > { %v917_v38 = vpop.permute.xlu1 %916  ;;  %v903_v6 = vpop.permute.xlu0 %902  ;;  %2817 = vmatprep.subr.bf16.mxu1 %v3014_v15 }
  0xc0   : > { %919 = vst.msk [vmem:[#allocation3 + $0x18] sm:$0xc] %vm316_vm1, %v917_v38 }
  0xc1   : > { %905 = vst.msk [vmem:[#allocation3 + $0x18] sm:$0x3] %vm302_vm0, %v903_v6  ;;  %1931 = vrot.lane.b32.xlu1 %v1930_v37, %s3020_s14  ;;  %1917 = vrot.lane.b32.xlu0 %v3094_v8, %s3019_s13 }
  0xc3   : > { %v944_v39 = vpop.permute.xlu1 %943  ;;  %v930_v40 = vpop.permute.xlu0 %929 }
  0xc4   : > { %v2962_v41 = vld [vmem:[#allocation3 + $0x28] sm:$0xff]   ;;  %946 = vst.msk [vmem:[#allocation3 + $0x1c] sm:$0xc] %vm316_vm1, %v944_v39 }
  0xc5   : > { %932 = vst.msk [vmem:[#allocation3 + $0x1c] sm:$0x3] %vm302_vm0, %v930_v40  ;;  %1944 = vrot.lane.b32.xlu0 %v3094_v8, %s3020_s14  ;;  %2804 = vmatpush3.bf16.msra.mxu0 %v2962_v41 }
  0xc6   : > { %2805 = vmatprep.subr.bf16.mxu0 %v3014_v15  ;;  %632 = vperm.xlu1 %2906, %v300_v42  }
  0xc7   : > { %v957_v43 = vpop.permute.xlu1 %956  ;;  %v614_v44 = vpop.permute.xlu0 %613 }
  0xc8   : > { %959 = vst.msk [vmem:[#allocation3 + $0x20] sm:$0x3] %vm302_vm0, %v957_v43  ;;  %616 = vst.msk [vmem:[#allocation3 + $0x30] sm:$0x3] %vm302_vm0, %v614_v44 }
  0xcb   : > { %v984_v46 = vpop.permute.xlu1 %983  ;;  %v971_v47 = vpop.permute.xlu0 %970 }
  0xcc   : > { %v2963_v48 = vld [vmem:[#allocation3 + $0x18] sm:$0xff]   ;;  %986 = vst.msk [vmem:[#allocation3 + $0x24] sm:$0x3] %vm302_vm0, %v984_v46 }
  0xcd   : > { %973 = vst.msk [vmem:[#allocation3 + $0x20] sm:$0xc] %vm316_vm1, %v971_v47  ;;  %2818 = vmatpush3.bf16.msra.mxu1 %v2963_v48 }
  0xce   : > { %2819 = vmatprep.subr.bf16.mxu1 %v3014_v15 }
  0xcf   : > { %v1011_v8 = vpop.permute.xlu1 %1010  ;;  %v998_v49 = vpop.permute.xlu0 %997  ;;  %v2964_v50 = vld [vmem:[#allocation3 + $0x30] ss:$0 sps:$4 sm:$0x33]  }
  0xd0   : > { %1013 = vst.msk [vmem:[#allocation3 + $0x28] sm:$0x3] %vm302_vm0, %v1011_v8  ;;  %v680_v20 = vsel %vm678_vm3, %v2964_v50, 0 }
  0xd1   : > { %1000 = vst.msk [vmem:[#allocation3 + $0x24] sm:$0xc] %vm316_vm1, %v998_v49  ;;  %2806 = vmatpush3.bf16.msra.mxu0 %v680_v20 }
  0xd2   : > { %2829 = vmatprep.subr.bf16.mxu0 %v3014_v15 }
  0xd3   : > { %v1038_v51 = vpop.permute.xlu1 %1037  ;;  %v1025_v52 = vpop.permute.xlu0 %1024 }
  0xd4   : > { %1040 = vst.msk [vmem:[#allocation3 + $0x2c] sm:$0x3] %vm302_vm0, %v1038_v51  ;;  %2808 = vmatmul.mubr.msk.bf16.vlgmr.msra.gmra.mrb[0].mxu0 %vm674_vm4, %v3411_v45 }
  0xd5   : > { %1027 = vst.msk [vmem:[#allocation3 + $0x28] sm:$0xc] %vm316_vm1, %v1025_v52  ;;  %2843 = vmatprep.mubr.msk.bf16.mxu0 %vm3021_vm2, %v3014_v15 }
  0xd7   : > { %v1207_v53 = vpop.permute.xlu1 %1206  ;;  %v1052_v54 = vpop.permute.xlu0 %1051 }
  0xd8   : > { %v2965_v55 = vld [vmem:[#allocation3 + $0x20] sm:$0xff]   ;;  %1209 = vst.msk [vmem:[#allocation3 + $0x4] sm:$0x3] %vm302_vm0, %v1207_v53 }
  0xd9   : > { %1054 = vst.msk [vmem:[#allocation3 + $0x2c] sm:$0xc] %vm316_vm1, %v1052_v54  ;;  %2820 = vmatpush3.bf16.msra.mxu1 %v2965_v55 }
  0xda   : > { %2821 = vmatprep.subr.bf16.mxu1 %v3014_v15 }
  0xdb   : > { %v1065_v56 = vpop.permute.xlu1 %1064  ;;  %v1221_v57 = vpop.permute.xlu0 %1220 }
  0xdc   : > { %1067 = vst.msk [vmem:[#allocation3 + $0x30] sm:$0x3] %vm302_vm0, %v1065_v56 }
  0xdd   : > { %1223 = vst.msk [vmem:[#allocation3 + $0x4] sm:$0xc] %vm316_vm1, %v1221_v57 }
  0xdf   : > { %v1248_v58 = vpop.permute.xlu1 %1247  ;;  %v1234_v59 = vpop.permute.xlu0 %1233 }
  0xe0   : > { %v2966_v60 = vld [vmem:[#allocation3 + $0x28] sm:$0xff]   ;;  %1250 = vst.msk [vmem:[#allocation3 + $0x8] sm:$0xc] %vm316_vm1, %v1248_v58 }
  0xe1   : > { %1236 = vst.msk [vmem:[#allocation3 + $0x8] sm:$0x3] %vm302_vm0, %v1234_v59  ;;  %2822 = vmatpush3.bf16.msra.mxu1 %v2966_v60 }
  0xe2   : > { %2823 = vmatprep.subr.bf16.mxu1 %v3014_v15 }
  0xe3   : > { %v1275_v62 = vpop.permute.xlu1 %1274  ;;  %v1261_v63 = vpop.permute.xlu0 %1260  ;;  %v2968_v2 = vld [vmem:[#allocation3 + $0x30] ss:$0 sps:$4 sm:$0x33]  }
  0xe4   : > { %v2967_v1 = vld [vmem:[#allocation3] sm:$0xff]   ;;  %1277 = vst.msk [vmem:[#allocation3 + $0xc] sm:$0xc] %vm316_vm1, %v1275_v62  ;;  %v1121_v3 = vsel %vm678_vm3, %v2968_v2, 0 }
  0xe5   : > { %1263 = vst.msk [vmem:[#allocation3 + $0xc] sm:$0x3] %vm302_vm0, %v1261_v63  ;;  %1623 = vst.msk [vmem:[#allocation3] sm:$0x3] %vm302_vm0, %v2690_v61  ;;  %2830 = vmatpush3.bf16.msra.mxu0 %v2967_v1  ;;  %2824 = vmatpush3.bf16.msra.mxu1 %v1121_v3  ;;  %v279_v1 = vand.u32 127, %v278_v0 }
  0xe6   : > { %2831 = vmatprep.subr.bf16.mxu0 %v3014_v15  ;;  %2847 = vmatprep.subr.bf16.mxu1 %v3014_v15 }
  0xe7   : > { %v1302_v4 = vpop.permute.xlu1 %1301  ;;  %v1288_v7 = vpop.permute.xlu0 %1287  ;;  %v3501_v2 = vmul.u32.u64.low 3435973837, %v279_v1  ;;  %v3502_v3 = vmul.u32.u64.high 3435973837, %v279_v1, %v3501_v2 }
  0xe8   : > { %1304 = vst.msk [vmem:[#allocation3 + $0x10] sm:$0xc] %vm316_vm1, %v1302_v4  ;;  %2826 = vmatmul.mubr.msk.bf16.vlgmr.msra.gmra.mrb[0].mxu1 %vm674_vm4, %v3411_v45 }
  0xe9   : > { %1290 = vst.msk [vmem:[#allocation3 + $0x10] sm:$0x3] %vm302_vm0, %v1288_v7  ;;  %2861 = vmatprep.mubr.msk.bf16.mxu1 %vm3021_vm2, %v3014_v15  ;;  %v286_v4 = vshrl.u32 %v3502_v3, 3 }
  0xeb   : > { %v1329_v9 = vpop.permute.xlu1 %1328  ;;  %v1315_v10 = vpop.permute.xlu0 %1314  ;;  %v287_v7 = vmul.u32 10, %v286_v4 }
  0xec   : > { %v2969_v11 = vld [vmem:[#allocation3 + $0x8] sm:$0xff]   ;;  %1331 = vst.msk [vmem:[#allocation3 + $0x14] sm:$0xc] %vm316_vm1, %v1329_v9 }
  0xed   : > { %1317 = vst.msk [vmem:[#allocation3 + $0x14] sm:$0x3] %vm302_vm0, %v1315_v10  ;;  %2832 = vmatpush3.bf16.msra.mxu0 %v2969_v11  ;;  %v288_v9 = vsub.s32 %v279_v1, %v287_v7 }
  0xee   : > { %2833 = vmatprep.subr.bf16.mxu0 %v3014_v15 }
  0xef   : > { %v1648_v12 = vpop.permute.xlu1 %1647  ;;  %v1635_v14 = vpop.permute.xlu0 %1634  ;;  %vm291_vm5 = vcmp.ne.s32.totalorder %v288_v9, 0  ;;  %vm292_vm6 = vcmp.lt.s32.totalorder %v288_v9, 0  ;;  %v294_v10 = vadd.s32 10, %v288_v9 }
  0xf0   : > { %1650 = vst.msk [vmem:[#allocation3 + $0x4] sm:$0x3] %vm302_vm0, %v1648_v12  ;;  %vm293_vm7 = vmand %vm292_vm6, %vm291_vm5 }
  0xf1   : > { %1637 = vst.msk [vmem:[#allocation3] sm:$0xc] %vm316_vm1, %v1635_v14  ;;  %v295_v11 = vsel %vm293_vm7, %v294_v10, %v288_v9 }
  0xf2   : > { %vm296_vm10 = vcmp.lt.s32.totalorder %v295_v11, 8 }
  0xf3   : > { %v1342_v16 = vpop.permute.xlu1 %1341  ;;  %v1662_v17 = vpop.permute.xlu0 %1661 }
  0xf4   : > { %v2970_v18 = vld [vmem:[#allocation3 + $0x10] sm:$0xff]   ;;  %1344 = vst.msk [vmem:[#allocation3 + $0x18] sm:$0x3] %vm302_vm0, %v1342_v16 }
  0xf5   : > { %1664 = vst.msk [vmem:[#allocation3 + $0x4] sm:$0xc] %vm316_vm1, %v1662_v17  ;;  %2834 = vmatpush3.bf16.msra.mxu0 %v2970_v18  ;;  %v3514_v17 = vsel %vm296_vm10, 1.0, %v3014_v15 }
  0xf6   : > { %2835 = vmatprep.subr.bf16.mxu0 %v3014_v15 }
  0xf7   : > { %v1369_v19 = vpop.permute.xlu1 %1368  ;;  %v1356_v21 = vpop.permute.xlu0 %1355 }
  0xf8   : > { %1371 = vst.msk [vmem:[#allocation3 + $0x1c] sm:$0x3] %vm302_vm0, %v1369_v19 }
  0xf9   : > { %1358 = vst.msk [vmem:[#allocation3 + $0x18] sm:$0xc] %vm316_vm1, %v1356_v21 }
  0xfb   : > { %v1675_v22 = vpop.permute.xlu1 %1674  ;;  %v1383_v23 = vpop.permute.xlu0 %1382 }
  0xfc   : > { %v2971_v24 = vld [vmem:[#allocation3] sm:$0xff]   ;;  %1677 = vst.msk [vmem:[#allocation3 + $0x8] sm:$0x3] %vm302_vm0, %v1675_v22 }
  0xfd   : > { %1385 = vst.msk [vmem:[#allocation3 + $0x1c] sm:$0xc] %vm316_vm1, %v1383_v23  ;;  %2848 = vmatpush3.bf16.msra.mxu1 %v2971_v24 }
  0xfe   : > { %2849 = vmatprep.subr.bf16.mxu1 %v3014_v15 }
  0xff   : > { %v1702_v25 = vpop.permute.xlu1 %1701  ;;  %v1689_v26 = vpop.permute.xlu0 %1688 }
 0x100   : > { %1704 = vst.msk [vmem:[#allocation3 + $0xc] sm:$0x3] %vm302_vm0, %v1702_v25 }
 0x101   : > { %1691 = vst.msk [vmem:[#allocation3 + $0x8] sm:$0xc] %vm316_vm1, %v1689_v26 }
 0x103   : > { %v1396_v27 = vpop.permute.xlu1 %1395  ;;  %v1716_v29 = vpop.permute.xlu0 %1715 }
 0x104   : > { %v2972_v28 = vld [vmem:[#allocation3 + $0x18] sm:$0xff]   ;;  %1398 = vst.msk [vmem:[#allocation3 + $0x20] sm:$0x3] %vm302_vm0, %v1396_v27 }
 0x105   : > { %1718 = vst.msk [vmem:[#allocation3 + $0xc] sm:$0xc] %vm316_vm1, %v1716_v29  ;;  %2836 = vmatpush3.bf16.msra.mxu0 %v2972_v28 }
 0x106   : > { %2837 = vmatprep.subr.bf16.mxu0 %v3014_v15 }
 0x107   : > { %v1423_v30 = vpop.permute.xlu1 %1422  ;;  %v1410_v31 = vpop.permute.xlu0 %1409 }
 0x108   : > { %1425 = vst.msk [vmem:[#allocation3 + $0x24] sm:$0x3] %vm302_vm0, %v1423_v30 }
 0x109   : > { %1412 = vst.msk [vmem:[#allocation3 + $0x20] sm:$0xc] %vm316_vm1, %v1410_v31 }
 0x10b   : > { %v1729_v32 = vpop.permute.xlu1 %1728  ;;  %v1437_v33 = vpop.permute.xlu0 %1436 }
 0x10c   : > { %v2973_v34 = vld [vmem:[#allocation3 + $0x8] sm:$0xff]   ;;  %1731 = vst.msk [vmem:[#allocation3 + $0x10] sm:$0x3] %vm302_vm0, %v1729_v32 }
 0x10d   : > { %1439 = vst.msk [vmem:[#allocation3 + $0x24] sm:$0xc] %vm316_vm1, %v1437_v33  ;;  %2850 = vmatpush3.bf16.msra.mxu1 %v2973_v34 }
 0x10e   : > { %2851 = vmatprep.subr.bf16.mxu1 %v3014_v15 }
 0x10f   : > { %v1756_v35 = vpop.permute.xlu1 %1755  ;;  %v1743_v36 = vpop.permute.xlu0 %1742 }
 0x110   : > { %1758 = vst.msk [vmem:[#allocation3 + $0x14] sm:$0x3] %vm302_vm0, %v1756_v35 }
 0x111   : > { %1745 = vst.msk [vmem:[#allocation3 + $0x10] sm:$0xc] %vm316_vm1, %v1743_v36 }
 0x113   : > { %v1450_v37 = vpop.permute.xlu1 %1449  ;;  %v1770_v38 = vpop.permute.xlu0 %1769 }
 0x114   : > { %v2974_v6 = vld [vmem:[#allocation3 + $0x20] sm:$0xff]   ;;  %1452 = vst.msk [vmem:[#allocation3 + $0x28] sm:$0x3] %vm302_vm0, %v1450_v37 }
 0x115   : > { %1772 = vst.msk [vmem:[#allocation3 + $0x14] sm:$0xc] %vm316_vm1, %v1770_v38  ;;  %2838 = vmatpush3.bf16.msra.mxu0 %v2974_v6 }
 0x116   : > { %2839 = vmatprep.subr.bf16.mxu0 %v3014_v15 }
 0x117   : > { %v1477_v39 = vpop.permute.xlu1 %1476  ;;  %v1464_v40 = vpop.permute.xlu0 %1463 }
 0x118   : > { %1479 = vst.msk [vmem:[#allocation3 + $0x2c] sm:$0x3] %vm302_vm0, %v1477_v39 }
 0x119   : > { %1466 = vst.msk [vmem:[#allocation3 + $0x28] sm:$0xc] %vm316_vm1, %v1464_v40 }
 0x11b   : > { %v1783_v41 = vpop.permute.xlu1 %1782  ;;  %v1491_v42 = vpop.permute.xlu0 %1490 }
 0x11c   : > { %v2975_v43 = vld [vmem:[#allocation3 + $0x10] sm:$0xff]   ;;  %1785 = vst.msk [vmem:[#allocation3 + $0x18] sm:$0x3] %vm302_vm0, %v1783_v41 }
 0x11d   : > { %1493 = vst.msk [vmem:[#allocation3 + $0x2c] sm:$0xc] %vm316_vm1, %v1491_v42  ;;  %2852 = vmatpush3.bf16.msra.mxu1 %v2975_v43 }
 0x11e   : > { %2853 = vmatprep.subr.bf16.mxu1 %v3014_v15 }
 0x11f   : > { %v1810_v44 = vpop.permute.xlu1 %1809  ;;  %v1797_v46 = vpop.permute.xlu0 %1796 }
 0x120   : > { %1812 = vst.msk [vmem:[#allocation3 + $0x1c] sm:$0x3] %vm302_vm0, %v1810_v44 }
 0x121   : > { %1799 = vst.msk [vmem:[#allocation3 + $0x18] sm:$0xc] %vm316_vm1, %v1797_v46 }
 0x123   : > { %v1504_v47 = vpop.permute.xlu1 %1503  ;;  %v1824_v48 = vpop.permute.xlu0 %1823 }
 0x124   : > { %v2976_v8 = vld [vmem:[#allocation3 + $0x28] sm:$0xff]   ;;  %1506 = vst.msk [vmem:[#allocation3 + $0x30] sm:$0x3] %vm302_vm0, %v1504_v47 }
 0x125   : > { %1826 = vst.msk [vmem:[#allocation3 + $0x1c] sm:$0xc] %vm316_vm1, %v1824_v48  ;;  %2840 = vmatpush3.bf16.msra.mxu0 %v2976_v8 }
 0x126   : > { %2841 = vmatprep.subr.bf16.mxu0 %v3014_v15 }
 0x127   : > { %v1851_v49 = vpop.permute.xlu1 %1850  ;;  %v1837_v50 = vpop.permute.xlu0 %1836 }
 0x128   : > { %1853 = vst.msk [vmem:[#allocation3 + $0x20] sm:$0xc] %vm316_vm1, %v1851_v49 }
 0x129   : > { %1839 = vst.msk [vmem:[#allocation3 + $0x20] sm:$0x3] %vm302_vm0, %v1837_v50 }
 0x12b   : > { %v1878_v20 = vpop.permute.xlu1 %1877  ;;  %v1864_v51 = vpop.permute.xlu0 %1863  ;;  %v2978_v53 = vld [vmem:[#allocation3 + $0x30] ss:$0 sps:$4 sm:$0x33]  }
 0x12c   : > { %v2977_v52 = vld [vmem:[#allocation3 + $0x18] sm:$0xff]   ;;  %1880 = vst.msk [vmem:[#allocation3 + $0x24] sm:$0xc] %vm316_vm1, %v1878_v20  ;;  %v1560_v54 = vsel %vm678_vm3, %v2978_v53, 0 }
 0x12d   : > { %1866 = vst.msk [vmem:[#allocation3 + $0x24] sm:$0x3] %vm302_vm0, %v1864_v51  ;;  %2854 = vmatpush3.bf16.msra.mxu1 %v2977_v52  ;;  %2842 = vmatpush3.bf16.msra.mxu0 %v1560_v54 }
 0x12e   : > { %2855 = vmatprep.subr.bf16.mxu1 %v3014_v15  ;;  %2865 = vmatprep.subr.bf16.mxu0 %v3014_v15 }
 0x12f   : > { %v1905_v55 = vpop.permute.xlu1 %1904  ;;  %v1891_v56 = vpop.permute.xlu0 %1890 }
 0x130   : > { %1907 = vst.msk [vmem:[#allocation3 + $0x28] sm:$0xc] %vm316_vm1, %v1905_v55  ;;  %2844 = vmatmul.mubr.msk.bf16.vlgmr.msra.gmra.mrb[4].mxu0 %vm674_vm4, %v3411_v45 }
 0x131   : > { %1893 = vst.msk [vmem:[#allocation3 + $0x28] sm:$0x3] %vm302_vm0, %v1891_v56  ;;  %2879 = vmatprep.mubr.msk.bf16.mxu0 %vm3021_vm2, %v3014_v15 }
 0x133   : > { %v1932_v57 = vpop.permute.xlu1 %1931  ;;  %v1918_v58 = vpop.permute.xlu0 %1917 }
 0x134   : > { %v2979_v59 = vld [vmem:[#allocation3 + $0x20] sm:$0xff]   ;;  %1934 = vst.msk [vmem:[#allocation3 + $0x2c] sm:$0xc] %vm316_vm1, %v1932_v57 }
 0x135   : > { %1920 = vst.msk [vmem:[#allocation3 + $0x2c] sm:$0x3] %vm302_vm0, %v1918_v58  ;;  %2856 = vmatpush3.bf16.msra.mxu1 %v2979_v59 }
 0x136   : > { %2857 = vmatprep.subr.bf16.mxu1 %v3014_v15 }
 0x137   : > { %v1945_v60 = vpop.permute.xlu0 %1944 }
 0x138   : > { %1947 = vst.msk [vmem:[#allocation3 + $0x30] sm:$0x3] %vm302_vm0, %v1945_v60 }
 0x13c   : > { %v2980_v61 = vld [vmem:[#allocation3 + $0x28] sm:$0xff]  }
 0x13d   : > { %2858 = vmatpush3.bf16.msra.mxu1 %v2980_v61 }
 0x13e   : > { %2859 = vmatprep.subr.bf16.mxu1 %v3014_v15 }
 0x13f   : > { %v2981_v62 = vld [vmem:[#allocation3 + $0x30] ss:$0 sps:$4 sm:$0x33]  }
 0x140   : > { %v2001_v63 = vsel %vm678_vm3, %v2981_v62, 0 }
 0x141   : > { %2860 = vmatpush3.bf16.msra.mxu1 %v2001_v63 }
 0x144   : > { %2862 = vmatmul.mubr.msk.bf16.vlgmr.msra.gmra.mrb[4].mxu1 %vm674_vm4, %v3411_v45 }
 0x145   : > { %v633_v0 = vpop.permute.xlu1 %632 }
 0x1a7   : > { %v716_v45 = vpop.f32.mrb[0].mxu0 }
 0x1a8   : > { %v717_v12 = vadd.f32 %v716_v45, %v633_v0  ;;  %v2809_v14 = vpop.f32.mrb[1].mxu0 }
 0x1a9   : > { %v719_v16 = vpop.f32.mrb[2].mxu0 }
 0x1aa   : > { %vm722_vm11 = vcmp.ge.f32.partialorder %v717_v12, 0.0  ;;  %v723_v18 = vmul.f32 0.1, %v717_v12  ;;  %v2810_v19 = vpop.f32.mrb[3].mxu0 }
 0x1ac   : > { %v724_v21 = vsel %vm722_vm11, %v717_v12, %v723_v18 }
 0x1ad   : > { %v725_v22 = vmul.f32 %v3514_v17, %v724_v21 }
 0x1af   : > { %v726_v23 = vpack.c.bf16 %v725_v22, %v725_v22 }
 0x1b1   : > { %v738_v24 = vrot.slane %v726_v23, %v3083_v5 }
 0x1b3   : > { %739 = vrot.lane.b32.xlu1 %v738_v24, %s3023_s19 }
 0x1bb   : > { %v1157_v13 = vpop.f32.mrb[0].mxu1 }
 0x1bc   : > { %v1158_v25 = vadd.f32 %v1157_v13, %v633_v0  ;;  %v2827_v26 = vpop.f32.mrb[1].mxu1 }
 0x1bd   : > { %v1160_v27 = vpop.f32.mrb[2].mxu1 }
 0x1be   : > { %vm1163_vm12 = vcmp.ge.f32.partialorder %v1158_v25, 0.0  ;;  %v1164_v29 = vmul.f32 0.1, %v1158_v25  ;;  %v2828_v28 = vpop.f32.mrb[3].mxu1  ;;  %v2388_v27 = vld [vmem:[%s3637_s4] sm:$0xff] }
 0x1c0   : > { %v1165_v30 = vsel %vm1163_vm12, %v1158_v25, %v1164_v29 }
 0x1c1   : > { %v1166_v31 = vmul.f32 %v3514_v17, %v1165_v30 }
 0x1c3   : > { %v1167_v32 = vpack.c.bf16 %v1166_v31, %v1166_v31 }
 0x1c5   : > { %v1178_v33 = vrot.slane %v1167_v32, %v3083_v5 }
 0x1c7   : > { %1179 = vrot.lane.b32.xlu0 %v1178_v33, %s3023_s19 }
 0x203   : > { %v1596_v34 = vpop.f32.mrb[4].mxu0 }
 0x204   : > { %v1597_v35 = vadd.f32 %v1596_v34, %v633_v0  ;;  %v2845_v36 = vpop.f32.mrb[5].mxu0 }
 0x205   : > { %v1599_v37 = vpop.f32.mrb[6].mxu0 }
 0x206   : > { %vm1602_vm13 = vcmp.ge.f32.partialorder %v1597_v35, 0.0  ;;  %v1603_v38 = vmul.f32 0.1, %v1597_v35  ;;  %v2846_v6 = vpop.f32.mrb[7].mxu0 }
 0x208   : > { %v1604_v39 = vsel %vm1602_vm13, %v1597_v35, %v1603_v38 }
 0x209   : > { %v1605_v40 = vmul.f32 %v3514_v17, %v1604_v39 }
 0x20b   : > { %v1606_v41 = vpack.c.bf16 %v1605_v40, %v1605_v40 }
 0x20d   : > { %v1617_v42 = vrot.slane %v1606_v41, %v3083_v5 }
 0x20f   : > { %1618 = vrot.lane.b32.xlu0 %v1617_v42, %s3023_s19 }
 0x217   : > { %v2037_v43 = vpop.f32.mrb[4].mxu1 }
 0x218   : > { %v2038_v44 = vadd.f32 %v2037_v43, %v633_v0  ;;  %v2863_v46 = vpop.f32.mrb[5].mxu1 }
 0x219   : > { %v2040_v47 = vpop.f32.mrb[6].mxu1 }
 0x21a   : > { %vm2043_vm14 = vcmp.ge.f32.partialorder %v2038_v44, 0.0  ;;  %v2044_v48 = vmul.f32 0.1, %v2038_v44  ;;  %v2864_v8 = vpop.f32.mrb[7].mxu1 }
 0x21c   : > { %v2045_v49 = vsel %vm2043_vm14, %v2038_v44, %v2044_v48 }
 0x21d   : > { %v2046_v50 = vmul.f32 %v3514_v17, %v2045_v49 }
 0x21f   : > { %v2047_v20 = vpack.c.bf16 %v2046_v50, %v2046_v50 }
 0x221   : > { %v2058_v51 = vrot.slane %v2047_v20, %v3083_v5 }
 0x223   : > { %2059 = vrot.lane.b32.xlu1 %v2058_v51, %s3023_s19 }
 0x225   : > { %v740_v52 = vpop.permute.xlu1 %739 }
 0x226   : > { %743 = vst.msk [vmem:[#allocation2] sm:$0x3] %vm742_vm15, %v740_v52  ;;  %v2374_v52 = vld [vmem:[%s3635_s2] sm:$0xf] }
 0x22d   : > { %v2063_v53 = vld [vmem:[#allocation2] sm:$0x3] }
 0x22e   : > { %v3529_v54 = vld.sshfl [vmem:[#allocation2] sm:$0x3 pattern:$0x76325410]  ;;  %2064 = vst.msk [vmem:[#allocation3] sm:$0x3] %vm302_vm0, %v2063_v53 }
 0x22f   : > { %2086 = vrot.lane.b32.xlu0 %v3529_v54, %s3013_s8 }
 0x233   : > { %2113 = vrot.lane.b32.xlu0 %v3529_v54, %s3012_s30 }
 0x237   : > { %2181 = vrot.lane.b32.xlu0 %v3529_v54, %s3015_s9 }
 0x239   : > { %v1180_v55 = vpop.permute.xlu0 %1179 }
 0x23a   : > { %1182 = vst.msk [vmem:[#allocation2 + $0x2] sm:$0x3] %vm742_vm15, %v1180_v55 }
 0x23b   : > { %2208 = vrot.lane.b32.xlu0 %v3529_v54, %s3016_s10 }
 0x23f   : > { %2235 = vrot.lane.b32.xlu0 %v3529_v54, %s3017_s11 }
 0x241   : > { %v2982_v56 = vld [vmem:[#allocation2 + $0x2] ss:$0 sps:$4 sm:$0x33]  }
 0x242   : > { %v2983_v57 = vld [vmem:[#allocation2 + $0x2] ss:$0 sps:$4 sm:$0x33]   ;;  %v2074_v58 = vrot.slane %v2982_v56, %v3083_v5 }
 0x243   : > { %2316 = vrot.lane.b32.xlu0 %v3529_v54, %s3018_s12  ;;  %v2984_v59 = vld [vmem:[#allocation2 + $0x2] ss:$0 sps:$4 sm:$0x33]   ;;  %v2099_v60 = vrot.slane %v2983_v57, %v3083_v5 }
 0x244   : > { %2076 = vst.msk [vmem:[#allocation3] sm:$0xc] %vm316_vm1, %v2074_v58  ;;  %v2194_v61 = vrot.slane %v2984_v59, %v3083_v5  ;;  %v2985_v62 = vld [vmem:[#allocation2 + $0x2] ss:$0 sps:$4 sm:$0x33]  }
 0x245   : > { %2100 = vrot.lane.b32.xlu1 %v2099_v60, %s3013_s8  ;;  %v2221_v63 = vrot.slane %v2985_v62, %v3083_v5  ;;  %v2986_v1 = vld [vmem:[#allocation2 + $0x2] ss:$0 sps:$4 sm:$0x33]  }
 0x246   : > { %v2329_v2 = vrot.slane %v2986_v1, %v3083_v5  ;;  %v2993_v21 = vld [vmem:[#allocation2 + $0x2] ss:$0 sps:$4 sm:$0x33]  }
 0x247   : > { %v2356_v25 = vrot.slane %v2993_v21, %v3083_v5 }
 0x249   : > { %2195 = vrot.lane.b32.xlu1 %v2194_v61, %s3015_s9 }
 0x24d   : > { %2222 = vrot.lane.b32.xlu1 %v2221_v63, %s3016_s10 }
 0x251   : > { %2330 = vrot.lane.b32.xlu1 %v2329_v2, %s3018_s12 }
 0x281   : > { %v1619_v3 = vpop.permute.xlu0 %1618 }
 0x282   : > { %1621 = vst.msk [vmem:[#allocation2 + $0x4] sm:$0x3] %vm742_vm15, %v1619_v3 }
 0x289   : > { %v2987_v4 = vld [vmem:[#allocation2 + $0x4] ss:$0 sps:$4 sm:$0x33]  }
 0x28a   : > { %v2988_v7 = vld [vmem:[#allocation2 + $0x4] ss:$0 sps:$4 sm:$0x33]   ;;  %v2126_v9 = vrot.slane %v2987_v4, %v3083_v5 }
 0x28b   : > { %v2140_v10 = vrot.slane %v2988_v7, %v3083_v5  ;;  %v2989_v11 = vld [vmem:[#allocation2 + $0x4] ss:$0 sps:$4 sm:$0x33]  }
 0x28c   : > { %2128 = vst.msk [vmem:[#allocation3 + $0x8] sm:$0xc] %vm316_vm1, %v2126_v9  ;;  %v2167_v0 = vrot.slane %v2989_v11, %v3083_v5  ;;  %v2990_v45 = vld [vmem:[#allocation2 + $0x4] ss:$0 sps:$4 sm:$0x33]  }
 0x28d   : > { %2141 = vrot.lane.b32.xlu1 %v2140_v10, %s3013_s8  ;;  %v2248_v14 = vrot.slane %v2990_v45, %v3083_v5  ;;  %v2991_v16 = vld [vmem:[#allocation2 + $0x4] ss:$0 sps:$4 sm:$0x33]  }
 0x28e   : > { %v2275_v18 = vrot.slane %v2991_v16, %v3083_v5  ;;  %v2992_v19 = vld [vmem:[#allocation2 + $0x4] ss:$0 sps:$4 sm:$0x33]  }
 0x28f   : > { %v2302_v24 = vrot.slane %v2992_v19, %v3083_v5  ;;  %v2494_v9 = vld [vmem:[%s3638_s5] sm:$0xff] }
 0x291   : > { %2168 = vrot.lane.b32.xlu1 %v2167_v0, %s3012_s30  ;;  %v2496_v0 = vld [vmem:[%s3639_s6] sm:$0xff] }
 0x295   : > { %v2060_v12 = vpop.permute.xlu1 %2059  ;;  %2249 = vrot.lane.b32.xlu1 %v2248_v14, %s3015_s9 }
 0x296   : > { %2062 = vst.msk [vmem:[#allocation2 + $0x6] sm:$0x3] %vm742_vm15, %v2060_v12 }
 0x299   : > { %2276 = vrot.lane.b32.xlu1 %v2275_v18, %s3016_s10 }
 0x29d   : > { %v2129_v22 = vld [vmem:[#allocation2 + $0x6] sm:$0x3]  ;;  %2303 = vrot.lane.b32.xlu1 %v2302_v24, %s3017_s11 }
 0x29e   : > { %v2733_v23 = vld.sshfl [vmem:[#allocation2 + $0x6] sm:$0x3 pattern:$0x76325410]  ;;  %2130 = vst.msk [vmem:[#allocation3 + $0xc] sm:$0x3] %vm302_vm0, %v2129_v22 }
 0x29f   : > { %2154 = vrot.lane.b32.xlu0 %v2733_v23, %s3013_s8 }
 0x2a1   : > { %v2087_v13 = vpop.permute.xlu0 %2086  ;;  %2357 = vrot.lane.b32.xlu1 %v2356_v25, %s3019_s13 }
 0x2a2   : > { %2089 = vst.msk [vmem:[#allocation3 + $0x4] sm:$0x3] %vm302_vm0, %v2087_v13 }
 0x2a3   : > { %2262 = vrot.lane.b32.xlu0 %v2733_v23, %s3015_s9 }
 0x2a5   : > { %v2114_v26 = vpop.permute.xlu0 %2113  ;;  %2391 = vperm.xlu1 %2906, %v2388_v27  }
 0x2a6   : > { %2116 = vst.msk [vmem:[#allocation3 + $0x8] sm:$0x3] %vm302_vm0, %v2114_v26 }
 0x2a7   : > { %2289 = vrot.lane.b32.xlu0 %v2733_v23, %s3016_s10  ;;  %s276_s10 = scalar_lea.vmem %s3640_s7, %s2752_s26 }
 0x2a9   : > { %v2182_v29 = vpop.permute.xlu0 %2181 }
 0x2aa   : > { %2184 = vst.msk [vmem:[#allocation3 + $0x14] sm:$0x3] %vm302_vm0, %v2182_v29 }
 0x2ab   : > { %2343 = vrot.lane.b32.xlu0 %v3529_v54, %s3019_s13 }
 0x2ad   : > { %v2209_v5 = vpop.permute.xlu0 %2208 }
 0x2ae   : > { %2211 = vst.msk [vmem:[#allocation3 + $0x18] sm:$0x3] %vm302_vm0, %v2209_v5 }
 0x2af   : > { %2370 = vrot.lane.b32.xlu0 %v3529_v54, %s3020_s14 }
 0x2b1   : > { %v2236_v28 = vpop.permute.xlu0 %2235 }
 0x2b2   : > { %2238 = vst.msk [vmem:[#allocation3 + $0x1c] sm:$0x3] %vm302_vm0, %v2236_v28 }
 0x2b5   : > { %v2317_v30 = vpop.permute.xlu0 %2316 }
 0x2b6   : > { %2319 = vst.msk [vmem:[#allocation3 + $0x28] sm:$0x3] %vm302_vm0, %v2317_v30 }
 0x2b7   : > { %v2101_v31 = vpop.permute.xlu1 %2100 }
 0x2b8   : > { %2103 = vst.msk [vmem:[#allocation3 + $0x4] sm:$0xc] %vm316_vm1, %v2101_v31 }
 0x2bb   : > { %v2196_v32 = vpop.permute.xlu1 %2195 }
 0x2bc   : > { %2198 = vst.msk [vmem:[#allocation3 + $0x14] sm:$0xc] %vm316_vm1, %v2196_v32 }
 0x2bf   : > { %v2994_v33 = vld [vmem:[#allocation3] sm:$0xff]   ;;  %v2223_v34 = vpop.permute.xlu1 %2222 }
 0x2c0   : > { %2225 = vst.msk [vmem:[#allocation3 + $0x18] sm:$0xc] %vm316_vm1, %v2223_v34  ;;  %2866 = vmatpush3.bf16.msra.mxu0 %v2994_v33 }
 0x2c1   : > { %2867 = vmatprep.subr.bf16.mxu0 %v3014_v15 }
 0x2c3   : > { %v2331_v35 = vpop.permute.xlu1 %2330 }
 0x2c4   : > { %2333 = vst.msk [vmem:[#allocation3 + $0x28] sm:$0xc] %vm316_vm1, %v2331_v35 }
 0x2ff   : > { %v2142_v36 = vpop.permute.xlu1 %2141 }
 0x300   : > { %2144 = vst.msk [vmem:[#allocation3 + $0xc] sm:$0xc] %vm316_vm1, %v2142_v36 }
 0x303   : > { %v2169_v37 = vpop.permute.xlu1 %2168 }
 0x304   : > { %2171 = vst.msk [vmem:[#allocation3 + $0x10] sm:$0xc] %vm316_vm1, %v2169_v37 }
 0x307   : > { %v2250_v38 = vpop.permute.xlu1 %2249  ;;  %v2995_v6 = vld [vmem:[#allocation3 + $0x8] sm:$0xff]  }
 0x308   : > { %2252 = vst.msk [vmem:[#allocation3 + $0x1c] sm:$0xc] %vm316_vm1, %v2250_v38  ;;  %2868 = vmatpush3.bf16.msra.mxu0 %v2995_v6 }
 0x309   : > { %2869 = vmatprep.subr.bf16.mxu0 %v3014_v15 }
 0x30b   : > { %v2277_v39 = vpop.permute.xlu1 %2276 }
 0x30c   : > { %2279 = vst.msk [vmem:[#allocation3 + $0x20] sm:$0xc] %vm316_vm1, %v2277_v39 }
 0x30f   : > { %v2304_v41 = vpop.permute.xlu1 %2303  ;;  %v2997_v48 = vld [vmem:[#allocation3 + $0x18] sm:$0xff]  }
 0x310   : > { %2306 = vst.msk [vmem:[#allocation3 + $0x24] sm:$0xc] %vm316_vm1, %v2304_v41 }
 0x311   : > { %v2155_v40 = vpop.permute.xlu0 %2154 }
 0x312   : > { %2157 = vst.msk [vmem:[#allocation3 + $0x10] sm:$0x3] %vm302_vm0, %v2155_v40 }
 0x313   : > { %v2358_v43 = vpop.permute.xlu1 %2357 }
 0x314   : > { %2360 = vst.msk [vmem:[#allocation3 + $0x2c] sm:$0xc] %vm316_vm1, %v2358_v43 }
 0x315   : > { %v2263_v42 = vpop.permute.xlu0 %2262 }
 0x316   : > { %2265 = vst.msk [vmem:[#allocation3 + $0x20] sm:$0x3] %vm302_vm0, %v2263_v42 }
 0x319   : > { %v2290_v44 = vpop.permute.xlu0 %2289  ;;  %v2996_v46 = vld [vmem:[#allocation3 + $0x10] sm:$0xff]  }
 0x31a   : > { %2292 = vst.msk [vmem:[#allocation3 + $0x24] sm:$0x3] %vm302_vm0, %v2290_v44  ;;  %2870 = vmatpush3.bf16.msra.mxu0 %v2996_v46 }
 0x31b   : > { %2871 = vmatprep.subr.bf16.mxu0 %v3014_v15 }
 0x31d   : > { %v2344_v47 = vpop.permute.xlu0 %2343 }
 0x31e   : > { %2346 = vst.msk [vmem:[#allocation3 + $0x2c] sm:$0x3] %vm302_vm0, %v2344_v47  ;;  %2872 = vmatpush3.bf16.msra.mxu0 %v2997_v48 }
 0x31f   : > { %2873 = vmatprep.subr.bf16.mxu0 %v3014_v15 }
 0x321   : > { %v2371_v8 = vpop.permute.xlu0 %2370  ;;  %v2998_v49 = vld [vmem:[#allocation3 + $0x20] sm:$0xff]  }
 0x322   : > { %2373 = vst.msk [vmem:[#allocation3 + $0x30] sm:$0x3] %vm302_vm0, %v2371_v8  ;;  %2874 = vmatpush3.bf16.msra.mxu0 %v2998_v49  ;;  %vm2480_vm0 = vcmask 637952  }
 0x323   : > { %2875 = vmatprep.subr.bf16.mxu0 %v3014_v15 }
 0x324   : > { %v2392_v53 = vpop.permute.xlu1 %2391 }
 0x325   : > { %v2999_v50 = vld [vmem:[#allocation3 + $0x28] sm:$0xff]  }
 0x326   : > { %2876 = vmatpush3.bf16.msra.mxu0 %v2999_v50 }
 0x327   : > { %2877 = vmatprep.subr.bf16.mxu0 %v3014_v15 }
 0x329   : > { %v3000_v20 = vld [vmem:[#allocation3 + $0x30] ss:$0 sps:$4 sm:$0x33]  }
 0x32a   : > { %v2437_v51 = vsel %vm678_vm3, %v3000_v20, 0 }
 0x32b   : > { %2878 = vmatpush3.bf16.msra.mxu0 %v2437_v51 }
 0x32e   : > { %2880 = vmatmul.mubr.msk.bf16.vlgmr.msra.gmra.mrb[8].mxu0 %vm674_vm4, %v2374_v52 }
 0x401   : > { %v2473_v54 = vpop.f32.mrb[8].mxu0 }
 0x402   : > { %v2474_v55 = vadd.f32 %v2473_v54, %v2392_v53  ;;  %v2881_v56 = vpop.f32.mrb[9].mxu0 }
 0x403   : > { %v2476_v57 = vpop.f32.mrb[10].mxu0 }
 0x404   : > { %v2882_v58 = vpop.f32.mrb[11].mxu0  ;;  %v2479_v59 = vmul.f32 %v3514_v17, %v2474_v55 }
 0x406   : > { %v2481_v15 = vsel %vm2480_vm0, %v2479_v59, 0.0 }
 0x407   : > { %2482 = vadd.xlane.f32.xlu0 %v2481_v15 }
 0x494   : > { %v2483_v60 = vpop.xlane.xlu0 %2482 }
 0x495   : > { %v2484_v61 = vmul.f32 0.015625, %v2483_v60 }
 0x497   : > { %v2485_v62 = vsub.f32 %v2474_v55, %v2484_v61 }
 0x499   : > { %v2486_v63 = vmul.f32 %v3514_v17, %v2485_v62 }
 0x49b   : > { %v2487_v1 = vmul.f32 %v2486_v63, %v2486_v63 }
 0x49d   : > { %v2488_v2 = vsel %vm2480_vm0, %v2487_v1, 0.0 }
 0x49e   : > { %2489 = vadd.xlane.f32.xlu1 %v2488_v2 }
 0x52b   : > { %v2490_v3 = vpop.xlane.xlu1 %2489 }
 0x52c   : > { %v2491_v4 = vmul.f32 0.015625, %v2490_v3 }
 0x52e   : > { %v2492_v7 = vadd.f32 1e-05, %v2491_v4 }
 0x530   : > { %3001 = vrsqrt.f32 %v2492_v7 }
 0x53a   : > { %v3002_v10 = vpop.eup %3001 }
 0x53b   : > { %v2495_v11 = vmul.f32 %v3002_v10, %v2494_v9 }
 0x53d   : > { %2501 = vperm.xlu0 %2907, %v2495_v11   ;;  %v2497_v17 = vmul.f32 %v2495_v11, %v2484_v61 }
 0x53f   : > { %v2498_v45 = vsub.f32 %v2496_v0, %v2497_v17 }
 0x541   : > { %2507 = vperm.xlu1 %2906, %v2498_v45  }
 0x5bc   : > { %v2502_v12 = vpop.permute.xlu0 %2501 }
 0x5bd   : > { %v2504_v14 = vmul.f32 %v2502_v12, %v2474_v55 }
 0x5c0   : > { %v2508_v16 = vpop.permute.xlu1 %2507 }
 0x5c1   : > { %v2510_v18 = vadd.f32 %v2508_v16, %v2504_v14 }
 0x5c3   : > { %vm2511_vm1 = vcmp.ge.f32.partialorder %v2510_v18, 0.0  ;;  %v2512_v19 = vmul.f32 0.1, %v2510_v18 }
 0x5c5   : > { %v2513_v21 = vsel %vm2511_vm1, %v2510_v18, %v2512_v19 }
 0x5c6   : > { %2514 = vst.msk [vmem:[%s276_s10] sm:$0xff] %vm2480_vm0, %v2513_v21 }
 0x5c7 PF: > { %s17_s24 = sadd.s32 1, %s3009_s24  }
 0x5c8   : > { %p14_p4 = scmp.ge.s32.totalorder %s17_s24, 4  }
 0x5ca   :  { %16 = sbr.rel (!%p14_p4) target bundleno = 1 (0x1), region = 84 }

</bundles_post_ra>
